<compile_context>
chip_gen: v5e
topology: v5e:2x2
jax: 0.10.0
libtpu: 0.0.40
codegen_flags: <defaults>
</compile_context>

<pallas_src>
import functools

import jax
import jax.numpy as jnp
from jax.experimental import pallas as pl
from jax.experimental.pallas import tpu as pltpu


# ----------------------------------------------------------------------------
# Fused Pallas kernel: conv(3x3,valid)+relu -> flatten -> fc1+relu -> fc2 -> CE
# ----------------------------------------------------------------------------
def _fused_forward_kernel(cols_ref, wct_ref, bc_ref, w1_ref, b1_ref,
                          w2_ref, b2_ref, y_ref, loss_ref, feat_ref,
                          *, n_cout, s_len):
    cols = cols_ref[...]                       # [N, S, K]   f32 (im2col patches)
    wct = wct_ref[...]                         # [Cout, K]
    n = cols.shape[0]

    # conv + relu, one output channel at a time (Cout = 8, static unroll).
    # Each relu'd channel map lands at lane offset c*S of the scratch, which
    # reproduces the NCHW flatten order expected by fc1's weight rows.
    for c in range(n_cout):
        w_c = wct[c:c + 1, :][:, None, :]                    # [1, 1, K]
        a_c = jnp.sum(cols * w_c, axis=-1) + bc_ref[c]       # [N, S] (VPU + lane reduce)
        feat_ref[:, c * s_len:(c + 1) * s_len] = jnp.maximum(a_c, 0.0)

    feat = feat_ref[...]                                     # [N, Cout*S]
    h = jnp.maximum(jnp.dot(feat, w1_ref[...],               # ONE fc1 matmul (MXU)
                            preferred_element_type=jnp.float32) + b1_ref[...], 0.0)
    logits = jnp.dot(h, w2_ref[...],
                     preferred_element_type=jnp.float32) + b2_ref[...]   # [N, n_cls]

    # mean cross-entropy (max-subtracted logsumexp; label select via iota==y)
    m = jnp.max(logits, axis=-1, keepdims=True)
    lse = m + jnp.log(jnp.sum(jnp.exp(logits - m), axis=-1, keepdims=True))
    cls = jax.lax.broadcasted_iota(jnp.int32, logits.shape, 1)
    true_logit = jnp.sum(jnp.where(cls == y_ref[...], logits, 0.0),
                         axis=-1, keepdims=True)
    per_sample = lse - true_logit                            # [N, 1]
    loss_ref[...] = jnp.sum(per_sample, axis=0, keepdims=True) * (1.0 / n)


# ----------------------------------------------------------------------------
# JAX glue: im2col (layout prep only) + the single pallas_call
# ----------------------------------------------------------------------------
def _im2col(x, kh, kw):
    """x: [N, C, H, W] (NCHW), stride 1, no pad -> [N, OH*OW, C*kh*kw].

    The K axis is ordered (c, i, j) to match conv_w.reshape(Cout, Cin*kh*kw);
    the S axis is (oh, ow) row-major to match the NCHW flatten in the Learner.
    """
    N, C, H, W = x.shape
    OH, OW = H - kh + 1, W - kw + 1
    patches = [x[:, :, i:i + OH, j:j + OW] for i in range(kh) for j in range(kw)]
    cols = jnp.stack(patches, axis=2)                     # [N, C, kh*kw, OH, OW]
    cols = cols.reshape(N, C * kh * kw, OH * OW)          # k = c*(kh*kw) + i*kw + j
    return cols.transpose(0, 2, 1), OH, OW                # [N, OH*OW, C*kh*kw]


def memory_meta_forward(params, x_spt, y_spt):
    """Memory_Meta.forward: cross_entropy(Learner(x_spt), y_spt), one fused kernel."""
    wc, bc = params["conv_w"], params["conv_b"]           # [Cout,Cin,KH,KW], [Cout]
    Cout, Cin, KH, KW = wc.shape
    cols, OH, OW = _im2col(x_spt, KH, KW)                 # [N, S, K]
    N, S, K = cols.shape
    hidden = params["fc1_w"].shape[1]
    n_cls = params["fc2_w"].shape[1]

    wct = wc.reshape(Cout, K)                             # [Cout, K]
    w1 = params["fc1_w"]                                  # [Cout*S, hidden] (NCHW order)
    b1 = params["fc1_b"].reshape(1, hidden)
    w2 = params["fc2_w"]                                  # [hidden, n_cls]
    b2 = params["fc2_b"].reshape(1, n_cls)
    y2 = y_spt.astype(jnp.int32).reshape(N, 1)

    vmem = pltpu.MemorySpace.VMEM
    smem = pltpu.MemorySpace.SMEM
    loss = pl.pallas_call(
        functools.partial(_fused_forward_kernel, n_cout=Cout, s_len=S),
        out_shape=jax.ShapeDtypeStruct((1, 1), jnp.float32),
        in_specs=[
            pl.BlockSpec(memory_space=vmem),   # cols [N, S, K]
            pl.BlockSpec(memory_space=vmem),   # wct  [Cout, K]
            pl.BlockSpec(memory_space=smem),   # bc   [Cout]  (scalars)
            pl.BlockSpec(memory_space=vmem),   # w1   [Cout*S, hidden]
            pl.BlockSpec(memory_space=vmem),   # b1   [1, hidden]
            pl.BlockSpec(memory_space=vmem),   # w2   [hidden, n_cls]
            pl.BlockSpec(memory_space=vmem),   # b2   [1, n_cls]
            pl.BlockSpec(memory_space=vmem),   # y    [N, 1] int32
        ],
        out_specs=pl.BlockSpec(memory_space=vmem),
        scratch_shapes=[pltpu.VMEM((N, Cout * S), jnp.float32)],   # flattened conv acts
    )(cols, wct, bc, w1, b1, w2, b2, y2)
    return loss[0, 0]


# ----------------------------------------------------------------------------
# Deterministic parameter init + pure-JAX reference + driver
# ----------------------------------------------------------------------------
def init_params(key, cin=4, cout=8, h=8, w=8, hidden=32, n_classes=2):
    kh = kw = 3
    oh, ow = h - kh + 1, w - kw + 1
    feat = cout * oh * ow
    ks = jax.random.split(key, 6)
    s = 0.1
    return {
        "conv_w": s * jax.random.normal(ks[0], (cout, cin, kh, kw), jnp.float32),
        "conv_b": s * jax.random.normal(ks[1], (cout,), jnp.float32),
        "fc1_w": s * jax.random.normal(ks[2], (feat, hidden), jnp.float32),
        "fc1_b": s * jax.random.normal(ks[3], (hidden,), jnp.float32),
        "fc2_w": s * jax.random.normal(ks[4], (hidden, n_classes), jnp.float32),
        "fc2_b": s * jax.random.normal(ks[5], (n_classes,), jnp.float32),
    }


def _reference_loss(params, x, y):
    """Pure-JAX reference (mirrors the PyTorch stand-in Learner + F.cross_entropy)."""
    conv = jax.lax.conv_general_dilated(
        x, params["conv_w"], window_strides=(1, 1), padding="VALID",
        dimension_numbers=("NCHW", "OIHW", "NCHW"))
    conv = jnp.maximum(conv + params["conv_b"][None, :, None, None], 0.0)
    feat = conv.reshape(x.shape[0], -1)                  # NCHW flatten
    h = jnp.maximum(feat @ params["fc1_w"] + params["fc1_b"], 0.0)
    logits = h @ params["fc2_w"] + params["fc2_b"]
    logp = jax.nn.log_softmax(logits, axis=-1)
    return -jnp.mean(jnp.take_along_axis(logp, y[:, None], axis=-1))


if __name__ == "__main__":
    key = jax.random.PRNGKey(0)
    kp, kx, ky = jax.random.split(key, 3)

    B, C, H, W = 8, 4, 8, 8
    params = init_params(kp, cin=C, h=H, w=W)
    x_spt = jax.random.normal(kx, (B, C, H, W), jnp.float32)
    y_spt = jax.random.randint(ky, (B,), 0, 2, jnp.int32)

    loss = jax.jit(memory_meta_forward)(params, x_spt, y_spt)
    loss = jax.block_until_ready(loss)

    ref = _reference_loss(params, x_spt, y_spt)
    assert jnp.allclose(loss, ref, atol=1e-4, rtol=1e-4), (loss, ref)

    print("KERNEL_OK")
</pallas_src>

<mosaic_0001>
module attributes {stable_mosaic.version = 11 : i64} {
  func.func @_fused_forward_kernel(%arg0: memref<8x36x36xf32, #tpu.memory_space<vmem>>, %arg1: memref<8x36xf32, #tpu.memory_space<vmem>>, %arg2: memref<8xf32, #tpu.memory_space<smem>>, %arg3: memref<288x32xf32, #tpu.memory_space<vmem>>, %arg4: memref<1x32xf32, #tpu.memory_space<vmem>>, %arg5: memref<32x2xf32, #tpu.memory_space<vmem>>, %arg6: memref<1x2xf32, #tpu.memory_space<vmem>>, %arg7: memref<8x1xi32, #tpu.memory_space<vmem>>, %arg8: memref<1x1xf32, #tpu.memory_space<vmem>>, %arg9: memref<8x288xf32, #tpu.memory_space<vmem>>) attributes {dimension_semantics = [], scalar_prefetch = 0 : i64, scratch_operands = 1 : i64, tpu.core_type = #tpu.core_type<tc>} {
    %c0 = arith.constant 0 : index
    %c0_0 = arith.constant 0 : index
    %c0_1 = arith.constant 0 : index
    %0 = vector.load %arg0[%c0, %c0_0, %c0_1] : memref<8x36x36xf32, #tpu.memory_space<vmem>>, vector<8x36x36xf32>
    %c0_2 = arith.constant 0 : index
    %c0_3 = arith.constant 0 : index
    %1 = vector.load %arg1[%c0_2, %c0_3] : memref<8x36xf32, #tpu.memory_space<vmem>>, vector<8x36xf32>
    %2 = vector.extract_strided_slice %1 {offsets = [0, 0], sizes = [1, 36], strides = [1, 1]} : vector<8x36xf32> to vector<1x36xf32>
    %3 = vector.shape_cast %2 : vector<1x36xf32> to vector<1x1x36xf32>
    %4 = vector.broadcast %3 : vector<1x1x36xf32> to vector<8x36x36xf32>
    %5 = arith.mulf %0, %4 : vector<8x36x36xf32>
    %cst = arith.constant dense<0.000000e+00> : vector<8x36xf32>
    %6 = vector.multi_reduction <add>, %5, %cst [2] : vector<8x36x36xf32> to vector<8x36xf32>
    %c0_4 = arith.constant 0 : index
    %7 = memref.load %arg2[%c0_4] : memref<8xf32, #tpu.memory_space<smem>>
    %8 = vector.broadcast %7 : f32 to vector<8x36xf32>
    %9 = arith.addf %6, %8 : vector<8x36xf32>
    %cst_5 = arith.constant 0.000000e+00 : f32
    %10 = vector.broadcast %cst_5 : f32 to vector<8x36xf32>
    %11 = arith.maximumf %9, %10 : vector<8x36xf32>
    %c0_6 = arith.constant 0 : index
    %c0_7 = arith.constant 0 : index
    %12 = vector.load %arg9[%c0_6, %c0_7] : memref<8x288xf32, #tpu.memory_space<vmem>>, vector<8x36xf32>
    tpu.vector_store %arg9[%c0_6, %c0_7], %11 {strides = array<i32>} : memref<8x288xf32, #tpu.memory_space<vmem>>, vector<8x36xf32>,
    %13 = vector.extract_strided_slice %1 {offsets = [1, 0], sizes = [1, 36], strides = [1, 1]} : vector<8x36xf32> to vector<1x36xf32>
    %14 = vector.shape_cast %13 : vector<1x36xf32> to vector<1x1x36xf32>
    %15 = vector.broadcast %14 : vector<1x1x36xf32> to vector<8x36x36xf32>
    %16 = arith.mulf %0, %15 : vector<8x36x36xf32>
    %cst_8 = arith.constant dense<0.000000e+00> : vector<8x36xf32>
    %17 = vector.multi_reduction <add>, %16, %cst_8 [2] : vector<8x36x36xf32> to vector<8x36xf32>
    %c1 = arith.constant 1 : index
    %18 = memref.load %arg2[%c1] : memref<8xf32, #tpu.memory_space<smem>>
    %19 = vector.broadcast %18 : f32 to vector<8x36xf32>
    %20 = arith.addf %17, %19 : vector<8x36xf32>
    %cst_9 = arith.constant 0.000000e+00 : f32
    %21 = vector.broadcast %cst_9 : f32 to vector<8x36xf32>
    %22 = arith.maximumf %20, %21 : vector<8x36xf32>
    %c0_10 = arith.constant 0 : index
    %c36 = arith.constant 36 : index
    %23 = vector.load %arg9[%c0_10, %c36] : memref<8x288xf32, #tpu.memory_space<vmem>>, vector<8x36xf32>
    tpu.vector_store %arg9[%c0_10, %c36], %22 {strides = array<i32>} : memref<8x288xf32, #tpu.memory_space<vmem>>, vector<8x36xf32>,
    %24 = vector.extract_strided_slice %1 {offsets = [2, 0], sizes = [1, 36], strides = [1, 1]} : vector<8x36xf32> to vector<1x36xf32>
    %25 = vector.shape_cast %24 : vector<1x36xf32> to vector<1x1x36xf32>
    %26 = vector.broadcast %25 : vector<1x1x36xf32> to vector<8x36x36xf32>
    %27 = arith.mulf %0, %26 : vector<8x36x36xf32>
    %cst_11 = arith.constant dense<0.000000e+00> : vector<8x36xf32>
    %28 = vector.multi_reduction <add>, %27, %cst_11 [2] : vector<8x36x36xf32> to vector<8x36xf32>
    %c2 = arith.constant 2 : index
    %29 = memref.load %arg2[%c2] : memref<8xf32, #tpu.memory_space<smem>>
    %30 = vector.broadcast %29 : f32 to vector<8x36xf32>
    %31 = arith.addf %28, %30 : vector<8x36xf32>
    %cst_12 = arith.constant 0.000000e+00 : f32
    %32 = vector.broadcast %cst_12 : f32 to vector<8x36xf32>
    %33 = arith.maximumf %31, %32 : vector<8x36xf32>
    %c0_13 = arith.constant 0 : index
    %c72 = arith.constant 72 : index
    %34 = vector.load %arg9[%c0_13, %c72] : memref<8x288xf32, #tpu.memory_space<vmem>>, vector<8x36xf32>
    tpu.vector_store %arg9[%c0_13, %c72], %33 {strides = array<i32>} : memref<8x288xf32, #tpu.memory_space<vmem>>, vector<8x36xf32>,
    %35 = vector.extract_strided_slice %1 {offsets = [3, 0], sizes = [1, 36], strides = [1, 1]} : vector<8x36xf32> to vector<1x36xf32>
    %36 = vector.shape_cast %35 : vector<1x36xf32> to vector<1x1x36xf32>
    %37 = vector.broadcast %36 : vector<1x1x36xf32> to vector<8x36x36xf32>
    %38 = arith.mulf %0, %37 : vector<8x36x36xf32>
    %cst_14 = arith.constant dense<0.000000e+00> : vector<8x36xf32>
    %39 = vector.multi_reduction <add>, %38, %cst_14 [2] : vector<8x36x36xf32> to vector<8x36xf32>
    %c3 = arith.constant 3 : index
    %40 = memref.load %arg2[%c3] : memref<8xf32, #tpu.memory_space<smem>>
    %41 = vector.broadcast %40 : f32 to vector<8x36xf32>
    %42 = arith.addf %39, %41 : vector<8x36xf32>
    %cst_15 = arith.constant 0.000000e+00 : f32
    %43 = vector.broadcast %cst_15 : f32 to vector<8x36xf32>
    %44 = arith.maximumf %42, %43 : vector<8x36xf32>
    %c0_16 = arith.constant 0 : index
    %c108 = arith.constant 108 : index
    %45 = vector.load %arg9[%c0_16, %c108] : memref<8x288xf32, #tpu.memory_space<vmem>>, vector<8x36xf32>
    tpu.vector_store %arg9[%c0_16, %c108], %44 {strides = array<i32>} : memref<8x288xf32, #tpu.memory_space<vmem>>, vector<8x36xf32>,
    %46 = vector.extract_strided_slice %1 {offsets = [4, 0], sizes = [1, 36], strides = [1, 1]} : vector<8x36xf32> to vector<1x36xf32>
    %47 = vector.shape_cast %46 : vector<1x36xf32> to vector<1x1x36xf32>
    %48 = vector.broadcast %47 : vector<1x1x36xf32> to vector<8x36x36xf32>
    %49 = arith.mulf %0, %48 : vector<8x36x36xf32>
    %cst_17 = arith.constant dense<0.000000e+00> : vector<8x36xf32>
    %50 = vector.multi_reduction <add>, %49, %cst_17 [2] : vector<8x36x36xf32> to vector<8x36xf32>
    %c4 = arith.constant 4 : index
    %51 = memref.load %arg2[%c4] : memref<8xf32, #tpu.memory_space<smem>>
    %52 = vector.broadcast %51 : f32 to vector<8x36xf32>
    %53 = arith.addf %50, %52 : vector<8x36xf32>
    %cst_18 = arith.constant 0.000000e+00 : f32
    %54 = vector.broadcast %cst_18 : f32 to vector<8x36xf32>
    %55 = arith.maximumf %53, %54 : vector<8x36xf32>
    %c0_19 = arith.constant 0 : index
    %c144 = arith.constant 144 : index
    %56 = vector.load %arg9[%c0_19, %c144] : memref<8x288xf32, #tpu.memory_space<vmem>>, vector<8x36xf32>
    tpu.vector_store %arg9[%c0_19, %c144], %55 {strides = array<i32>} : memref<8x288xf32, #tpu.memory_space<vmem>>, vector<8x36xf32>,
    %57 = vector.extract_strided_slice %1 {offsets = [5, 0], sizes = [1, 36], strides = [1, 1]} : vector<8x36xf32> to vector<1x36xf32>
    %58 = vector.shape_cast %57 : vector<1x36xf32> to vector<1x1x36xf32>
    %59 = vector.broadcast %58 : vector<1x1x36xf32> to vector<8x36x36xf32>
    %60 = arith.mulf %0, %59 : vector<8x36x36xf32>
    %cst_20 = arith.constant dense<0.000000e+00> : vector<8x36xf32>
    %61 = vector.multi_reduction <add>, %60, %cst_20 [2] : vector<8x36x36xf32> to vector<8x36xf32>
    %c5 = arith.constant 5 : index
    %62 = memref.load %arg2[%c5] : memref<8xf32, #tpu.memory_space<smem>>
    %63 = vector.broadcast %62 : f32 to vector<8x36xf32>
    %64 = arith.addf %61, %63 : vector<8x36xf32>
    %cst_21 = arith.constant 0.000000e+00 : f32
    %65 = vector.broadcast %cst_21 : f32 to vector<8x36xf32>
    %66 = arith.maximumf %64, %65 : vector<8x36xf32>
    %c0_22 = arith.constant 0 : index
    %c180 = arith.constant 180 : index
    %67 = vector.load %arg9[%c0_22, %c180] : memref<8x288xf32, #tpu.memory_space<vmem>>, vector<8x36xf32>
    tpu.vector_store %arg9[%c0_22, %c180], %66 {strides = array<i32>} : memref<8x288xf32, #tpu.memory_space<vmem>>, vector<8x36xf32>,
    %68 = vector.extract_strided_slice %1 {offsets = [6, 0], sizes = [1, 36], strides = [1, 1]} : vector<8x36xf32> to vector<1x36xf32>
    %69 = vector.shape_cast %68 : vector<1x36xf32> to vector<1x1x36xf32>
    %70 = vector.broadcast %69 : vector<1x1x36xf32> to vector<8x36x36xf32>
    %71 = arith.mulf %0, %70 : vector<8x36x36xf32>
    %cst_23 = arith.constant dense<0.000000e+00> : vector<8x36xf32>
    %72 = vector.multi_reduction <add>, %71, %cst_23 [2] : vector<8x36x36xf32> to vector<8x36xf32>
    %c6 = arith.constant 6 : index
    %73 = memref.load %arg2[%c6] : memref<8xf32, #tpu.memory_space<smem>>
    %74 = vector.broadcast %73 : f32 to vector<8x36xf32>
    %75 = arith.addf %72, %74 : vector<8x36xf32>
    %cst_24 = arith.constant 0.000000e+00 : f32
    %76 = vector.broadcast %cst_24 : f32 to vector<8x36xf32>
    %77 = arith.maximumf %75, %76 : vector<8x36xf32>
    %c0_25 = arith.constant 0 : index
    %c216 = arith.constant 216 : index
    %78 = vector.load %arg9[%c0_25, %c216] : memref<8x288xf32, #tpu.memory_space<vmem>>, vector<8x36xf32>
    tpu.vector_store %arg9[%c0_25, %c216], %77 {strides = array<i32>} : memref<8x288xf32, #tpu.memory_space<vmem>>, vector<8x36xf32>,
    %79 = vector.extract_strided_slice %1 {offsets = [7, 0], sizes = [1, 36], strides = [1, 1]} : vector<8x36xf32> to vector<1x36xf32>
    %80 = vector.shape_cast %79 : vector<1x36xf32> to vector<1x1x36xf32>
    %81 = vector.broadcast %80 : vector<1x1x36xf32> to vector<8x36x36xf32>
    %82 = arith.mulf %0, %81 : vector<8x36x36xf32>
    %cst_26 = arith.constant dense<0.000000e+00> : vector<8x36xf32>
    %83 = vector.multi_reduction <add>, %82, %cst_26 [2] : vector<8x36x36xf32> to vector<8x36xf32>
    %c7 = arith.constant 7 : index
    %84 = memref.load %arg2[%c7] : memref<8xf32, #tpu.memory_space<smem>>
    %85 = vector.broadcast %84 : f32 to vector<8x36xf32>
    %86 = arith.addf %83, %85 : vector<8x36xf32>
    %cst_27 = arith.constant 0.000000e+00 : f32
    %87 = vector.broadcast %cst_27 : f32 to vector<8x36xf32>
    %88 = arith.maximumf %86, %87 : vector<8x36xf32>
    %c0_28 = arith.constant 0 : index
    %c252 = arith.constant 252 : index
    %89 = vector.load %arg9[%c0_28, %c252] : memref<8x288xf32, #tpu.memory_space<vmem>>, vector<8x36xf32>
    tpu.vector_store %arg9[%c0_28, %c252], %88 {strides = array<i32>} : memref<8x288xf32, #tpu.memory_space<vmem>>, vector<8x36xf32>,
    %c0_29 = arith.constant 0 : index
    %c0_30 = arith.constant 0 : index
    %90 = vector.load %arg9[%c0_29, %c0_30] : memref<8x288xf32, #tpu.memory_space<vmem>>, vector<8x288xf32>
    %c0_31 = arith.constant 0 : index
    %c0_32 = arith.constant 0 : index
    %91 = vector.load %arg3[%c0_31, %c0_32] : memref<288x32xf32, #tpu.memory_space<vmem>>, vector<288x32xf32>
    %cst_33 = arith.constant dense<0.000000e+00> : vector<8x32xf32>
    %92 = tpu.matmul %90, %91, %cst_33 {dimension_numbers = #tpu.dot_dimension_numbers<[1], [0], [0], [1], [0, 0, 1, 1], [], []>} : vector<8x288xf32>, vector<288x32xf32>, vector<8x32xf32> -> vector<8x32xf32>
    %c0_34 = arith.constant 0 : index
    %c0_35 = arith.constant 0 : index
    %93 = vector.load %arg4[%c0_34, %c0_35] : memref<1x32xf32, #tpu.memory_space<vmem>>, vector<1x32xf32>
    %94 = vector.broadcast %93 : vector<1x32xf32> to vector<8x32xf32>
    %95 = arith.addf %92, %94 : vector<8x32xf32>
    %cst_36 = arith.constant 0.000000e+00 : f32
    %96 = vector.broadcast %cst_36 : f32 to vector<8x32xf32>
    %97 = arith.maximumf %95, %96 : vector<8x32xf32>
    %c0_37 = arith.constant 0 : index
    %c0_38 = arith.constant 0 : index
    %98 = vector.load %arg5[%c0_37, %c0_38] : memref<32x2xf32, #tpu.memory_space<vmem>>, vector<32x2xf32>
    %cst_39 = arith.constant dense<0.000000e+00> : vector<8x2xf32>
    %99 = tpu.matmul %97, %98, %cst_39 {dimension_numbers = #tpu.dot_dimension_numbers<[1], [0], [0], [1], [0, 0, 1, 1], [], []>} : vector<8x32xf32>, vector<32x2xf32>, vector<8x2xf32> -> vector<8x2xf32>
    %c0_40 = arith.constant 0 : index
    %c0_41 = arith.constant 0 : index
    %100 = vector.load %arg6[%c0_40, %c0_41] : memref<1x2xf32, #tpu.memory_space<vmem>>, vector<1x2xf32>
    %101 = vector.broadcast %100 : vector<1x2xf32> to vector<8x2xf32>
    %102 = arith.addf %99, %101 : vector<8x2xf32>
    %cst_42 = arith.constant dense<0xFF800000> : vector<8xf32>
    %103 = vector.multi_reduction <maximumf>, %102, %cst_42 [1] : vector<8x2xf32> to vector<8xf32>
    %104 = vector.shape_cast %103 : vector<8xf32> to vector<8x1xf32>
    %105 = vector.broadcast %104 : vector<8x1xf32> to vector<8x2xf32>
    %106 = arith.subf %102, %105 : vector<8x2xf32>
    %107 = math.exp %106 : vector<8x2xf32>
    %cst_43 = arith.constant dense<0.000000e+00> : vector<8xf32>
    %108 = vector.multi_reduction <add>, %107, %cst_43 [1] : vector<8x2xf32> to vector<8xf32>
    %109 = vector.shape_cast %108 : vector<8xf32> to vector<8x1xf32>
    %110 = math.log %109 : vector<8x1xf32>
    %111 = arith.addf %104, %110 : vector<8x1xf32>
    %112 = tpu.iota {dimensions = array<i32: 1>} : vector<8x2xi32>
    %c0_44 = arith.constant 0 : index
    %c0_45 = arith.constant 0 : index
    %113 = vector.load %arg7[%c0_44, %c0_45] : memref<8x1xi32, #tpu.memory_space<vmem>>, vector<8x1xi32>
    %114 = vector.broadcast %113 : vector<8x1xi32> to vector<8x2xi32>
    %115 = arith.cmpi eq, %112, %114 : vector<8x2xi32>
    %cst_46 = arith.constant 0.000000e+00 : f32
    %116 = vector.broadcast %cst_46 : f32 to vector<8x2xf32>
    %117 = arith.select %115, %102, %116 : vector<8x2xi1>, vector<8x2xf32>
    %cst_47 = arith.constant dense<0.000000e+00> : vector<8xf32>
    %118 = vector.multi_reduction <add>, %117, %cst_47 [1] : vector<8x2xf32> to vector<8xf32>
    %119 = vector.shape_cast %118 : vector<8xf32> to vector<8x1xf32>
    %120 = arith.subf %111, %119 : vector<8x1xf32>
    %cst_48 = arith.constant dense<0.000000e+00> : vector<1xf32>
    %121 = vector.multi_reduction <add>, %120, %cst_48 [0] : vector<8x1xf32> to vector<1xf32>
    %122 = vector.shape_cast %121 : vector<1xf32> to vector<1x1xf32>
    %cst_49 = arith.constant 1.250000e-01 : f32
    %123 = vector.broadcast %cst_49 : f32 to vector<1x1xf32>
    %124 = arith.mulf %122, %123 : vector<1x1xf32>
    %c0_50 = arith.constant 0 : index
    %c0_51 = arith.constant 0 : index
    %125 = vector.load %arg8[%c0_50, %c0_51] : memref<1x1xf32, #tpu.memory_space<vmem>>, vector<1x1xf32>
    tpu.vector_store %arg8[%c0_50, %c0_51], %124 {strides = array<i32>} : memref<1x1xf32, #tpu.memory_space<vmem>>, vector<1x1xf32>,
    return
  }
}

</mosaic_0001>

<bundles_post_ra>
// kernel: memory_meta_forward.1
= control target key start
LH: loop header
LB: loop body
LE: loop exit
PB: predicated region body
PF: predicated region fallthrough
CT: control target
= control target key end

     0   :  { %13 = vsyncpa [#allocation5], 0  ;;  %s7015_s0 = inlined_call_operand.vmem [shape: f32[8,36,36], index: 0, kind: input, shape index: {}]   ;;  %s7016_s1 = inlined_call_operand.vmem [shape: f32[8,36], index: 1, kind: input, shape index: {}]   ;;  %s7017_s2 = inlined_call_operand.vmem [shape: f32[8], index: 2, kind: input, shape index: {}]   ;;  %s7018_s3 = inlined_call_operand.vmem [shape: f32[288,32], index: 3, kind: input, shape index: {}]   ;;  %s7019_s4 = inlined_call_operand.vmem [shape: f32[1,32], index: 4, kind: input, shape index: {}]   ;;  %s7020_s5 = inlined_call_operand.vmem [shape: f32[32,2], index: 5, kind: input, shape index: {}]   ;;  %s7021_s6 = inlined_call_operand.vmem [shape: f32[1,2], index: 6, kind: input, shape index: {}]   ;;  %s7022_s7 = inlined_call_operand.vmem [shape: s32[8,1], index: 7, kind: input, shape index: {}]   ;;  %s7023_s8 = inlined_call_operand.hbm [shape: f32[1,1], index: 8, kind: output, shape index: {}]  }
   0x1   :  { %14 = vsyncpa [#allocation4], 0  ;;  %s24_s29 = sshll.u32 %s7017_s2, 4  ;;  %s3429_s30 = smov [#allocation3]   ;;  %s25_s29 = int_to_ptr.vmem [resolvable:$true] %s24_s29 }
   0x2   :  { %27 = dma.vmem_to_smem %s25_s29, 16, %s3429_s30, [#allocation5]  }
   0x3   :  { %3425 = dma.done.wait [#allocation5], 16  }
   0x4   :  { %3426 = vsyncadd [#allocation5], 4294967280 }
   0x5   :  { %42 = sfence }
   0x6   :  { %v3483_v0 = vld [vmem:[%s7015_s0 + $0x20] sm:$0xf]  ;;  %v3493_v2 = vld [vmem:[%s7015_s0 + $0x10] sm:$0xff]  ;;  %vm138_vm0 = vcmask 289792   ;;  %vm125_vm1 = vcmask 293888   ;;  %v3512_v8 = vld [vmem:[%s7015_s0 + $0x28] sm:$0xff] }
   0x7   :  { %v3488_v1 = vld [vmem:[%s7016_s1] sm:$0xff]  ;;  %v3517_v9 = vld [vmem:[%s7015_s0 + $0x18] sm:$0xff]  ;;  %v3525_v13 = vld [vmem:[%s7015_s0 + $0x8] sm:$0xff]  ;;  %s247_s21 = sld [smem:[#allocation3]]  ;;  %vm374_vm2 = vcmask 130112   ;;  %vm378_vm3 = vcmask 195712  }
   0x8   :  { %v3496_v3 = vperm.slane %v3488_v1, 0  ;;  %v3501_v4 = vld [vmem:[%s7015_s0] sm:$0xff]  ;;  %v3544_v21 = vld [vmem:[%s7015_s0 + $0x38] sm:$0xff]  ;;  %v3549_v22 = vld [vmem:[%s7015_s0 + $0x30] sm:$0xff]  ;;  %vm7116_vm4 = vcmask 261312   ;;  %vm386_vm5 = vcmask 326912  }
   0x9   :  { %v3539_v20 = vld [vmem:[%s7015_s0 + $0x40] sm:$0xff]  ;;  %7117 = vst [vmem:[#allocation9_spill] sm:$0xff] %v3544_v21  ;;  %v3563_v29 = vld [vmem:[%s7015_s0 + $0x58] sm:$0xff]  ;;  %v3568_v30 = vld [vmem:[%s7015_s0 + $0x50] sm:$0xff]  ;;  %vm451_vm6 = vcmask 1041409   ;;  %vm453_vm7 = vcmask 1042434  }
   0xa   :  { %v89_v5 = vmul.f32 %v3496_v3, %v3483_v0  ;;  %v87_v6 = vmul.f32 %v3496_v3, %v3493_v2  ;;  %v85_v7 = vmul.f32 %v3496_v3, %v3501_v4  ;;  %v90_v14 = vmul.f32 %v3496_v3, %v3512_v8  ;;  %7118 = vst [vmem:[#allocation10_spill] sm:$0xff] %v3563_v29  ;;  %v3573_v31 = vld [vmem:[%s7015_s0 + $0x48] sm:$0xf]  ;;  %v3587_v38 = vld [vmem:[%s7015_s0 + $0x70] sm:$0xf]  ;;  %v3597_v40 = vld [vmem:[%s7015_s0 + $0x60] sm:$0xff] }
   0xb   :  { %v88_v15 = vmul.f32 %v3496_v3, %v3517_v9  ;;  %v86_v16 = vmul.f32 %v3496_v3, %v3525_v13  ;;  %v93_v23 = vmul.f32 %v3496_v3, %v3539_v20  ;;  %v92_v24 = vmul.f32 %v3496_v3, %v3544_v21  ;;  %7119 = vst [vmem:[#allocation11_spill] sm:$0xff] %v3568_v30  ;;  %v3592_v39 = vld [vmem:[%s7015_s0 + $0x68] sm:$0xff]  ;;  %v3616_v48 = vld [vmem:[%s7015_s0 + $0x80] sm:$0xff]  ;;  %v3621_v49 = vld [vmem:[%s7015_s0 + $0x78] sm:$0xff]  ;;  %s3288_s22 = sld [smem:[#allocation3 + $0x1]] }
   0xc   :  { %v139_v10 = vsel %vm138_vm0, %v89_v5, 0.0  ;;  %v132_v11 = vsel %vm125_vm1, %v87_v6, 0.0  ;;  %v126_v12 = vsel %vm125_vm1, %v85_v7, 0.0  ;;  %v142_v17 = vsel %vm125_vm1, %v90_v14, 0.0  ;;  %7120 = vst [vmem:[#allocation12_spill] sm:$0xff] %v3587_v38  ;;  %v3611_v47 = vld [vmem:[%s7015_s0 + $0x88] sm:$0xff] }
   0xd   :  { %140 = vadd.xlane.f32.xlu2 %v139_v10  ;;  %133 = vadd.xlane.f32.xlu1 %v132_v11  ;;  %v135_v18 = vsel %vm125_vm1, %v88_v15, 0.0  ;;  %v129_v19 = vsel %vm125_vm1, %v86_v16, 0.0  ;;  %v91_v25 = vmul.f32 %v3496_v3, %v3549_v22  ;;  %v151_v26 = vsel %vm125_vm1, %v93_v23, 0.0  ;;  %7121 = vst [vmem:[#allocation13_spill] sm:$0xff] %v3592_v39  ;;  %v3635_v56 = vld [vmem:[%s7015_s0 + $0xa0] sm:$0xff]  ;;  %v3645_v58 = vld [vmem:[%s7015_s0 + $0x90] sm:$0xff] }
   0xe   :  { %127 = vadd.xlane.f32.xlu0 %v126_v12  ;;  %v148_v27 = vsel %vm125_vm1, %v92_v24, 0.0  ;;  %v96_v32 = vmul.f32 %v3496_v3, %v3563_v29  ;;  %v95_v33 = vmul.f32 %v3496_v3, %v3568_v30  ;;  %v94_v34 = vmul.f32 %v3496_v3, %v3573_v31  ;;  %7122 = vst [vmem:[#allocation14_spill] sm:$0xff] %v3597_v40  ;;  %v3640_v57 = vld [vmem:[%s7015_s0 + $0x98] sm:$0xf]  ;;  %v3664_v7 = vld [vmem:[%s7015_s0 + $0xb0] sm:$0xff]  ;;  %v3669_v10 = vld [vmem:[%s7015_s0 + $0xa8] sm:$0xff] }
   0xf   :  { %v145_v28 = vsel %vm125_vm1, %v91_v25, 0.0  ;;  %v99_v41 = vmul.f32 %v3496_v3, %v3587_v38  ;;  %v98_v42 = vmul.f32 %v3496_v3, %v3592_v39  ;;  %v97_v43 = vmul.f32 %v3496_v3, %v3597_v40  ;;  %7123 = vst [vmem:[#allocation15_spill] sm:$0xff] %v3611_v47  ;;  %v3659_v6 = vld [vmem:[%s7015_s0 + $0xb8] sm:$0xff]  ;;  %v3693_v23 = vld [vmem:[%s7015_s0 + $0xc0] sm:$0xf]  ;;  %s3289_s26 = sld [smem:[#allocation3 + $0x2]] }
  0x10   :  { %v160_v35 = vsel %vm125_vm1, %v96_v32, 0.0  ;;  %v157_v36 = vsel %vm125_vm1, %v95_v33, 0.0  ;;  %v154_v37 = vsel %vm138_vm0, %v94_v34, 0.0  ;;  %7124 = vst [vmem:[#allocation16_spill] sm:$0xff] %v3616_v48  ;;  %v102_v50 = vmul.f32 %v3496_v3, %v3611_v47  ;;  %v3707_v33 = vld [vmem:[%s7015_s0 + $0xe8] sm:$0xf] }
  0x11   :  { %v169_v44 = vsel %vm138_vm0, %v99_v41, 0.0  ;;  %v166_v45 = vsel %vm125_vm1, %v98_v42, 0.0  ;;  %v163_v46 = vsel %vm125_vm1, %v97_v43, 0.0  ;;  %7125 = vst [vmem:[#allocation17_spill] sm:$0xff] %v3621_v49  ;;  %v101_v51 = vmul.f32 %v3496_v3, %v3616_v48  ;;  %v3712_v34 = vld [vmem:[%s7015_s0 + $0xe0] sm:$0xff]  ;;  %s3290_s2 = sld [smem:[#allocation3 + $0x3]] }
  0x12   :  { %v100_v52 = vmul.f32 %v3496_v3, %v3621_v49  ;;  %v178_v53 = vsel %vm125_vm1, %v102_v50, 0.0  ;;  %7126 = vst [vmem:[#allocation18_spill] sm:$0xff] %v3635_v56  ;;  %v105_v59 = vmul.f32 %v3496_v3, %v3635_v56  ;;  %v104_v60 = vmul.f32 %v3496_v3, %v3640_v57  ;;  %v3741_v50 = vld [vmem:[%s7015_s0 + $0xf0] sm:$0xff]  ;;  %s3291_s15 = sld [smem:[#allocation3 + $0x4]] }
  0x13   :  { %v175_v54 = vsel %vm125_vm1, %v101_v51, 0.0  ;;  %7127 = vst [vmem:[#allocation19_spill] sm:$0xff] %v3640_v57  ;;  %v103_v61 = vmul.f32 %v3496_v3, %v3645_v58  ;;  %v108_v11 = vmul.f32 %v3496_v3, %v3659_v6  ;;  %v107_v12 = vmul.f32 %v3496_v3, %v3664_v7  ;;  %s3294_s16 = sld [smem:[#allocation3 + $0x7]] }
  0x14   :  { %v172_v55 = vsel %vm125_vm1, %v100_v52, 0.0  ;;  %7128 = vst [vmem:[#allocation20_spill] sm:$0xff] %v3645_v58  ;;  %v187_v62 = vsel %vm125_vm1, %v105_v59, 0.0  ;;  %v184_v63 = vsel %vm138_vm0, %v104_v60, 0.0  ;;  %v106_v14 = vmul.f32 %v3496_v3, %v3669_v10  ;;  %v3755_v60 = vld [vmem:[%s7015_s0 + $0x118] sm:$0xff]  ;;  %s3293_s13 = sld [smem:[#allocation3 + $0x6]] }
  0x15   :  { %143 = vadd.xlane.f32.xlu2 %v142_v17  ;;  %136 = vadd.xlane.f32.xlu1 %v135_v18  ;;  %v181_v5 = vsel %vm125_vm1, %v103_v61, 0.0  ;;  %7129 = vst [vmem:[#allocation21_spill] sm:$0xff] %v3659_v6  ;;  %v196_v15 = vsel %vm125_vm1, %v108_v11, 0.0  ;;  %v193_v16 = vsel %vm125_vm1, %v107_v12, 0.0  ;;  %v3683_v18 = vld [vmem:[%s7015_s0 + $0xd0] sm:$0xff]  ;;  %vm455_vm8 = vcmask 1043459  }
  0x16   :  { %130 = vadd.xlane.f32.xlu0 %v129_v19  ;;  %7130 = vst [vmem:[#allocation22_spill] sm:$0xff] %v3664_v7  ;;  %v190_v17 = vsel %vm125_vm1, %v106_v14, 0.0  ;;  %v3688_v19 = vld [vmem:[%s7015_s0 + $0xc8] sm:$0xff]  ;;  %v111_v24 = vmul.f32 %v3496_v3, %v3683_v18  ;;  %v3760_v61 = vld [vmem:[%s7015_s0 + $0x110] sm:$0xf]  ;;  %vm7086_vm9 = vcmask 1044484  }
  0x17   :  { %7131 = vst [vmem:[#allocation23_spill] sm:$0xff] %v3669_v10  ;;  %v110_v25 = vmul.f32 %v3496_v3, %v3688_v19  ;;  %vm7093_vm10 = vcmask 1045509   ;;  %vm7103_vm11 = vcmask 1046534   ;;  %vm7078_vm12 = vcmask 1047559  }
  0x18   :  { %7132 = vst [vmem:[#allocation24_spill] sm:$0xff] %v3683_v18  ;;  %vm754_vm13 = vcmask 425312   ;;  %vm758_vm14 = vcmask 490912   ;;  %vm7074_vm15 = vcmask 556512  }
  0x19   :  { %7133 = vst [vmem:[#allocation25_spill] sm:$0xff] %v3688_v19 }
  0x1a   :  { %7134 = vst [vmem:[#allocation26_spill] sm:$0xff] %v3693_v23 }
  0x1b   :  { %7136 = vst [vmem:[#allocation28_spill] sm:$0xff] %v3741_v50 }
  0x1d   :  { %152 = vadd.xlane.f32.xlu2 %v151_v26  ;;  %149 = vadd.xlane.f32.xlu1 %v148_v27  ;;  %v109_v26 = vmul.f32 %v3496_v3, %v3693_v23  ;;  %v205_v27 = vsel %vm125_vm1, %v111_v24, 0.0  ;;  %v3789_v24 = vld [vmem:[%s7015_s0 + $0x120] sm:$0xff] }
  0x1e   :  { %146 = vadd.xlane.f32.xlu0 %v145_v28  ;;  %v202_v28 = vsel %vm125_vm1, %v110_v25, 0.0 }
  0x1f   :  { %v199_v32 = vsel %vm138_vm0, %v109_v26, 0.0 }
  0x25   :  { %161 = vadd.xlane.f32.xlu2 %v160_v35  ;;  %158 = vadd.xlane.f32.xlu1 %v157_v36  ;;  %v3717_v35 = vld [vmem:[%s7015_s0 + $0xd8] sm:$0xff]  ;;  %v114_v36 = vmul.f32 %v3496_v3, %v3707_v33 }
  0x26   :  { %155 = vadd.xlane.f32.xlu0 %v154_v37  ;;  %7135 = vst [vmem:[#allocation27_spill] sm:$0xff] %v3717_v35  ;;  %v113_v37 = vmul.f32 %v3496_v3, %v3712_v34  ;;  %v112_v41 = vmul.f32 %v3496_v3, %v3717_v35 }
  0x27   :  { %v214_v42 = vsel %vm138_vm0, %v114_v36, 0.0  ;;  %v3800_v36 = vperm.slane %v3488_v1, 1 }
  0x28   :  { %v211_v43 = vsel %vm125_vm1, %v113_v37, 0.0 }
  0x2d   :  { %170 = vadd.xlane.f32.xlu2 %v169_v44  ;;  %167 = vadd.xlane.f32.xlu1 %v166_v45  ;;  %v208_v44 = vsel %vm125_vm1, %v112_v41, 0.0  ;;  %v3731_v45 = vld [vmem:[%s7015_s0 + $0x100] sm:$0xff]  ;;  %v3806_v41 = vld [vmem:[%s7015_s0 + $0x138] sm:$0xf] }
  0x2e   :  { %164 = vadd.xlane.f32.xlu0 %v163_v46  ;;  %v3736_v46 = vld [vmem:[%s7015_s0 + $0xf8] sm:$0xff]  ;;  %v117_v51 = vmul.f32 %v3496_v3, %v3731_v45 }
  0x2f   :  { %v116_v52 = vmul.f32 %v3496_v3, %v3736_v46 }
  0x35   :  { %179 = vadd.xlane.f32.xlu2 %v178_v53  ;;  %176 = vadd.xlane.f32.xlu1 %v175_v54  ;;  %v115_v53 = vmul.f32 %v3496_v3, %v3741_v50  ;;  %v223_v54 = vsel %vm125_vm1, %v117_v51, 0.0 }
  0x36   :  { %173 = vadd.xlane.f32.xlu0 %v172_v55  ;;  %v220_v55 = vsel %vm125_vm1, %v116_v52, 0.0 }
  0x37   :  { %v217_v59 = vsel %vm125_vm1, %v115_v53, 0.0 }
  0x3d   :  { %188 = vadd.xlane.f32.xlu2 %v187_v62  ;;  %185 = vadd.xlane.f32.xlu1 %v184_v63  ;;  %v3765_v62 = vld [vmem:[%s7015_s0 + $0x108] sm:$0xff]  ;;  %v120_v63 = vmul.f32 %v3496_v3, %v3755_v60 }
  0x3e   :  { %182 = vadd.xlane.f32.xlu0 %v181_v5  ;;  %v119_v5 = vmul.f32 %v3496_v3, %v3760_v61  ;;  %v118_v11 = vmul.f32 %v3496_v3, %v3765_v62 }
  0x3f   :  { %v232_v12 = vsel %vm125_vm1, %v120_v63, 0.0 }
  0x40   :  { %v229_v14 = vsel %vm138_vm0, %v119_v5, 0.0 }
  0x45   :  { %197 = vadd.xlane.f32.xlu2 %v196_v15  ;;  %194 = vadd.xlane.f32.xlu1 %v193_v16  ;;  %v226_v15 = vsel %vm125_vm1, %v118_v11, 0.0  ;;  %v3779_v16 = vld [vmem:[%s7015_s0 + $0x130] sm:$0xff]  ;;  %v475_v11 = vmul.f32 %v3800_v36, %v3544_v21 }
  0x46   :  { %191 = vadd.xlane.f32.xlu0 %v190_v17  ;;  %v3784_v17 = vld [vmem:[%s7015_s0 + $0x128] sm:$0xff]  ;;  %v123_v25 = vmul.f32 %v3496_v3, %v3779_v16 }
  0x47   :  { %v122_v26 = vmul.f32 %v3496_v3, %v3784_v17 }
  0x4d   :  { %206 = vadd.xlane.f32.xlu2 %v205_v27  ;;  %203 = vadd.xlane.f32.xlu1 %v202_v28  ;;  %v121_v27 = vmul.f32 %v3496_v3, %v3789_v24  ;;  %v241_v28 = vsel %vm125_vm1, %v123_v25, 0.0 }
  0x4e   :  { %200 = vadd.xlane.f32.xlu0 %v199_v32  ;;  %v238_v32 = vsel %vm125_vm1, %v122_v26, 0.0 }
  0x4f   :  { %v235_v37 = vsel %vm125_vm1, %v121_v27, 0.0  ;;  %v529_v27 = vsel %vm125_vm1, %v475_v11, 0.0 }
  0x55   :  { %215 = vadd.xlane.f32.xlu2 %v214_v42  ;;  %212 = vadd.xlane.f32.xlu1 %v211_v43  ;;  %v469_v42 = vmul.f32 %v3800_v36, %v3525_v13  ;;  %v468_v43 = vmul.f32 %v3800_v36, %v3501_v4 }
  0x56   :  { %209 = vadd.xlane.f32.xlu0 %v208_v44  ;;  %v124_v44 = vmul.f32 %v3496_v3, %v3806_v41 }
  0x57   :  { %v511_v51 = vsel %vm125_vm1, %v469_v42, 0.0  ;;  %v508_v52 = vsel %vm125_vm1, %v468_v43, 0.0  ;;  %v477_v42 = vmul.f32 %v3800_v36, %v3573_v31  ;;  %v476_v43 = vmul.f32 %v3800_v36, %v3539_v20 }
  0x58   :  { %v244_v53 = vsel %vm138_vm0, %v124_v44, 0.0 }
  0x5d   :  { %224 = vadd.xlane.f32.xlu2 %v223_v54  ;;  %221 = vadd.xlane.f32.xlu1 %v220_v55  ;;  %v472_v54 = vmul.f32 %v3800_v36, %v3483_v0  ;;  %v471_v55 = vmul.f32 %v3800_v36, %v3517_v9 }
  0x5e   :  { %218 = vadd.xlane.f32.xlu0 %v217_v59  ;;  %v470_v59 = vmul.f32 %v3800_v36, %v3493_v2 }
  0x5f   :  { %v520_v3 = vsel %vm138_vm0, %v472_v54, 0.0  ;;  %v517_v63 = vsel %vm125_vm1, %v471_v55, 0.0  ;;  %v535_v54 = vsel %vm138_vm0, %v477_v42, 0.0  ;;  %v532_v55 = vsel %vm125_vm1, %v476_v43, 0.0 }
  0x60   :  { %v514_v5 = vsel %vm125_vm1, %v470_v59, 0.0  ;;  %v481_v59 = vmul.f32 %v3800_v36, %v3592_v39  ;;  %v482_v42 = vmul.f32 %v3800_v36, %v3587_v38 }
  0x65   :  { %233 = vadd.xlane.f32.xlu2 %v232_v12  ;;  %230 = vadd.xlane.f32.xlu1 %v229_v14  ;;  %v474_v12 = vmul.f32 %v3800_v36, %v3549_v22  ;;  %v473_v14 = vmul.f32 %v3800_v36, %v3512_v8 }
  0x66   :  { %227 = vadd.xlane.f32.xlu0 %v226_v15 }
  0x6d   :  { %242 = vadd.xlane.f32.xlu2 %v241_v28  ;;  %239 = vadd.xlane.f32.xlu1 %v238_v32  ;;  %v526_v28 = vsel %vm125_vm1, %v474_v12, 0.0  ;;  %v523_v32 = vsel %vm125_vm1, %v473_v14, 0.0  ;;  %v547_v14 = vsel %vm125_vm1, %v481_v59, 0.0 }
  0x6e   :  { %236 = vadd.xlane.f32.xlu0 %v235_v37  ;;  %v478_v37 = vmul.f32 %v3800_v36, %v3568_v30 }
  0x75   :  { %512 = vadd.xlane.f32.xlu2 %v511_v51  ;;  %509 = vadd.xlane.f32.xlu1 %v508_v52 }
  0x76   :  { %245 = vadd.xlane.f32.xlu0 %v244_v53  ;;  %v538_v53 = vsel %vm125_vm1, %v478_v37, 0.0  ;;  %v483_v37 = vmul.f32 %v3800_v36, %v3621_v49 }
  0x78   :  { %v553_v59 = vsel %vm125_vm1, %v483_v37, 0.0 }
  0x7d   :  { %521 = vadd.xlane.f32.xlu2 %v520_v3  ;;  %518 = vadd.xlane.f32.xlu1 %v517_v63  ;;  %v480_v3 = vmul.f32 %v3800_v36, %v3597_v40  ;;  %v479_v63 = vmul.f32 %v3800_v36, %v3563_v29 }
  0x7e   :  { %515 = vadd.xlane.f32.xlu0 %v514_v5 }
  0x80   :  { %v3832_v15 = vpop.xlane.xlu2 %140  ;;  %v3834_v25 = vpop.xlane.xlu1 %133 }
  0x81   :  { %v3836_v26 = vpop.xlane.xlu0 %127 }
  0x85   :  { %530 = vadd.xlane.f32.xlu2 %v529_v27  ;;  %527 = vadd.xlane.f32.xlu1 %v526_v28  ;;  %v544_v27 = vsel %vm125_vm1, %v480_v3, 0.0  ;;  %v541_v28 = vsel %vm125_vm1, %v479_v63, 0.0  ;;  %v550_v3 = vsel %vm138_vm0, %v482_v42, 0.0  ;;  %v487_v63 = vmul.f32 %v3800_v36, %v3640_v57 }
  0x86   :  { %524 = vadd.xlane.f32.xlu0 %v523_v32  ;;  %v484_v32 = vmul.f32 %v3800_v36, %v3616_v48  ;;  %v488_v57 = vmul.f32 %v3800_v36, %v3635_v56 }
  0x87   :  { %v565_v37 = vsel %vm138_vm0, %v487_v63, 0.0 }
  0x88   :  { %v3847_v44 = vpop.xlane.xlu2 %143  ;;  %v3849_v51 = vpop.xlane.xlu1 %136 }
  0x89   :  { %v3851_v52 = vpop.xlane.xlu0 %130 }
  0x8d   :  { %539 = vadd.xlane.f32.xlu2 %v538_v53  ;;  %536 = vadd.xlane.f32.xlu1 %v535_v54 }
  0x8e   :  { %533 = vadd.xlane.f32.xlu0 %v532_v55  ;;  %v556_v55 = vsel %vm125_vm1, %v484_v32, 0.0 }
  0x90   :  { %v3862_v5 = vpop.xlane.xlu2 %152  ;;  %v3864_v11 = vpop.xlane.xlu1 %149 }
  0x91   :  { %v3866_v12 = vpop.xlane.xlu0 %146 }
  0x95   :  { %548 = vadd.xlane.f32.xlu2 %v547_v14  ;;  %545 = vadd.xlane.f32.xlu1 %v544_v27  ;;  %v486_v14 = vmul.f32 %v3800_v36, %v3645_v58  ;;  %v485_v27 = vmul.f32 %v3800_v36, %v3611_v47 }
  0x96   :  { %542 = vadd.xlane.f32.xlu0 %v541_v28 }
  0x97   :  { %v562_v42 = vsel %vm125_vm1, %v486_v14, 0.0 }
  0x98   :  { %v3877_v43 = vpop.xlane.xlu2 %161  ;;  %v3879_v53 = vpop.xlane.xlu1 %158 }
  0x99   :  { %v3881_v54 = vpop.xlane.xlu0 %155 }
  0x9d   :  { %557 = vadd.xlane.f32.xlu2 %v556_v55  ;;  %554 = vadd.xlane.f32.xlu1 %v553_v59  ;;  %v559_v55 = vsel %vm125_vm1, %v485_v27, 0.0  ;;  %v490_v59 = vmul.f32 %v3800_v36, %v3664_v7  ;;  %v491_v7 = vmul.f32 %v3800_v36, %v3659_v6  ;;  %v496_v6 = vmul.f32 %v3800_v36, %v3712_v34 }
  0x9e   :  { %551 = vadd.xlane.f32.xlu0 %v550_v3  ;;  %v489_v3 = vmul.f32 %v3800_v36, %v3669_v10  ;;  %v495_v10 = vmul.f32 %v3800_v36, %v3717_v35 }
  0x9f   :  { %v574_v14 = vsel %vm125_vm1, %v490_v59, 0.0 }
  0xa0   :  { %v3892_v28 = vpop.xlane.xlu2 %170  ;;  %v3894_v48 = vpop.xlane.xlu1 %167  ;;  %v571_v27 = vsel %vm125_vm1, %v489_v3, 0.0 }
  0xa1   :  { %v3896_v32 = vpop.xlane.xlu0 %164 }
  0xa5   :  { %566 = vadd.xlane.f32.xlu2 %v565_v37  ;;  %563 = vadd.xlane.f32.xlu1 %v562_v42  ;;  %v568_v37 = vsel %vm125_vm1, %v488_v57, 0.0  ;;  %v493_v42 = vmul.f32 %v3800_v36, %v3688_v19  ;;  %v3931_v19 = vstv %s247_s21 }
  0xa6   :  { %560 = vadd.xlane.f32.xlu0 %v559_v55  ;;  %v492_v55 = vmul.f32 %v3800_v36, %v3693_v23  ;;  %v250_v23 = vadd.f32 %v3931_v19, %v3851_v52  ;;  %v254_v52 = vadd.f32 %v3931_v19, %v3847_v44  ;;  %v589_v44 = vsel %vm125_vm1, %v495_v10, 0.0 }
  0xa7   :  { %v583_v57 = vsel %vm125_vm1, %v493_v42, 0.0  ;;  %v256_v38 = vadd.f32 %v3931_v19, %v3864_v11  ;;  %v499_v11 = vmul.f32 %v3800_v36, %v3736_v46 }
  0xa8   :  { %v3907_v47 = vpop.xlane.xlu2 %179  ;;  %v3909_v58 = vpop.xlane.xlu1 %176  ;;  %v294_v30 = vmax.f32 %v254_v52, 0.0 }
  0xa9   :  { %v3911_v63 = vpop.xlane.xlu0 %173 }
  0xad   :  { %575 = vadd.xlane.f32.xlu2 %v574_v14  ;;  %572 = vadd.xlane.f32.xlu1 %v571_v27  ;;  %v580_v14 = vsel %vm138_vm0, %v492_v55, 0.0  ;;  %v369_v27 = vlaneseq  ;;  %v249_v55 = vadd.f32 %v3931_v19, %v3836_v26  ;;  %v251_v26 = vadd.f32 %v3931_v19, %v3834_v25 }
  0xae   :  { %569 = vadd.xlane.f32.xlu0 %v568_v37  ;;  %v577_v37 = vsel %vm125_vm1, %v491_v7, 0.0  ;;  %v494_v7 = vmul.f32 %v3800_v36, %v3683_v18  ;;  %v592_v18 = vsel %vm125_vm1, %v496_v6, 0.0 }
  0xaf   :  { %v3939_v42 = vand.u32 127, %v369_v27  ;;  %v290_v27 = vmax.f32 %v250_v23, 0.0  ;;  %v289_v39 = vmax.f32 %v249_v55, 0.0  ;;  %v291_v10 = vmax.f32 %v251_v26, 0.0 }
  0xb0   :  { %v3922_v56 = vpop.xlane.xlu2 %188  ;;  %v3924_v59 = vpop.xlane.xlu1 %185  ;;  %v586_v49 = vsel %vm125_vm1, %v494_v7, 0.0  ;;  %v498_v55 = vmul.f32 %v3800_v36, %v3741_v50 }
  0xb1   :  { %v3926_v3 = vpop.xlane.xlu0 %182  ;;  %7137 = vst [vmem:[#allocation29_spill] sm:$0xff] %v3939_v42  ;;  %v3968_v29 = vadd.s32 4294967280, %v3939_v42  ;;  %v3971_v25 = vadd.s32 4294967272, %v3939_v42  ;;  %v371_v7 = vperm.slane %v289_v39, %v3939_v42  ;;  %v388_v26 = vperm.slane %v294_v30, %v3939_v42 }
  0xb2   :  { %v258_v39 = vadd.f32 %v3931_v19, %v3881_v54 }
  0xb3   :  { %7138 = vst [vmem:[#allocation30_spill] sm:$0xff] %v3968_v29 }
  0xb4   :  { %7139 = vst [vmem:[#allocation31_spill] sm:$0xff] %v3971_v25 }
  0xb5   :  { %584 = vadd.xlane.f32.xlu2 %v583_v57  ;;  %581 = vadd.xlane.f32.xlu1 %v580_v14  ;;  %v255_v57 = vadd.f32 %v3931_v19, %v3866_v12  ;;  %v252_v12 = vadd.f32 %v3931_v19, %v3849_v51  ;;  %v257_v51 = vadd.f32 %v3931_v19, %v3862_v5 }
  0xb6   :  { %578 = vadd.xlane.f32.xlu0 %v577_v37  ;;  %v3954_v37 = vadd.s32 4294967288, %v3939_v42 }
  0xb7   :  { %v295_v23 = vmax.f32 %v255_v57, 0.0  ;;  %v292_v52 = vmax.f32 %v252_v12, 0.0  ;;  %v296_v57 = vmax.f32 %v256_v38, 0.0  ;;  %v297_v30 = vmax.f32 %v257_v51, 0.0 }
  0xb8   :  { %v3949_v14 = vpop.xlane.xlu2 %197  ;;  %v3951_v34 = vpop.xlane.xlu1 %194  ;;  %v373_v6 = vperm.slane %v290_v27, %v3954_v37  ;;  %v497_v27 = vmul.f32 %v3800_v36, %v3707_v33  ;;  %v601_v12 = vsel %vm125_vm1, %v499_v11, 0.0  ;;  %v259_v51 = vadd.f32 %v3931_v19, %v3879_v53 }
  0xb9   :  { %v3956_v35 = vpop.xlane.xlu0 %191  ;;  %v381_v50 = vperm.slane %v292_v52, %v3971_v25  ;;  %v391_v40 = vperm.slane %v296_v57, %v3968_v29  ;;  %v298_v11 = vmax.f32 %v258_v39, 0.0  ;;  %v502_v52 = vmul.f32 %v3800_v36, %v3760_v61 }
  0xba   :  { %v375_v38 = vsel %vm374_vm2, %v373_v6, %v371_v7  ;;  %v595_v21 = vsel %vm138_vm0, %v497_v27, 0.0  ;;  %v501_v57 = vmul.f32 %v3800_v36, %v3765_v62  ;;  %v261_v53 = vadd.f32 %v3931_v19, %v3896_v32 }
  0xbb   :  { %v264_v61 = vadd.f32 %v3931_v19, %v3911_v63  ;;  %v263_v63 = vadd.f32 %v3931_v19, %v3892_v28  ;;  %v267_v28 = vadd.f32 %v3931_v19, %v3926_v3  ;;  %v503_v3 = vmul.f32 %v3800_v36, %v3755_v60 }
  0xbc   :  { %v4070_v60 = vperm.slane %v3488_v1, 2 }
  0xbd   :  { %593 = vadd.xlane.f32.xlu2 %v592_v18  ;;  %590 = vadd.xlane.f32.xlu1 %v589_v44  ;;  %v253_v18 = vadd.f32 %v3931_v19, %v3832_v15  ;;  %v3992_v44 = vadd.s32 4294967264, %v3939_v42  ;;  %v377_v15 = vperm.slane %v291_v10, %v3968_v29  ;;  %v260_v10 = vadd.f32 %v3931_v19, %v3877_v43 }
  0xbe   :  { %587 = vadd.xlane.f32.xlu0 %v586_v49  ;;  %v389_v49 = vperm.slane %v295_v23, %v3954_v37  ;;  %v598_v23 = vsel %vm125_vm1, %v498_v55, 0.0  ;;  %v393_v55 = vperm.slane %v297_v30, %v3971_v25  ;;  %v262_v30 = vadd.f32 %v3931_v19, %v3894_v48 }
  0xbf   :  { %7140 = vst [vmem:[#allocation32_spill] sm:$0xff] %v3992_v44  ;;  %v293_v6 = vmax.f32 %v253_v18, 0.0  ;;  %v379_v7 = vsel %vm378_vm3, %v377_v15, %v375_v38  ;;  %v500_v18 = vmul.f32 %v3800_v36, %v3731_v45  ;;  %v395_v38 = vperm.slane %v298_v11, %v3992_v44 }
  0xc0   :  { %v3987_v5 = vpop.xlane.xlu2 %206  ;;  %v3989_v46 = vpop.xlane.xlu1 %203  ;;  %v390_v54 = vsel %vm374_vm2, %v389_v49, %v388_v26  ;;  %v383_v27 = vsel %vm7116_vm4, %v381_v50, %v379_v7  ;;  %v300_v49 = vmax.f32 %v260_v10, 0.0  ;;  %v610_v15 = vsel %vm138_vm0, %v502_v52, 0.0 }
  0xc1   :  { %v3997_v33 = vpop.xlane.xlu0 %200  ;;  %v392_v43 = vsel %vm378_vm3, %v391_v40, %v390_v54  ;;  %v385_v26 = vperm.slane %v293_v6, %v3992_v44  ;;  %v299_v40 = vmax.f32 %v259_v51, 0.0  ;;  %v266_v7 = vadd.f32 %v3931_v19, %v3907_v47 }
  0xc2   :  { %v394_v39 = vsel %vm7116_vm4, %v393_v55, %v392_v43  ;;  %v398_v6 = vperm.slane %v300_v49, %v3954_v37  ;;  %v304_v10 = vmax.f32 %v264_v61, 0.0  ;;  %v269_v48 = vadd.f32 %v3931_v19, %v3922_v56 }
  0xc3   :  { %v387_v45 = vsel %vm386_vm5, %v385_v26, %v383_v27  ;;  %v397_v51 = vperm.slane %v299_v40, %v3939_v42  ;;  %v396_v11 = vsel %vm386_vm5, %v395_v38, %v394_v39  ;;  %v270_v55 = vadd.f32 %v3931_v19, %v3956_v35 }
  0xc4   :  { %v505_v47 = vmul.f32 %v3800_v36, %v3784_v17  ;;  %v504_v52 = vmul.f32 %v3800_v36, %v3789_v24  ;;  %v302_v27 = vmax.f32 %v262_v30, 0.0  ;;  %v268_v35 = vadd.f32 %v3931_v19, %v3924_v59 }
  0xc5   :  { %602 = vadd.xlane.f32.xlu2 %v601_v12  ;;  %599 = vadd.xlane.f32.xlu1 %v598_v23  ;;  %v301_v12 = vmax.f32 %v261_v53, 0.0  ;;  %v604_v23 = vsel %vm125_vm1, %v500_v18, 0.0  ;;  %v306_v53 = vmax.f32 %v266_v7, 0.0  ;;  %v406_v18 = vperm.slane %v304_v10, %v3939_v42 }
  0xc6   :  { %596 = vadd.xlane.f32.xlu0 %v595_v21  ;;  %v265_v21 = vadd.f32 %v3931_v19, %v3909_v58  ;;  %v607_v58 = vsel %vm125_vm1, %v501_v57, 0.0  ;;  %v303_v57 = vmax.f32 %v263_v63, 0.0  ;;  %v307_v49 = vmax.f32 %v267_v28, 0.0 }
  0xc7   :  { %v400_v43 = vperm.slane %v301_v12, %v3968_v29  ;;  %v272_v24 = vadd.f32 %v3931_v19, %v3949_v14  ;;  %v309_v40 = vmax.f32 %v269_v48, 0.0  ;;  %v310_v38 = vmax.f32 %v270_v55, 0.0 }
  0xc8   :  { %v4027_v62 = vpop.xlane.xlu2 %215  ;;  %v4029_v50 = vpop.xlane.xlu1 %212  ;;  %v305_v54 = vmax.f32 %v265_v21, 0.0  ;;  %v271_v21 = vadd.f32 %v3931_v19, %v3951_v34  ;;  %v619_v39 = vsel %vm125_vm1, %v505_v47, 0.0  ;;  %v399_v59 = vsel %vm374_vm2, %v398_v6, %v397_v51 }
  0xc9   :  { %v4032_v32 = vpop.xlane.xlu0 %209  ;;  %v402_v14 = vperm.slane %v302_v27, %v3971_v25  ;;  %v613_v63 = vsel %vm125_vm1, %v503_v3, 0.0  ;;  %v401_v34 = vsel %vm378_vm3, %v400_v43, %v399_v59  ;;  %v409_v1 = vperm.slane %v306_v53, %v3968_v29 }
  0xca   :  { %v407_v56 = vperm.slane %v305_v54, %v3954_v37  ;;  %v308_v12 = vmax.f32 %v268_v35, 0.0  ;;  %v312_v7 = vmax.f32 %v272_v24, 0.0  ;;  %v311_v54 = vmax.f32 %v271_v21, 0.0 }
  0xcb   :  { %v4087_v6 = vperm.slane %v303_v57, %v3992_v44  ;;  %v415_v10 = vperm.slane %v309_v40, %v3939_v42  ;;  %v416_v51 = vperm.slane %v310_v38, %v3954_v37  ;;  %v4094_v28 = vsel %vm7116_vm4, %v402_v14, %v401_v34 }
  0xcc   :  { %v408_v30 = vsel %vm374_vm2, %v407_v56, %v406_v18  ;;  %v275_v48 = vadd.f32 %v3931_v19, %v3987_v5  ;;  %v506_v55 = vmul.f32 %v3800_v36, %v3779_v16  ;;  %v4103_v47 = vperm.slane %v308_v12, %v3992_v44 }
  0xcd   :  { %611 = vadd.xlane.f32.xlu2 %v610_v15  ;;  %608 = vadd.xlane.f32.xlu1 %v607_v58  ;;  %v616_v15 = vsel %vm125_vm1, %v504_v52, 0.0  ;;  %v4076_v58 = vsel %vm451_vm6, %v396_v11, %v387_v45  ;;  %v842_v45 = vmul.f32 %v4070_v60, %v3501_v4  ;;  %v507_v11 = vmul.f32 %v3800_v36, %v3806_v41 }
  0xce   :  { %605 = vadd.xlane.f32.xlu0 %v604_v23  ;;  %v411_v23 = vperm.slane %v307_v49, %v3971_v25  ;;  %v274_v4 = vadd.f32 %v3931_v19, %v3989_v46  ;;  %v410_v52 = vsel %vm378_vm3, %v409_v1, %v408_v30  ;;  %v273_v41 = vadd.f32 %v3931_v19, %v3997_v33 }
  0xcf   :  { %v276_v57 = vadd.f32 %v3931_v19, %v4032_v32  ;;  %v4114_v46 = vperm.slane %v312_v7, %v3971_v25  ;;  %v418_v16 = vperm.slane %v311_v54, %v3968_v29  ;;  %v882_v3 = vsel %vm125_vm1, %v842_v45, 0.0 }
  0xd0   :  { %v225_v26 = vpop.xlane.xlu2 %224  ;;  %v222_v17 = vpop.xlane.xlu1 %221  ;;  %v4111_v5 = vsel %vm7116_vm4, %v411_v23, %v410_v52  ;;  %v417_v53 = vsel %vm374_vm2, %v416_v51, %v415_v10  ;;  %v625_v32 = vsel %vm138_vm0, %v507_v11, 0.0  ;;  %v315_v18 = vmax.f32 %v275_v48, 0.0 }
  0xd1   :  { %v219_v61 = vpop.xlane.xlu0 %218  ;;  %v280_v33 = vadd.f32 %v3931_v19, %v222_v17  ;;  %v314_v35 = vmax.f32 %v274_v4, 0.0  ;;  %v622_v49 = vsel %vm125_vm1, %v506_v55, 0.0  ;;  %v845_v24 = vmul.f32 %v4070_v60, %v3517_v9 }
  0xd2   :  { %v279_v56 = vadd.f32 %v3931_v19, %v219_v61  ;;  %v313_v21 = vmax.f32 %v273_v41, 0.0  ;;  %v277_v40 = vadd.f32 %v3931_v19, %v4029_v50  ;;  %v316_v38 = vmax.f32 %v276_v57, 0.0 }
  0xd3   :  { %v419_v17 = vsel %vm378_vm3, %v418_v16, %v417_v53  ;;  %v281_v61 = vadd.f32 %v3931_v19, %v225_v26  ;;  %v320_v59 = vmax.f32 %v280_v33, 0.0  ;;  %v843_v50 = vmul.f32 %v4070_v60, %v3525_v13 }
  0xd4   :  { %v319_v14 = vmax.f32 %v279_v56, 0.0  ;;  %v278_v34 = vadd.f32 %v3931_v19, %v4027_v62  ;;  %v891_v26 = vsel %vm125_vm1, %v845_v24, 0.0  ;;  %v422_v1 = vperm.slane %v313_v21, %v3992_v44 }
  0xd5   :  { %620 = vadd.xlane.f32.xlu2 %v619_v39  ;;  %617 = vadd.xlane.f32.xlu1 %v616_v15  ;;  %v844_v39 = vmul.f32 %v4070_v60, %v3493_v2  ;;  %v424_v2 = vperm.slane %v314_v35, %v3939_v42  ;;  %v317_v30 = vmax.f32 %v277_v40, 0.0  ;;  %v427_v12 = vperm.slane %v316_v38, %v3968_v29 }
  0xd6   :  { %614 = vadd.xlane.f32.xlu0 %v613_v63  ;;  %v425_v63 = vperm.slane %v315_v18, %v3954_v37  ;;  %v321_v13 = vmax.f32 %v281_v61, 0.0  ;;  %v434_v11 = vperm.slane %v320_v59, %v3954_v37  ;;  %v433_v48 = vperm.slane %v319_v14, %v3939_v42 }
  0xd7   :  { %v888_v54 = vsel %vm125_vm1, %v844_v39, 0.0  ;;  %v318_v41 = vmax.f32 %v278_v34, 0.0  ;;  %v429_v53 = vperm.slane %v317_v30, %v3971_v25  ;;  %v421_v24 = vsel %vm7116_vm4, %v4114_v46, %v419_v17 }
  0xd8   :  { %v234_v27 = vpop.xlane.xlu2 %233  ;;  %v231_v43 = vpop.xlane.xlu1 %230  ;;  %v426_v52 = vsel %vm374_vm2, %v425_v63, %v424_v2  ;;  %v436_v33 = vperm.slane %v321_v13, %v3968_v29  ;;  %v435_v35 = vsel %vm374_vm2, %v434_v11, %v433_v48  ;;  %v846_v40 = vmul.f32 %v4070_v60, %v3483_v0 }
  0xd9   :  { %v228_v36 = vpop.xlane.xlu0 %227  ;;  %v284_v15 = vadd.f32 %v3931_v19, %v234_v27  ;;  %v283_v10 = vadd.f32 %v3931_v19, %v231_v43  ;;  %v885_v27 = vsel %vm125_vm1, %v843_v50, 0.0  ;;  %v428_v18 = vsel %vm378_vm3, %v427_v12, %v426_v52 }
  0xda   :  { %v282_v9 = vadd.f32 %v3931_v19, %v228_v36  ;;  %v848_v36 = vmul.f32 %v4070_v60, %v3549_v22  ;;  %v414_v38 = vsel %vm386_vm5, %v4103_v47, %v4111_v5  ;;  %v423_v39 = vsel %vm386_vm5, %v422_v1, %v421_v24  ;;  %v7147_v24 = vld [vmem:[#allocation13_spill] sm:$0xff] }
  0xdb   :  { %v324_v45 = vmax.f32 %v284_v15, 0.0  ;;  %v437_v0 = vsel %vm378_vm3, %v436_v33, %v435_v35  ;;  %v894_v2 = vsel %vm138_vm0, %v846_v40, 0.0  ;;  %v7145_v35 = vld [vmem:[#allocation17_spill] sm:$0xff] }
  0xdc   :  { %v322_v4 = vmax.f32 %v282_v9, 0.0  ;;  %v900_v14 = vsel %vm125_vm1, %v848_v36, 0.0 }
  0xdd   :  { %883 = vadd.xlane.f32.xlu2 %v882_v3  ;;  %626 = vadd.xlane.f32.xlu1 %v625_v32  ;;  %v847_v3 = vmul.f32 %v4070_v60, %v3512_v8  ;;  %v442_v56 = vperm.slane %v324_v45, %v3939_v42  ;;  %v323_v32 = vmax.f32 %v283_v10, 0.0  ;;  %v405_v8 = vsel %vm386_vm5, %v4087_v6, %v4094_v28  ;;  %v7141_v45 = vld [vmem:[#allocation9_spill] sm:$0xff] }
  0xde   :  { %623 = vadd.xlane.f32.xlu0 %v622_v49  ;;  %v438_v49 = vperm.slane %v322_v4, %v3971_v25  ;;  %v430_v28 = vsel %vm7116_vm4, %v429_v53, %v428_v18  ;;  %v454_v50 = vsel %vm453_vm7, %v405_v8, %v4076_v58  ;;  %v849_v10 = vmul.f32 %v4070_v60, %v7141_v45 }
  0xdf   :  { %v440_v46 = vperm.slane %v323_v32, %v3992_v44  ;;  %v897_v9 = vsel %vm125_vm1, %v847_v3, 0.0  ;;  %v456_v34 = vsel %vm455_vm8, %v414_v38, %v454_v50 }
  0xe0   :  { %v243_v23 = vpop.xlane.xlu2 %242  ;;  %v240_v7 = vpop.xlane.xlu1 %239  ;;  %v439_v47 = vsel %vm7116_vm4, %v438_v49, %v437_v0  ;;  %v903_v52 = vsel %vm125_vm1, %v849_v10, 0.0  ;;  %v857_v49 = vmul.f32 %v4070_v60, %v7145_v35  ;;  %v7158_v35 = vld [vmem:[#allocation24_spill] sm:$0xff] }
  0xe1   :  { %v286_v51 = vadd.f32 %v3931_v19, %v240_v7  ;;  %v237_v62 = vpop.xlane.xlu0 %236  ;;  %v287_v57 = vadd.f32 %v3931_v19, %v243_v23  ;;  %v441_v12 = vsel %vm386_vm5, %v440_v46, %v439_v47  ;;  %v851_v23 = vmul.f32 %v4070_v60, %v3573_v31  ;;  %v7148_v46 = vld [vmem:[#allocation20_spill] sm:$0xff] }
  0xe2   :  { %v285_v55 = vadd.f32 %v3931_v19, %v237_v62  ;;  %v850_v7 = vmul.f32 %v4070_v60, %v3539_v20  ;;  %v860_v0 = vmul.f32 %v4070_v60, %v7148_v46  ;;  %v7150_v47 = vld [vmem:[#allocation16_spill] sm:$0xff] }
  0xe3   :  { %v326_v16 = vmax.f32 %v286_v51, 0.0  ;;  %v327_v21 = vmax.f32 %v287_v57, 0.0  ;;  %v909_v20 = vsel %vm138_vm0, %v851_v23, 0.0 }
  0xe4   :  { %v325_v43 = vmax.f32 %v285_v55, 0.0  ;;  %v906_v55 = vsel %vm125_vm1, %v850_v7, 0.0 }
  0xe5   :  { %892 = vadd.xlane.f32.xlu2 %v891_v26  ;;  %889 = vadd.xlane.f32.xlu1 %v888_v54  ;;  %v445_v61 = vperm.slane %v326_v16, %v3968_v29  ;;  %v447_v63 = vperm.slane %v327_v21, %v3971_v25  ;;  %v855_v21 = vmul.f32 %v4070_v60, %v7147_v24 }
  0xe6   :  { %v443_v22 = vperm.slane %v325_v43, %v3954_v37  ;;  %886 = vadd.xlane.f32.xlu0 %v885_v27  ;;  %v431_v37 = vperm.slane %v318_v41, %v3992_v44  ;;  %v7142_v41 = vld [vmem:[#allocation14_spill] sm:$0xff]  ;;  %v7144_v43 = vld [vmem:[#allocation11_spill] sm:$0xff] }
  0xe7   :  { %v854_v57 = vmul.f32 %v4070_v60, %v7142_v41  ;;  %v7143_v27 = vld [vmem:[#allocation10_spill] sm:$0xff]  ;;  %v852_v36 = vmul.f32 %v4070_v60, %v7144_v43 }
  0xe8   :  { %v4175_v15 = vpop.xlane.xlu2 %512  ;;  %v4177_v6 = vpop.xlane.xlu1 %509  ;;  %v444_v17 = vsel %vm374_vm2, %v443_v22, %v442_v56  ;;  %v432_v26 = vsel %vm386_vm5, %v431_v37, %v430_v28  ;;  %v853_v16 = vmul.f32 %v4070_v60, %v7143_v27  ;;  %v7146_v22 = vld [vmem:[#allocation12_spill] sm:$0xff]  ;;  %v927_v37 = vsel %vm125_vm1, %v857_v49, 0.0 }
  0xe9   :  { %v246_v59 = vpop.xlane.xlu0 %245  ;;  %v446_v1 = vsel %vm378_vm3, %v445_v61, %v444_v17  ;;  %v918_v56 = vsel %vm125_vm1, %v854_v57, 0.0  ;;  %v912_v18 = vsel %vm125_vm1, %v852_v36, 0.0  ;;  %v856_v8 = vmul.f32 %v4070_v60, %v7146_v22  ;;  %v7149_v17 = vld [vmem:[#allocation15_spill] sm:$0xff]  ;;  %v7159_v22 = vld [vmem:[#allocation25_spill] sm:$0xff] }
  0xea   :  { %v288_v5 = vadd.f32 %v3931_v19, %v246_v59  ;;  %v458_v19 = vsel %vm7086_vm9, %v423_v39, %v456_v34  ;;  %v448_v54 = vsel %vm7116_vm4, %v447_v63, %v446_v1  ;;  %v915_v32 = vsel %vm125_vm1, %v853_v16, 0.0 }
  0xeb   :  { %v460_v13 = vsel %vm7093_vm10, %v432_v26, %v458_v19  ;;  %v924_v61 = vsel %vm138_vm0, %v856_v8, 0.0  ;;  %v921_v28 = vsel %vm125_vm1, %v855_v21, 0.0  ;;  %v859_v59 = vmul.f32 %v4070_v60, %v7149_v17  ;;  %v7151_v26 = vld [vmem:[#allocation23_spill] sm:$0xff] }
  0xec   :  { %v328_v30 = vmax.f32 %v288_v5, 0.0  ;;  %v462_v51 = vsel %vm7103_vm11, %v441_v12, %v460_v13  ;;  %v858_v5 = vmul.f32 %v4070_v60, %v7150_v47  ;;  %v936_v63 = vsel %vm125_vm1, %v860_v0, 0.0  ;;  %v7153_v12 = vld [vmem:[#allocation19_spill] sm:$0xff] }
  0xed   :  { %901 = vadd.xlane.f32.xlu2 %v900_v14  ;;  %898 = vadd.xlane.f32.xlu1 %v897_v9  ;;  %v863_v1 = vmul.f32 %v4070_v60, %v7151_v26  ;;  %v868_v49 = vmul.f32 %v4070_v60, %v7158_v35  ;;  %v867_v8 = vmul.f32 %v4070_v60, %v7159_v22  ;;  %vm7071_vm2 = vcmask 622112  }
  0xee   :  { %v449_v58 = vperm.slane %v328_v30, %v3992_v44  ;;  %895 = vadd.xlane.f32.xlu0 %v894_v2  ;;  %v933_v2 = vsel %vm125_vm1, %v859_v59, 0.0  ;;  %v930_v34 = vsel %vm125_vm1, %v858_v5, 0.0  ;;  %v7152_v30 = vld [vmem:[#allocation18_spill] sm:$0xff]  ;;  %v4319_v5 = vadd.s32 4294967252, %v3939_v42 }
  0xef   :  { %v862_v19 = vmul.f32 %v4070_v60, %v7152_v30  ;;  %v945_v13 = vsel %vm125_vm1, %v863_v1, 0.0  ;;  %v960_v0 = vsel %vm125_vm1, %v868_v49, 0.0  ;;  %v957_v17 = vsel %vm125_vm1, %v867_v8, 0.0  ;;  %v4342_v30 = vld [vmem:[%s7015_s0 + $0xe0] sm:$0xff]  ;;  %v3344_v44 = vld [vmem:[%s7015_s0 + $0xc8] sm:$0xff] }
  0xf0   :  { %v450_v62 = vsel %vm386_vm5, %v449_v58, %v448_v54  ;;  %v4207_v11 = vpop.xlane.xlu2 %521  ;;  %v4209_v48 = vpop.xlane.xlu1 %518  ;;  %v861_v58 = vmul.f32 %v4070_v60, %v7153_v12  ;;  %v4347_v12 = vadd.s32 4294967228, %v3939_v42  ;;  %vm839_vm3 = vcmask 589088  }
  0xf1   :  { %v464_v31 = vsel %vm7078_vm12, %v450_v62, %v462_v51  ;;  %v4212_v4 = vpop.xlane.xlu0 %515  ;;  %v942_v45 = vsel %vm125_vm1, %v862_v19, 0.0  ;;  %v7154_v51 = vld [vmem:[#allocation26_spill] sm:$0xff]  ;;  %v870_v19 = vmul.f32 %v4342_v30, %v4070_v60 }
  0xf2   :  { %466 = vst.msk [vmem:[#allocation2] sm:$0xff] %vm125_vm1, %v464_v31  ;;  %v939_v10 = vsel %vm138_vm0, %v861_v58, 0.0  ;;  %v866_v62 = vmul.f32 %v4070_v60, %v7154_v51  ;;  %v7155_v31 = vld [vmem:[#allocation21_spill] sm:$0xff]  ;;  %v4357_v51 = vadd.s32 4294967244, %v3939_v42 }
  0xf3   :  { %7161 = vst [vmem:[#allocation9_spill] sm:$0xff] %v4347_v12 }
  0xf4   :  { %v954_v16 = vsel %vm138_vm0, %v866_v62, 0.0  ;;  %7162 = vst [vmem:[#allocation14_spill] sm:$0xff] %v4357_v51 }
  0xf5   :  { %910 = vadd.xlane.f32.xlu2 %v909_v20  ;;  %907 = vadd.xlane.f32.xlu1 %v906_v55  ;;  %v865_v20 = vmul.f32 %v4070_v60, %v7155_v31  ;;  %v7156_v55 = vld [vmem:[#allocation22_spill] sm:$0xff] }
  0xf6   :  { %904 = vadd.xlane.f32.xlu0 %v903_v52  ;;  %v864_v52 = vmul.f32 %v4070_v60, %v7156_v55 }
  0xf7   :  { %v951_v43 = vsel %vm125_vm1, %v865_v20, 0.0 }
  0xf8   :  { %v4224_v3 = vpop.xlane.xlu2 %530  ;;  %v4226_v53 = vpop.xlane.xlu1 %527  ;;  %v948_v36 = vsel %vm125_vm1, %v864_v52, 0.0 }
  0xf9   :  { %v4228_v33 = vpop.xlane.xlu0 %524 }
  0xfd   :  { %919 = vadd.xlane.f32.xlu2 %v918_v56  ;;  %916 = vadd.xlane.f32.xlu1 %v915_v32  ;;  %v4293_v56 = vstv %s3288_s22  ;;  %v7157_v32 = vld [vmem:[#allocation27_spill] sm:$0xff] }
  0xfe   :  { %913 = vadd.xlane.f32.xlu0 %v912_v18  ;;  %v869_v18 = vmul.f32 %v4070_v60, %v7157_v32  ;;  %v636_v59 = vadd.f32 %v4293_v56, %v4226_v53  ;;  %v635_v47 = vadd.f32 %v4293_v56, %v4228_v33  ;;  %v4331_v33 = vld [vmem:[%s7015_s0 + $0xe8] sm:$0xf]  ;;  %v637_v1 = vadd.f32 %v4293_v56, %v4224_v3 }
  0xff   :  { %v871_v26 = vmul.f32 %v4331_v33, %v4070_v60  ;;  %v966_v32 = vsel %vm125_vm1, %v870_v19, 0.0 }
 0x100   :  { %v4239_v40 = vpop.xlane.xlu2 %539  ;;  %v4241_v38 = vpop.xlane.xlu1 %536  ;;  %v963_v46 = vsel %vm125_vm1, %v869_v18, 0.0  ;;  %v676_v58 = vmax.f32 %v636_v59, 0.0  ;;  %v4370_v18 = vadd.s32 4294967236, %v3939_v42 }
 0x101   :  { %v4243_v39 = vpop.xlane.xlu0 %533  ;;  %v639_v8 = vadd.f32 %v4293_v56, %v4241_v38  ;;  %v4390_v38 = vld [vmem:[%s7015_s0 + $0x100] sm:$0xff] }
 0x102   :  { %v638_v55 = vadd.f32 %v4293_v56, %v4243_v39  ;;  %7163 = vst [vmem:[#allocation10_spill] sm:$0xff] %v4370_v18  ;;  %v769_v35 = vperm.slane %v676_v58, %v4319_v5 }
 0x105   :  { %928 = vadd.xlane.f32.xlu2 %v927_v37  ;;  %925 = vadd.xlane.f32.xlu1 %v924_v61  ;;  %v631_v37 = vadd.f32 %v4293_v56, %v4175_v15 }
 0x106   :  { %922 = vadd.xlane.f32.xlu0 %v921_v28  ;;  %v630_v28 = vadd.f32 %v4293_v56, %v4177_v6  ;;  %v4324_v6 = vadd.s32 4294967260, %v3939_v42 }
 0x107   :  { %v671_v15 = vmax.f32 %v631_v37, 0.0 }
 0x108   :  { %v4254_v14 = vpop.xlane.xlu2 %548  ;;  %v4256_v9 = vpop.xlane.xlu1 %545 }
 0x109   :  { %v4258_v50 = vpop.xlane.xlu0 %542  ;;  %v753_v3 = vperm.slane %v671_v15, %v4319_v5  ;;  %v4401_v15 = vld [vmem:[%s7015_s0 + $0xf8] sm:$0xff] }
 0x10d   :  { %937 = vadd.xlane.f32.xlu2 %v936_v63  ;;  %934 = vadd.xlane.f32.xlu1 %v933_v2  ;;  %v632_v63 = vadd.f32 %v4293_v56, %v4212_v4  ;;  %v670_v2 = vmax.f32 %v630_v28, 0.0  ;;  %v634_v4 = vadd.f32 %v4293_v56, %v4207_v11  ;;  %v678_v28 = vmax.f32 %v638_v55, 0.0 }
 0x10e   :  { %931 = vadd.xlane.f32.xlu0 %v930_v34  ;;  %v7160_v34 = vld [vmem:[#allocation28_spill] sm:$0xff] }
 0x10f   :  { %v872_v53 = vmul.f32 %v4070_v60, %v7160_v34  ;;  %v672_v62 = vmax.f32 %v632_v63, 0.0  ;;  %v751_v20 = vperm.slane %v670_v2, %v4324_v6  ;;  %v873_v63 = vmul.f32 %v4401_v15, %v4070_v60 }
 0x110   :  { %v4269_v23 = vpop.xlane.xlu2 %557  ;;  %v4271_v7 = vpop.xlane.xlu1 %554  ;;  %v642_v34 = vadd.f32 %v4293_v56, %v4256_v9  ;;  %v773_v9 = vperm.slane %v678_v28, %v4370_v18 }
 0x111   :  { %v4273_v54 = vpop.xlane.xlu0 %551  ;;  %v972_v52 = vsel %vm125_vm1, %v872_v53, 0.0  ;;  %v757_v22 = vperm.slane %v672_v62, %v4357_v51  ;;  %v755_v37 = vsel %vm754_vm13, %v753_v3, %v751_v20  ;;  %v646_v53 = vadd.f32 %v4293_v56, %v4269_v23 }
 0x113   :  { %v759_v58 = vsel %vm758_vm14, %v757_v22, %v755_v37  ;;  %v4440_v22 = vld [vmem:[%s7015_s0 + $0x120] sm:$0xff] }
 0x115   :  { %946 = vadd.xlane.f32.xlu2 %v945_v13  ;;  %943 = vadd.xlane.f32.xlu1 %v942_v45  ;;  %v675_v13 = vmax.f32 %v635_v47, 0.0 }
 0x116   :  { %940 = vadd.xlane.f32.xlu0 %v939_v10  ;;  %v633_v10 = vadd.f32 %v4293_v56, %v4209_v48  ;;  %v640_v48 = vadd.f32 %v4293_v56, %v4239_v40  ;;  %v641_v40 = vadd.f32 %v4293_v56, %v4258_v50  ;;  %v874_v50 = vmul.f32 %v4390_v38, %v4070_v60 }
 0x117   :  { %v768_v49 = vperm.slane %v675_v13, %v4324_v6  ;;  %v679_v13 = vmax.f32 %v639_v8, 0.0  ;;  %v4447_v8 = vld [vmem:[%s7015_s0 + $0x118] sm:$0xff] }
 0x118   :  { %v4284_v41 = vpop.xlane.xlu2 %566  ;;  %v4286_v57 = vpop.xlane.xlu1 %563  ;;  %v673_v39 = vmax.f32 %v633_v10, 0.0  ;;  %v680_v47 = vmax.f32 %v640_v48, 0.0  ;;  %v681_v3 = vmax.f32 %v641_v40, 0.0 }
 0x119   :  { %v4288_v27 = vpop.xlane.xlu0 %560  ;;  %v770_v2 = vsel %vm754_vm13, %v769_v35, %v768_v49  ;;  %v648_v49 = vadd.f32 %v4293_v56, %v4286_v57  ;;  %v877_v57 = vmul.f32 %v4447_v8, %v4070_v60 }
 0x11a   :  { %v761_v19 = vperm.slane %v673_v39, %v4370_v18  ;;  %v647_v23 = vadd.f32 %v4293_v56, %v4288_v27  ;;  %v777_v20 = vperm.slane %v680_v47, %v4324_v6  ;;  %v775_v27 = vperm.slane %v679_v13, %v4347_v12 }
 0x11b   :  { %v778_v35 = vperm.slane %v681_v3, %v4319_v5 }
 0x11c   :  { %v687_v39 = vmax.f32 %v647_v23, 0.0 }
 0x11d   :  { %955 = vadd.xlane.f32.xlu2 %v954_v16  ;;  %952 = vadd.xlane.f32.xlu1 %v951_v43  ;;  %v969_v16 = vsel %vm138_vm0, %v871_v26, 0.0  ;;  %v674_v43 = vmax.f32 %v634_v4, 0.0  ;;  %v645_v26 = vadd.f32 %v4293_v56, %v4271_v7  ;;  %v978_v7 = vsel %vm125_vm1, %v874_v50, 0.0 }
 0x11e   :  { %949 = vadd.xlane.f32.xlu0 %v948_v36  ;;  %v677_v36 = vmax.f32 %v637_v1, 0.0  ;;  %v789_v23 = vperm.slane %v687_v39, %v4357_v51  ;;  %v4501_v39 = vld [vmem:[%s7015_s0 + $0x128] sm:$0xff] }
 0x11f   :  { %v685_v48 = vmax.f32 %v645_v26, 0.0  ;;  %v688_v26 = vmax.f32 %v648_v49, 0.0  ;;  %v4494_v49 = vld [vmem:[%s7015_s0 + $0x130] sm:$0xff] }
 0x120   :  { %v4301_v24 = vpop.xlane.xlu2 %575  ;;  %v4303_v21 = vpop.xlane.xlu1 %572  ;;  %v771_v59 = vperm.slane %v677_v36, %v4357_v51  ;;  %v686_v36 = vmax.f32 %v646_v53, 0.0  ;;  %v779_v53 = vsel %vm754_vm13, %v778_v35, %v777_v20 }
 0x121   :  { %v4307_v61 = vpop.xlane.xlu0 %569  ;;  %v651_v37 = vadd.f32 %v4293_v56, %v4303_v21  ;;  %v652_v13 = vadd.f32 %v4293_v56, %v4301_v24 }
 0x122   :  { %v772_v55 = vsel %vm758_vm14, %v771_v59, %v770_v2  ;;  %v650_v28 = vadd.f32 %v4293_v56, %v4307_v61  ;;  %v787_v47 = vperm.slane %v686_v36, %v4319_v5  ;;  %v649_v61 = vadd.f32 %v4293_v56, %v4284_v41 }
 0x123   :  { %v691_v20 = vmax.f32 %v651_v37, 0.0  ;;  %v791_v36 = vperm.slane %v688_v26, %v4370_v18 }
 0x125   :  { %964 = vadd.xlane.f32.xlu2 %v963_v46  ;;  %961 = vadd.xlane.f32.xlu1 %v960_v0  ;;  %v4383_v46 = vld [vmem:[%s7015_s0 + $0x108] sm:$0xff]  ;;  %v796_v37 = vperm.slane %v691_v20, %v4319_v5 }
 0x126   :  { %958 = vadd.xlane.f32.xlu0 %v957_v17  ;;  %v875_v0 = vmul.f32 %v4383_v46, %v4070_v60  ;;  %v4395_v17 = vperm.slane %v674_v43, %v4347_v12  ;;  %v682_v43 = vmax.f32 %v642_v34, 0.0 }
 0x128   :  { %v4349_v45 = vpop.xlane.xlu2 %584  ;;  %v4351_v11 = vpop.xlane.xlu1 %581  ;;  %v981_v62 = vsel %vm125_vm1, %v875_v0, 0.0  ;;  %v4458_v0 = vld [vmem:[%s7015_s0 + $0x110] sm:$0xf]  ;;  %v780_v59 = vperm.slane %v682_v43, %v4357_v51 }
 0x129   :  { %v4359_v31 = vpop.xlane.xlu0 %578  ;;  %v876_v50 = vmul.f32 %v4458_v0, %v4070_v60 }
 0x12a   :  { %v781_v24 = vsel %vm758_vm14, %v780_v59, %v779_v53  ;;  %v653_v20 = vadd.f32 %v4293_v56, %v4359_v31 }
 0x12b   :  { %v984_v41 = vsel %vm138_vm0, %v876_v50, 0.0 }
 0x12d   :  { %973 = vadd.xlane.f32.xlu2 %v972_v52  ;;  %970 = vadd.xlane.f32.xlu1 %v969_v16  ;;  %v643_v52 = vadd.f32 %v4293_v56, %v4254_v14  ;;  %v975_v16 = vsel %vm125_vm1, %v873_v63, 0.0  ;;  %v774_v14 = vsel %vm7074_vm15, %v773_v9, %v772_v55  ;;  %v786_v63 = vperm.slane %v685_v48, %v4324_v6 }
 0x12e   :  { %967 = vadd.xlane.f32.xlu0 %v966_v32  ;;  %v644_v32 = vadd.f32 %v4293_v56, %v4273_v54  ;;  %v878_v54 = vmul.f32 %v4440_v22, %v4070_v60  ;;  %v763_v9 = vsel %vm7074_vm15, %v761_v19, %v759_v58  ;;  %v689_v58 = vmax.f32 %v649_v61, 0.0 }
 0x12f   :  { %v683_v40 = vmax.f32 %v643_v52, 0.0  ;;  %v690_v52 = vmax.f32 %v650_v28, 0.0  ;;  %v788_v43 = vsel %vm754_vm13, %v787_v47, %v786_v63  ;;  %v692_v48 = vmax.f32 %v652_v13, 0.0 }
 0x130   :  { %v4412_v4 = vpop.xlane.xlu2 %593  ;;  %v4414_v1 = vpop.xlane.xlu1 %590  ;;  %v684_v2 = vmax.f32 %v644_v32, 0.0  ;;  %v4486_v32 = vld [vmem:[%s7015_s0 + $0x138] sm:$0xf]  ;;  %v790_v35 = vsel %vm758_vm14, %v789_v23, %v788_v43  ;;  %v655_v47 = vadd.f32 %v4293_v56, %v4349_v45  ;;  %v793_v53 = vperm.slane %v689_v58, %v4347_v12 }
 0x131   :  { %v4418_v10 = vpop.xlane.xlu0 %587  ;;  %v782_v55 = vperm.slane %v683_v40, %v4370_v18  ;;  %v795_v28 = vperm.slane %v690_v52, %v4324_v6  ;;  %v792_v61 = vsel %vm7074_vm15, %v791_v36, %v790_v35  ;;  %v798_v26 = vperm.slane %v692_v48, %v4357_v51 }
 0x132   :  { %v784_v19 = vperm.slane %v684_v2, %v4347_v12  ;;  %v654_v45 = vadd.f32 %v4293_v56, %v4351_v11  ;;  %v656_v23 = vadd.f32 %v4293_v56, %v4418_v10  ;;  %v695_v11 = vmax.f32 %v655_v47, 0.0  ;;  %v4544_v10 = vld [vmem:[%s7015_s0 + $0x10] sm:$0xff] }
 0x133   :  { %v783_v40 = vsel %vm7074_vm15, %v782_v55, %v781_v24  ;;  %v797_v55 = vsel %vm754_vm13, %v796_v37, %v795_v28  ;;  %v4549_v31 = vsel %vm7071_vm2, %v793_v53, %v792_v61  ;;  %v693_v35 = vmax.f32 %v653_v20, 0.0 }
 0x134   :  { %v785_v59 = vsel %vm7071_vm2, %v784_v19, %v783_v40  ;;  %v694_v58 = vmax.f32 %v654_v45, 0.0  ;;  %v799_v36 = vsel %vm758_vm14, %v798_v26, %v797_v55  ;;  %v696_v48 = vmax.f32 %v656_v23, 0.0 }
 0x135   :  { %982 = vadd.xlane.f32.xlu2 %v981_v62  ;;  %979 = vadd.xlane.f32.xlu1 %v978_v7  ;;  %v990_v62 = vsel %vm125_vm1, %v878_v54, 0.0  ;;  %v987_v7 = vsel %vm125_vm1, %v877_v57, 0.0  ;;  %v879_v54 = vmul.f32 %v4501_v39, %v4070_v60  ;;  %v767_v57 = vsel %vm7071_vm2, %v4395_v17, %v763_v9 }
 0x136   :  { %976 = vadd.xlane.f32.xlu0 %v975_v16  ;;  %v776_v16 = vsel %vm7071_vm2, %v775_v27, %v774_v14  ;;  %v881_v27 = vmul.f32 %v4486_v32, %v4070_v60  ;;  %v880_v14 = vmul.f32 %v4494_v49, %v4070_v60  ;;  %v4517_v60 = vld [vmem:[%s7016_s1] sm:$0xff]  ;;  %v804_v40 = vperm.slane %v695_v11, %v4324_v6 }
 0x137   :  { %v831_v50 = vsel %vm451_vm6, %v776_v16, %v767_v57  ;;  %v4520_v17 = vperm.slane %v4517_v60, 3  ;;  %v658_v37 = vadd.f32 %v4293_v56, %v4412_v4 }
 0x138   :  { %v603_v34 = vpop.xlane.xlu2 %602  ;;  %v600_v21 = vpop.xlane.xlu1 %599  ;;  %v999_v9 = vsel %vm138_vm0, %v881_v27, 0.0  ;;  %v4538_v16 = vsel %vm453_vm7, %v785_v59, %v831_v50  ;;  %v4564_v27 = vld [vmem:[%s7015_s0] sm:$0xff] }
 0x139   :  { %v4470_v3 = vpop.xlane.xlu0 %596  ;;  %v661_v52 = vadd.f32 %v4293_v56, %v603_v34  ;;  %v1218_v43 = vmul.f32 %v4544_v10, %v4520_v17  ;;  %v657_v34 = vadd.f32 %v4293_v56, %v4414_v1  ;;  %v1216_v1 = vmul.f32 %v4564_v27, %v4520_v17 }
 0x13a   :  { %v659_v61 = vadd.f32 %v4293_v56, %v4470_v3  ;;  %v698_v20 = vmax.f32 %v658_v37, 0.0  ;;  %v4608_v37 = vld [vmem:[%s7015_s0 + $0x18] sm:$0xff]  ;;  %v1241_v29 = vmul.f32 %v3344_v44, %v4520_v17 }
 0x13b   :  { %v1262_v47 = vsel %vm125_vm1, %v1218_v43, 0.0  ;;  %v697_v53 = vmax.f32 %v657_v34, 0.0  ;;  %v1256_v23 = vsel %vm125_vm1, %v1216_v1, 0.0  ;;  %v4592_v1 = vld [vmem:[%s7015_s0 + $0x28] sm:$0xff] }
 0x13c   :  { %v699_v34 = vmax.f32 %v659_v61, 0.0  ;;  %v1331_v25 = vsel %vm125_vm1, %v1241_v29, 0.0  ;;  %v1245_v29 = vmul.f32 %v4331_v33, %v4520_v17  ;;  %v4864_v33 = vadd.s32 4294967208, %v3939_v42 }
 0x13d   :  { %991 = vadd.xlane.f32.xlu2 %v990_v62  ;;  %988 = vadd.xlane.f32.xlu1 %v987_v7  ;;  %v996_v62 = vsel %vm125_vm1, %v880_v14, 0.0  ;;  %v993_v7 = vsel %vm125_vm1, %v879_v54, 0.0  ;;  %v701_v14 = vmax.f32 %v661_v52, 0.0  ;;  %v807_v43 = vperm.slane %v697_v53, %v4357_v51 }
 0x13e   :  { %985 = vadd.xlane.f32.xlu0 %v984_v41  ;;  %v660_v41 = vadd.f32 %v4293_v56, %v600_v21  ;;  %v4556_v21 = vld [vmem:[%s7015_s0 + $0x8] sm:$0xff] }
 0x13f   :  { %v1217_v19 = vmul.f32 %v4556_v21, %v4520_v17 }
 0x140   :  { %v612_v63 = vpop.xlane.xlu2 %611  ;;  %v609_v2 = vpop.xlane.xlu1 %608  ;;  %v700_v54 = vmax.f32 %v660_v41, 0.0 }
 0x141   :  { %v606_v13 = vpop.xlane.xlu0 %605  ;;  %v663_v57 = vadd.f32 %v4293_v56, %v609_v2  ;;  %v805_v2 = vperm.slane %v696_v48, %v4319_v5  ;;  %v664_v45 = vadd.f32 %v4293_v56, %v612_v63  ;;  %v800_v63 = vperm.slane %v693_v35, %v4370_v18 }
 0x142   :  { %v662_v24 = vadd.f32 %v4293_v56, %v606_v13 }
 0x143   :  { %v703_v55 = vmax.f32 %v663_v57, 0.0  ;;  %v704_v48 = vmax.f32 %v664_v45, 0.0 }
 0x144   :  { %v702_v28 = vmax.f32 %v662_v24, 0.0  ;;  %v802_v24 = vperm.slane %v694_v58, %v4347_v12  ;;  %v4599_v58 = vld [vmem:[%s7015_s0 + $0x20] sm:$0xf] }
 0x145   :  { %1000 = vadd.xlane.f32.xlu2 %v999_v9  ;;  %997 = vadd.xlane.f32.xlu1 %v996_v62  ;;  %v1259_v9 = vsel %vm125_vm1, %v1217_v19, 0.0  ;;  %v814_v62 = vperm.slane %v701_v14, %v4319_v5  ;;  %v806_v19 = vsel %vm754_vm13, %v805_v2, %v804_v40  ;;  %v1221_v14 = vmul.f32 %v4592_v1, %v4520_v17 }
 0x146   :  { %994 = vadd.xlane.f32.xlu0 %v993_v7  ;;  %v813_v7 = vperm.slane %v700_v54, %v4324_v6  ;;  %v816_v52 = vperm.slane %v702_v28, %v4357_v51  ;;  %v1220_v35 = vmul.f32 %v4599_v58, %v4520_v17  ;;  %v818_v57 = vperm.slane %v703_v55, %v4370_v18 }
 0x147   :  { %v1219_v28 = vmul.f32 %v4608_v37, %v4520_v17  ;;  %v811_v2 = vperm.slane %v699_v34, %v4347_v12 }
 0x148   :  { %v621_v50 = vpop.xlane.xlu2 %620  ;;  %v618_v59 = vpop.xlane.xlu1 %617  ;;  %v815_v54 = vsel %vm754_vm13, %v814_v62, %v813_v7 }
 0x149   :  { %v666_v26 = vadd.f32 %v4293_v56, %v618_v59  ;;  %v615_v13 = vpop.xlane.xlu0 %614  ;;  %v667_v3 = vadd.f32 %v4293_v56, %v621_v50  ;;  %v809_v50 = vperm.slane %v698_v20, %v4370_v18  ;;  %v817_v59 = vsel %vm758_vm14, %v816_v52, %v815_v54  ;;  %v4658_v54 = vld [vmem:[%s7015_s0 + $0x30] sm:$0xff] }
 0x14a   :  { %v665_v4 = vadd.f32 %v4293_v56, %v615_v13  ;;  %v801_v13 = vsel %vm7074_vm15, %v800_v63, %v799_v36  ;;  %v819_v7 = vsel %vm7074_vm15, %v818_v57, %v817_v59  ;;  %v1222_v57 = vmul.f32 %v4658_v54, %v4520_v17 }
 0x14b   :  { %v706_v41 = vmax.f32 %v666_v26, 0.0  ;;  %v707_v40 = vmax.f32 %v667_v3, 0.0  ;;  %v1265_v3 = vsel %vm125_vm1, %v1219_v28, 0.0  ;;  %v803_v20 = vsel %vm7071_vm2, %v802_v24, %v801_v13  ;;  %v4642_v24 = vld [vmem:[%s7015_s0 + $0x40] sm:$0xff] }
 0x14c   :  { %v705_v11 = vmax.f32 %v665_v4, 0.0  ;;  %7164 = vst [vmem:[#allocation11_spill] sm:$0xff] %v4642_v24 }
 0x14d   :  { %1263 = vadd.xlane.f32.xlu2 %v1262_v47  ;;  %1260 = vadd.xlane.f32.xlu1 %v1259_v9  ;;  %v823_v47 = vperm.slane %v706_v41, %v4319_v5  ;;  %v808_v9 = vsel %vm758_vm14, %v807_v43, %v806_v19  ;;  %v1271_v5 = vsel %vm125_vm1, %v1221_v14, 0.0  ;;  %v825_v55 = vperm.slane %v707_v40, %v4357_v51 }
 0x14e   :  { %1257 = vadd.xlane.f32.xlu0 %v1256_v23  ;;  %v822_v53 = vperm.slane %v705_v11, %v4324_v6  ;;  %v820_v23 = vperm.slane %v704_v48, %v4347_v12  ;;  %v1268_v6 = vsel %vm138_vm0, %v1220_v35, 0.0  ;;  %v810_v52 = vsel %vm7074_vm15, %v809_v50, %v808_v9 }
 0x14f   :  { %v812_v63 = vsel %vm7071_vm2, %v811_v2, %v810_v52  ;;  %v1224_v48 = vmul.f32 %v4642_v24, %v4520_v17 }
 0x150   :  { %v4616_v61 = vpop.xlane.xlu2 %883  ;;  %v627_v26 = vpop.xlane.xlu1 %626  ;;  %v824_v41 = vsel %vm754_vm13, %v823_v47, %v822_v53  ;;  %v821_v34 = vsel %vm7071_vm2, %v820_v23, %v819_v7  ;;  %vm1128_vm13 = vcmask 720512  }
 0x151   :  { %v669_v45 = vadd.f32 %v4293_v56, %v627_v26  ;;  %v624_v4 = vpop.xlane.xlu0 %623  ;;  %v826_v35 = vsel %vm758_vm14, %v825_v55, %v824_v41  ;;  %v1280_v9 = vsel %vm125_vm1, %v1224_v48, 0.0  ;;  %vm1132_vm14 = vcmask 786112  }
 0x152   :  { %v668_v62 = vadd.f32 %v4293_v56, %v624_v4  ;;  %v833_v56 = vsel %vm455_vm8, %v4549_v31, %v4538_v16  ;;  %v4649_v16 = vld [vmem:[%s7015_s0 + $0x38] sm:$0xff] }
 0x153   :  { %v709_v36 = vmax.f32 %v669_v45, 0.0  ;;  %v1223_v31 = vmul.f32 %v4649_v16, %v4520_v17  ;;  %v834_v14 = vsel %vm7086_vm9, %v803_v20, %v833_v56  ;;  %v1274_v45 = vsel %vm125_vm1, %v1222_v57, 0.0  ;;  %v4679_v4 = vld [vmem:[%s7015_s0 + $0x58] sm:$0xff] }
 0x154   :  { %v708_v11 = vmax.f32 %v668_v62, 0.0  ;;  %v835_v40 = vsel %vm7093_vm10, %v812_v63, %v834_v14  ;;  %7165 = vst [vmem:[#allocation17_spill] sm:$0xff] %v4679_v4  ;;  %v1227_v23 = vmul.f32 %v4679_v4, %v4520_v17  ;;  %v4686_v62 = vld [vmem:[%s7015_s0 + $0x50] sm:$0xff]  ;;  %v4716_v63 = vld [vmem:[%s7015_s0 + $0x68] sm:$0xff] }
 0x155   :  { %v829_v43 = vperm.slane %v709_v36, %v4347_v12  ;;  %1272 = vadd.xlane.f32.xlu2 %v1271_v5  ;;  %1269 = vadd.xlane.f32.xlu1 %v1268_v6  ;;  %v836_v47 = vsel %vm7103_vm11, %v821_v34, %v835_v40  ;;  %v1277_v2 = vsel %vm125_vm1, %v1223_v31, 0.0  ;;  %v1226_v5 = vmul.f32 %v4686_v62, %v4520_v17  ;;  %v4693_v6 = vld [vmem:[%s7015_s0 + $0x48] sm:$0xf]  ;;  %v4723_v34 = vld [vmem:[%s7015_s0 + $0x60] sm:$0xff]  ;;  %v3341_v12 = vld [vmem:[%s7015_s0 + $0xb0] sm:$0xff] }
 0x156   :  { %v827_v19 = vperm.slane %v708_v11, %v4370_v18  ;;  %1266 = vadd.xlane.f32.xlu0 %v1265_v3  ;;  %7166 = vst [vmem:[#allocation12_spill] sm:$0xff] %v4693_v6  ;;  %v1225_v7 = vmul.f32 %v4693_v6, %v4520_v17  ;;  %v1289_v20 = vsel %vm125_vm1, %v1227_v23, 0.0  ;;  %v4709_v11 = vld [vmem:[%s7015_s0 + $0x70] sm:$0xf]  ;;  %v1238_v18 = vmul.f32 %v3341_v12, %v4520_v17 }
 0x157   :  { %v1286_v52 = vsel %vm125_vm1, %v1226_v5, 0.0  ;;  %7167 = vst [vmem:[#allocation13_spill] sm:$0xff] %v4709_v11  ;;  %v1230_v56 = vmul.f32 %v4709_v11, %v4520_v17  ;;  %v3343_v12 = vld [vmem:[%s7015_s0 + $0xd0] sm:$0xff] }
 0x158   :  { %v828_v28 = vsel %vm7074_vm15, %v827_v19, %v826_v35  ;;  %v4664_v50 = vpop.xlane.xlu2 %892  ;;  %v4666_v59 = vpop.xlane.xlu1 %889  ;;  %v1283_v41 = vsel %vm138_vm0, %v1225_v7, 0.0  ;;  %7168 = vst [vmem:[#allocation20_spill] sm:$0xff] %v4716_v63  ;;  %v1228_v19 = vmul.f32 %v4723_v34, %v4520_v17  ;;  %vm1604_vm15 = vcmask 1048416  }
 0x159   :  { %v830_v53 = vsel %vm7071_vm2, %v829_v43, %v828_v28  ;;  %v4670_v26 = vpop.xlane.xlu0 %886  ;;  %v1229_v43 = vmul.f32 %v4716_v63, %v4520_v17  ;;  %7169 = vst [vmem:[#allocation15_spill] sm:$0xff] %v4723_v34  ;;  %v1298_v35 = vsel %vm138_vm0, %v1230_v56, 0.0  ;;  %v4739_v28 = vld [vmem:[%s7015_s0 + $0x88] sm:$0xff]  ;;  %v4882_v63 = vadd.s32 4294967192, %v3939_v42 }
 0x15a   :  { %v837_v13 = vsel %vm7078_vm12, %v830_v53, %v836_v47  ;;  %v1292_v40 = vsel %vm125_vm1, %v1228_v19, 0.0  ;;  %7170 = vst [vmem:[#allocation16_spill] sm:$0xff] %v4739_v28  ;;  %v1233_v47 = vmul.f32 %v4739_v28, %v4520_v17  ;;  %v4746_v53 = vld [vmem:[%s7015_s0 + $0x80] sm:$0xff]  ;;  %vm7072_vm2 = vcmask 917312  }
 0x15b   :  { %840 = vst.msk [vmem:[#allocation2] sm:$0xff] %vm839_vm3, %v837_v13  ;;  %v1295_v57 = vsel %vm125_vm1, %v1229_v43, 0.0  ;;  %v1232_v13 = vmul.f32 %v4746_v53, %v4520_v17  ;;  %v4773_v43 = vld [vmem:[%s7015_s0 + $0x98] sm:$0xf]  ;;  %vm7073_vm3 = vcmask 851712  }
 0x15c   :  { %7171 = vst [vmem:[#allocation23_spill] sm:$0xff] %v4746_v53  ;;  %v1307_v7 = vsel %vm125_vm1, %v1233_v47, 0.0  ;;  %v1235_v19 = vmul.f32 %v4773_v43, %v4520_v17 }
 0x15d   :  { %1281 = vadd.xlane.f32.xlu2 %v1280_v9  ;;  %1278 = vadd.xlane.f32.xlu1 %v1277_v2  ;;  %v4753_v9 = vld [vmem:[%s7015_s0 + $0x78] sm:$0xff]  ;;  %7173 = vst [vmem:[#allocation19_spill] sm:$0xff] %v4773_v43 }
 0x15e   :  { %1275 = vadd.xlane.f32.xlu0 %v1274_v45  ;;  %7172 = vst [vmem:[#allocation18_spill] sm:$0xff] %v4753_v9  ;;  %v1231_v2 = vmul.f32 %v4753_v9, %v4520_v17 }
 0x15f   :  { %7175 = vst [vmem:[#allocation21_spill] sm:$0xff] %v4882_v63 }
 0x160   :  { %v4697_v55 = vpop.xlane.xlu2 %901  ;;  %v4699_v36 = vpop.xlane.xlu1 %898 }
 0x161   :  { %v4701_v3 = vpop.xlane.xlu0 %895 }
 0x165   :  { %1290 = vadd.xlane.f32.xlu2 %v1289_v20  ;;  %1287 = vadd.xlane.f32.xlu1 %v1286_v52  ;;  %v1304_v20 = vsel %vm125_vm1, %v1232_v13, 0.0  ;;  %v1301_v52 = vsel %vm125_vm1, %v1231_v2, 0.0 }
 0x166   :  { %1284 = vadd.xlane.f32.xlu0 %v1283_v41  ;;  %v3337_v41 = vld [vmem:[%s7015_s0 + $0xa0] sm:$0xff] }
 0x167   :  { %v1236_v56 = vmul.f32 %v3337_v41, %v4520_v17 }
 0x168   :  { %v4727_v48 = vpop.xlane.xlu2 %910  ;;  %v4729_v31 = vpop.xlane.xlu1 %907 }
 0x169   :  { %v4731_v14 = vpop.xlane.xlu0 %904  ;;  %v1316_v2 = vsel %vm125_vm1, %v1236_v56, 0.0  ;;  %v3342_v56 = vld [vmem:[%s7015_s0 + $0xa8] sm:$0xff] }
 0x16d   :  { %1299 = vadd.xlane.f32.xlu2 %v1298_v35  ;;  %1296 = vadd.xlane.f32.xlu1 %v1295_v57  ;;  %v4780_v35 = vld [vmem:[%s7015_s0 + $0x90] sm:$0xff] }
 0x16e   :  { %1293 = vadd.xlane.f32.xlu0 %v1292_v40  ;;  %7174 = vst [vmem:[#allocation26_spill] sm:$0xff] %v4780_v35  ;;  %v1234_v57 = vmul.f32 %v4780_v35, %v4520_v17 }
 0x170   :  { %v4757_v45 = vpop.xlane.xlu2 %919  ;;  %v4759_v23 = vpop.xlane.xlu1 %916 }
 0x171   :  { %v4761_v5 = vpop.xlane.xlu0 %913 }
 0x175   :  { %1308 = vadd.xlane.f32.xlu2 %v1307_v7  ;;  %1305 = vadd.xlane.f32.xlu1 %v1304_v20  ;;  %v1313_v7 = vsel %vm138_vm0, %v1235_v19, 0.0  ;;  %v1310_v20 = vsel %vm125_vm1, %v1234_v57, 0.0  ;;  %v1237_v19 = vmul.f32 %v3342_v56, %v4520_v17  ;;  %v1242_v56 = vmul.f32 %v3343_v12, %v4520_v17 }
 0x176   :  { %1302 = vadd.xlane.f32.xlu0 %v1301_v52  ;;  %v3340_v52 = vld [vmem:[%s7015_s0 + $0xb8] sm:$0xff] }
 0x177   :  { %v1239_v41 = vmul.f32 %v3340_v52, %v4520_v17  ;;  %v1322_v52 = vsel %vm125_vm1, %v1238_v18, 0.0  ;;  %v1319_v51 = vsel %vm125_vm1, %v1237_v19, 0.0  ;;  %v3345_v18 = vld [vmem:[%s7015_s0 + $0xc0] sm:$0xf]  ;;  %v1334_v12 = vsel %vm125_vm1, %v1242_v56, 0.0 }
 0x178   :  { %v4784_v40 = vpop.xlane.xlu2 %928  ;;  %v4786_v47 = vpop.xlane.xlu1 %925  ;;  %v4846_v56 = vadd.s32 4294967224, %v3939_v42 }
 0x179   :  { %v4788_v13 = vpop.xlane.xlu0 %922 }
 0x17d   :  { %1317 = vadd.xlane.f32.xlu2 %v1316_v2  ;;  %1314 = vadd.xlane.f32.xlu1 %v1313_v7 }
 0x17e   :  { %1311 = vadd.xlane.f32.xlu0 %v1310_v20  ;;  %v1325_v20 = vsel %vm125_vm1, %v1239_v41, 0.0  ;;  %v1240_v41 = vmul.f32 %v3345_v18, %v4520_v17 }
 0x180   :  { %v4805_v57 = vpop.xlane.xlu2 %937  ;;  %v4807_v2 = vpop.xlane.xlu1 %934  ;;  %v1328_v44 = vsel %vm138_vm0, %v1240_v41, 0.0 }
 0x181   :  { %v4809_v7 = vpop.xlane.xlu0 %931 }
 0x185   :  { %1326 = vadd.xlane.f32.xlu2 %v1325_v20  ;;  %1323 = vadd.xlane.f32.xlu1 %v1322_v52  ;;  %v4830_v20 = vstv %s3289_s26  ;;  %s3292_s26 = sld [smem:[#allocation3 + $0x5]] }
 0x186   :  { %1320 = vadd.xlane.f32.xlu0 %v1319_v51  ;;  %v1004_v28 = vadd.f32 %v4830_v20, %v4616_v61  ;;  %v1005_v18 = vadd.f32 %v4830_v20, %v4670_v26  ;;  %v1010_v35 = vadd.f32 %v4830_v20, %v4697_v55  ;;  %v1009_v43 = vadd.f32 %v4830_v20, %v4699_v36 }
 0x187   :  { %v1244_v61 = vmul.f32 %v4342_v30, %v4520_v17  ;;  %v4853_v26 = vadd.s32 4294967200, %v3939_v42  ;;  %v1006_v55 = vadd.f32 %v4830_v20, %v4666_v59  ;;  %v1011_v36 = vadd.f32 %v4830_v20, %v4731_v14 }
 0x188   :  { %v4826_v19 = vpop.xlane.xlu2 %946  ;;  %v4828_v51 = vpop.xlane.xlu1 %943  ;;  %v4867_v30 = vadd.s32 4294967216, %v3939_v42  ;;  %v1007_v14 = vadd.f32 %v4830_v20, %v4664_v50  ;;  %v1050_v9 = vmax.f32 %v1010_v35, 0.0  ;;  %v1049_v53 = vmax.f32 %v1009_v43, 0.0 }
 0x189   :  { %v4832_v52 = vpop.xlane.xlu0 %940  ;;  %v1046_v34 = vmax.f32 %v1006_v55, 0.0  ;;  %v1051_v24 = vmax.f32 %v1011_v36, 0.0  ;;  %v1015_v6 = vadd.f32 %v4830_v20, %v4759_v23  ;;  %v1008_v36 = vadd.f32 %v4830_v20, %v4701_v3 }
 0x18a   :  { %v1142_v55 = vperm.slane %v1049_v53, %v4846_v56  ;;  %v1248_v23 = vmul.f32 %v4390_v38, %v4520_v17  ;;  %v1016_v3 = vadd.f32 %v4830_v20, %v4757_v45 }
 0x18b   :  { %v1145_v53 = vperm.slane %v1051_v24, %v4864_v33  ;;  %v1048_v45 = vmax.f32 %v1008_v36, 0.0 }
 0x18c   :  { %v1056_v42 = vmax.f32 %v1016_v3, 0.0 }
 0x18d   :  { %1335 = vadd.xlane.f32.xlu2 %v1334_v12  ;;  %1332 = vadd.xlane.f32.xlu1 %v1331_v25  ;;  %v3346_v25 = vld [vmem:[%s7015_s0 + $0xd8] sm:$0xff]  ;;  %v1044_v12 = vmax.f32 %v1004_v28, 0.0  ;;  %v1012_v28 = vadd.f32 %v4830_v20, %v4729_v31  ;;  %v1014_v31 = vadd.f32 %v4830_v20, %v4761_v5  ;;  %v1247_v5 = vmul.f32 %v4401_v15, %v4520_v17 }
 0x18e   :  { %1329 = vadd.xlane.f32.xlu0 %v1328_v44  ;;  %v1243_v41 = vmul.f32 %v3346_v25, %v4520_v17  ;;  %v1045_v44 = vmax.f32 %v1005_v18, 0.0  ;;  %v1343_v25 = vsel %vm138_vm0, %v1245_v29, 0.0  ;;  %v1340_v18 = vsel %vm125_vm1, %v1244_v61, 0.0 }
 0x18f   :  { %v1125_v35 = vperm.slane %v1044_v12, %v4846_v56  ;;  %v1047_v29 = vmax.f32 %v1007_v14, 0.0  ;;  %v1143_v61 = vperm.slane %v1050_v9, %v4867_v30  ;;  %v1052_v12 = vmax.f32 %v1012_v28, 0.0 }
 0x190   :  { %v4869_v11 = vpop.xlane.xlu2 %955  ;;  %v4871_v59 = vpop.xlane.xlu1 %952  ;;  %v1337_v50 = vsel %vm125_vm1, %v1243_v41, 0.0  ;;  %v1127_v43 = vperm.slane %v1045_v44, %v4867_v30  ;;  %v1013_v41 = vadd.f32 %v4830_v20, %v4727_v48  ;;  %v1131_v9 = vperm.slane %v1046_v34, %v4864_v33  ;;  %v3347_v44 = vld [vmem:[%s7015_s0 + $0xf0] sm:$0xff] }
 0x191   :  { %v4875_v4 = vpop.xlane.xlu0 %949  ;;  %v1246_v48 = vmul.f32 %v3347_v44, %v4520_v17  ;;  %v1055_v28 = vmax.f32 %v1015_v6, 0.0  ;;  %v1054_v38 = vmax.f32 %v1014_v31, 0.0  ;;  %v1017_v15 = vadd.f32 %v4830_v20, %v4788_v13 }
 0x192   :  { %v1129_v14 = vsel %vm1128_vm13, %v1127_v43, %v1125_v35  ;;  %v1144_v24 = vsel %vm1128_vm13, %v1143_v61, %v1142_v55  ;;  %v1053_v6 = vmax.f32 %v1013_v41, 0.0  ;;  %v1147_v35 = vperm.slane %v1052_v12, %v4853_v26 }
 0x193   :  { %v1352_v13 = vsel %vm125_vm1, %v1248_v23, 0.0  ;;  %v1349_v43 = vsel %vm125_vm1, %v1247_v5, 0.0  ;;  %v1146_v31 = vsel %vm1132_vm14, %v1145_v53, %v1144_v24  ;;  %v1018_v61 = vadd.f32 %v4830_v20, %v4786_v47 }
 0x194   :  { %v1152_v55 = vperm.slane %v1055_v28, %v4867_v30  ;;  %v1057_v36 = vmax.f32 %v1017_v15, 0.0  ;;  %v1021_v41 = vadd.f32 %v4830_v20, %v4807_v2  ;;  %v1135_v12 = vperm.slane %v1047_v29, %v4853_v26 }
 0x195   :  { %1344 = vadd.xlane.f32.xlu2 %v1343_v25  ;;  %1341 = vadd.xlane.f32.xlu1 %v1340_v18  ;;  %v1019_v18 = vadd.f32 %v4830_v20, %v4784_v40  ;;  %v1346_v40 = vsel %vm125_vm1, %v1246_v48, 0.0  ;;  %v1133_v23 = vsel %vm1132_vm14, %v1131_v9, %v1129_v14  ;;  %v1139_v47 = vperm.slane %v1048_v45, %v4882_v63 }
 0x196   :  { %1338 = vadd.xlane.f32.xlu0 %v1337_v50  ;;  %v1020_v50 = vadd.f32 %v4830_v20, %v4809_v7  ;;  %v1151_v7 = vperm.slane %v1054_v38, %v4846_v56  ;;  %v1149_v3 = vperm.slane %v1053_v6, %v4882_v63  ;;  %v1251_v48 = vmul.f32 %v4447_v8, %v4520_v17 }
 0x197   :  { %v1059_v5 = vmax.f32 %v1019_v18, 0.0  ;;  %v1250_v28 = vmul.f32 %v4458_v0, %v4520_v17  ;;  %v1148_v2 = vsel %vm7073_vm3, %v1147_v35, %v1146_v31  ;;  %v1154_v29 = vperm.slane %v1056_v42, %v4864_v33 }
 0x198   :  { %v4912_v25 = vpop.xlane.xlu2 %964  ;;  %v4914_v34 = vpop.xlane.xlu1 %961  ;;  %v1060_v53 = vmax.f32 %v1020_v50, 0.0  ;;  %v1058_v9 = vmax.f32 %v1018_v61, 0.0  ;;  %v1249_v14 = vmul.f32 %v4383_v46, %v4520_v17  ;;  %v1153_v38 = vsel %vm1128_vm13, %v1152_v55, %v1151_v7 }
 0x199   :  { %v4921_v44 = vpop.xlane.xlu0 %958  ;;  %v1156_v15 = vperm.slane %v1057_v36, %v4853_v26  ;;  %v1022_v24 = vadd.f32 %v4830_v20, %v4805_v57  ;;  %v1061_v45 = vmax.f32 %v1021_v41, 0.0  ;;  %v1160_v0 = vperm.slane %v1059_v5, %v4846_v56 }
 0x19a   :  { %v1161_v50 = vperm.slane %v1060_v53, %v4867_v30  ;;  %v1025_v42 = vadd.f32 %v4830_v20, %v4826_v19  ;;  %v1024_v46 = vadd.f32 %v4830_v20, %v4828_v51  ;;  %v1361_v35 = vsel %vm125_vm1, %v1251_v48, 0.0 }
 0x19b   :  { %v1358_v57 = vsel %vm138_vm0, %v1250_v28, 0.0  ;;  %v1155_v31 = vsel %vm1132_vm14, %v1154_v29, %v1153_v38  ;;  %v1355_v61 = vsel %vm125_vm1, %v1249_v14, 0.0  ;;  %v1062_v55 = vmax.f32 %v1022_v24, 0.0 }
 0x19c   :  { %v1157_v19 = vsel %vm7073_vm3, %v1156_v15, %v1155_v31  ;;  %v1163_v51 = vperm.slane %v1061_v45, %v4864_v33  ;;  %v1162_v36 = vsel %vm1128_vm13, %v1161_v50, %v1160_v0  ;;  %v1065_v41 = vmax.f32 %v1025_v42, 0.0 }
 0x19d   :  { %1353 = vadd.xlane.f32.xlu2 %v1352_v13  ;;  %1350 = vadd.xlane.f32.xlu1 %v1349_v43  ;;  %v1137_v13 = vsel %vm7073_vm3, %v1135_v12, %v1133_v23  ;;  %v1158_v43 = vperm.slane %v1058_v9, %v4882_v63  ;;  %v1064_v5 = vmax.f32 %v1024_v46, 0.0  ;;  %v1026_v12 = vadd.f32 %v4830_v20, %v4875_v4 }
 0x19e   :  { %1347 = vadd.xlane.f32.xlu0 %v1346_v40  ;;  %v1150_v40 = vsel %vm7072_vm2, %v1149_v3, %v1148_v2  ;;  %v1141_v7 = vsel %vm7072_vm2, %v1139_v47, %v1137_v13  ;;  %v1254_v23 = vmul.f32 %v4494_v49, %v4520_v17  ;;  %v1253_v53 = vmul.f32 %v4501_v39, %v4520_v17 }
 0x19f   :  { %v1252_v3 = vmul.f32 %v4440_v22, %v4520_v17  ;;  %v4978_v47 = vsel %vm7072_vm2, %v1158_v43, %v1157_v19  ;;  %v4981_v48 = vsel %vm451_vm6, %v1150_v40, %v1141_v7  ;;  %v1027_v28 = vadd.f32 %v4830_v20, %v4871_v59 }
 0x1a0   :  { %v974_v8 = vpop.xlane.xlu2 %973  ;;  %v4950_v18 = vpop.xlane.xlu1 %970  ;;  %v1165_v4 = vperm.slane %v1062_v55, %v4853_v26  ;;  %v1164_v2 = vsel %vm1132_vm14, %v1163_v51, %v1162_v36  ;;  %v1023_v49 = vadd.f32 %v4830_v20, %v4832_v52  ;;  %v4990_v22 = vperm.slane %v4517_v60, 4 }
 0x1a1   :  { %v968_v6 = vpop.xlane.xlu0 %967  ;;  %v1170_v9 = vperm.slane %v1065_v41, %v4867_v30  ;;  %v1169_v14 = vperm.slane %v1064_v5, %v4846_v56  ;;  %v1030_v38 = vadd.f32 %v4830_v20, %v4914_v34  ;;  %v1029_v59 = vadd.f32 %v4830_v20, %v4921_v44 }
 0x1a2   :  { %v1066_v24 = vmax.f32 %v1026_v12, 0.0  ;;  %v1370_v45 = vsel %vm125_vm1, %v1254_v23, 0.0  ;;  %v1367_v52 = vsel %vm125_vm1, %v1253_v53, 0.0  ;;  %v1364_v0 = vsel %vm125_vm1, %v1252_v3, 0.0 }
 0x1a3   :  { %v1028_v50 = vadd.f32 %v4830_v20, %v4869_v11  ;;  %v1067_v42 = vmax.f32 %v1027_v28, 0.0  ;;  %v1034_v46 = vadd.f32 %v4830_v20, %v974_v8  ;;  %v1031_v34 = vadd.f32 %v4830_v20, %v4912_v25 }
 0x1a4   :  { %v1610_v44 = vmul.f32 %v4556_v21, %v4990_v22  ;;  %v1255_v13 = vmul.f32 %v4486_v32, %v4520_v17  ;;  %v5014_v43 = vsel %vm7073_vm3, %v1165_v4, %v1164_v2  ;;  %v1070_v11 = vmax.f32 %v1030_v38, 0.0 }
 0x1a5   :  { %1362 = vadd.xlane.f32.xlu2 %v1361_v35  ;;  %1359 = vadd.xlane.f32.xlu1 %v1358_v57  ;;  %v1609_v57 = vmul.f32 %v4564_v27, %v4990_v22  ;;  %v1069_v31 = vmax.f32 %v1029_v59, 0.0  ;;  %v1032_v8 = vadd.f32 %v4830_v20, %v968_v6  ;;  %v1171_v25 = vsel %vm1128_vm13, %v1170_v9, %v1169_v14 }
 0x1a6   :  { %1356 = vadd.xlane.f32.xlu0 %v1355_v61  ;;  %v1063_v61 = vmax.f32 %v1023_v49, 0.0  ;;  %v1172_v40 = vperm.slane %v1066_v24, %v4864_v33  ;;  %v1068_v55 = vmax.f32 %v1028_v50, 0.0  ;;  %v1174_v32 = vperm.slane %v1067_v42, %v4853_v26 }
 0x1a7   :  { %v1074_v17 = vmax.f32 %v1034_v46, 0.0  ;;  %v1071_v7 = vmax.f32 %v1031_v34, 0.0  ;;  %v1652_v6 = vsel %vm125_vm1, %v1610_v44, 0.0  ;;  %v1649_v5 = vsel %vm125_vm1, %v1609_v57, 0.0 }
 0x1a8   :  { %v983_v39 = vpop.xlane.xlu2 %982  ;;  %v980_v29 = vpop.xlane.xlu1 %979  ;;  %v1373_v12 = vsel %vm138_vm0, %v1255_v13, 0.0  ;;  %v1179_v23 = vperm.slane %v1070_v11, %v4867_v30  ;;  %v1178_v53 = vperm.slane %v1069_v31, %v4846_v56  ;;  %v1033_v3 = vadd.f32 %v4830_v20, %v4950_v18 }
 0x1a9   :  { %v977_v15 = vpop.xlane.xlu0 %976  ;;  %v1036_v19 = vadd.f32 %v4830_v20, %v980_v29  ;;  %v1072_v28 = vmax.f32 %v1032_v8, 0.0  ;;  %v1173_v2 = vsel %vm1132_vm14, %v1172_v40, %v1171_v25  ;;  %v1037_v49 = vadd.f32 %v4830_v20, %v983_v39 }
 0x1aa   :  { %v1035_v35 = vadd.f32 %v4830_v20, %v977_v15  ;;  %v1187_v14 = vperm.slane %v1074_v17, %v4846_v56  ;;  %v1181_v24 = vperm.slane %v1071_v7, %v4864_v33  ;;  %v1613_v18 = vmul.f32 %v4599_v58, %v4990_v22 }
 0x1ab   :  { %v1076_v29 = vmax.f32 %v1036_v19, 0.0  ;;  %v1611_v39 = vmul.f32 %v4544_v10, %v4990_v22  ;;  %v1073_v50 = vmax.f32 %v1033_v3, 0.0  ;;  %v1183_v42 = vperm.slane %v1072_v28, %v4853_v26 }
 0x1ac   :  { %v1075_v51 = vmax.f32 %v1035_v35, 0.0  ;;  %v1176_v46 = vperm.slane %v1068_v55, %v4882_v63  ;;  %v1077_v35 = vmax.f32 %v1037_v49, 0.0  ;;  %v1661_v25 = vsel %vm138_vm0, %v1613_v18, 0.0 }
 0x1ad   :  { %1371 = vadd.xlane.f32.xlu2 %v1370_v45  ;;  %1368 = vadd.xlane.f32.xlu1 %v1367_v52  ;;  %v1612_v45 = vmul.f32 %v4608_v37, %v4990_v22  ;;  %v1167_v52 = vperm.slane %v1063_v61, %v4882_v63  ;;  %v1190_v58 = vperm.slane %v1076_v29, %v4864_v33  ;;  %v1655_v40 = vsel %vm125_vm1, %v1611_v39, 0.0 }
 0x1ae   :  { %1365 = vadd.xlane.f32.xlu0 %v1364_v0  ;;  %v1188_v38 = vperm.slane %v1075_v51, %v4867_v30  ;;  %v1180_v0 = vsel %vm1128_vm13, %v1179_v23, %v1178_v53  ;;  %v1175_v37 = vsel %vm7073_vm3, %v1174_v32, %v1173_v2  ;;  %v1185_v19 = vperm.slane %v1073_v50, %v4882_v63 }
 0x1af   :  { %v1182_v11 = vsel %vm1132_vm14, %v1181_v24, %v1180_v0  ;;  %v1658_v61 = vsel %vm125_vm1, %v1612_v45, 0.0  ;;  %v1192_v7 = vperm.slane %v1077_v35, %v4853_v26  ;;  %v1206_v3 = vsel %vm453_vm7, %v4978_v47, %v4981_v48 }
 0x1b0   :  { %v992_v36 = vpop.xlane.xlu2 %991  ;;  %v989_v41 = vpop.xlane.xlu1 %988  ;;  %v1189_v44 = vsel %vm1128_vm13, %v1188_v38, %v1187_v14  ;;  %v1184_v55 = vsel %vm7073_vm3, %v1183_v42, %v1182_v11  ;;  %v1168_v28 = vsel %vm7072_vm2, %v1167_v52, %v5014_v43  ;;  %v1614_v38 = vmul.f32 %v4592_v1, %v4990_v22 }
 0x1b1   :  { %v986_v4 = vpop.xlane.xlu0 %985  ;;  %v1040_v9 = vadd.f32 %v4830_v20, %v992_v36  ;;  %v1039_v59 = vadd.f32 %v4830_v20, %v989_v41  ;;  %v1191_v36 = vsel %vm1132_vm14, %v1190_v58, %v1189_v44  ;;  %v1186_v49 = vsel %vm7072_vm2, %v1185_v19, %v1184_v55  ;;  %v7178_v19 = vld [vmem:[#allocation20_spill] sm:$0xff] }
 0x1b2   :  { %v1038_v15 = vadd.f32 %v4830_v20, %v986_v4  ;;  %v1177_v4 = vsel %vm7072_vm2, %v1176_v46, %v1175_v37  ;;  %v1193_v47 = vsel %vm7073_vm3, %v1192_v7, %v1191_v36  ;;  %v1207_v29 = vsel %vm455_vm8, %v1168_v28, %v1206_v3  ;;  %v7176_v37 = vld [vmem:[#allocation12_spill] sm:$0xff]  ;;  %v7182_v28 = vld [vmem:[#allocation18_spill] sm:$0xff] }
 0x1b3   :  { %v1080_v34 = vmax.f32 %v1040_v9, 0.0  ;;  %v1079_v57 = vmax.f32 %v1039_v59, 0.0  ;;  %v1208_v59 = vsel %vm7086_vm9, %v1177_v4, %v1207_v29  ;;  %v1664_v58 = vsel %vm125_vm1, %v1614_v38, 0.0  ;;  %v7184_v29 = vld [vmem:[#allocation19_spill] sm:$0xff] }
 0x1b4   :  { %v1078_v13 = vmax.f32 %v1038_v15, 0.0  ;;  %v1209_v45 = vsel %vm7093_vm10, %v1186_v49, %v1208_v59  ;;  %v1618_v44 = vmul.f32 %v7176_v37, %v4990_v22  ;;  %v1622_v55 = vmul.f32 %v7178_v19, %v4990_v22  ;;  %v7186_v59 = vld [vmem:[#allocation16_spill] sm:$0xff] }
 0x1b5   :  { %1653 = vadd.xlane.f32.xlu2 %v1652_v6  ;;  %1650 = vadd.xlane.f32.xlu1 %v1649_v5  ;;  %v1197_v41 = vperm.slane %v1080_v34, %v4867_v30  ;;  %v1196_v5 = vperm.slane %v1079_v57, %v4846_v56  ;;  %v1615_v56 = vmul.f32 %v4658_v54, %v4990_v22  ;;  %v7177_v57 = vld [vmem:[#allocation11_spill] sm:$0xff] }
 0x1b6   :  { %1374 = vadd.xlane.f32.xlu0 %v1373_v12  ;;  %v1194_v12 = vperm.slane %v1078_v13, %v4882_v63  ;;  %v1619_v34 = vmul.f32 %v4686_v62, %v4990_v22  ;;  %v1617_v13 = vmul.f32 %v7177_v57, %v4990_v22  ;;  %v1624_v4 = vmul.f32 %v7182_v28, %v4990_v22 }
 0x1b7   :  { %v1198_v9 = vsel %vm1128_vm13, %v1197_v41, %v1196_v5  ;;  %vm1213_vm13 = vcmask 884288   ;;  %v1667_v46 = vsel %vm125_vm1, %v1615_v56, 0.0  ;;  %v1688_v5 = vsel %vm125_vm1, %v1622_v55, 0.0 }
 0x1b8   :  { %v1001_v31 = vpop.xlane.xlu2 %1000  ;;  %v998_v8 = vpop.xlane.xlu1 %997  ;;  %v1195_v14 = vsel %vm7072_vm2, %v1194_v12, %v1193_v47 }
 0x1b9   :  { %v1043_v32 = vadd.f32 %v4830_v20, %v1001_v31  ;;  %v1042_v17 = vadd.f32 %v4830_v20, %v998_v8  ;;  %v995_v51 = vpop.xlane.xlu0 %994  ;;  %v1210_v0 = vsel %vm7103_vm11, %v1195_v14, %v1209_v45  ;;  %v7185_v14 = vld [vmem:[#allocation26_spill] sm:$0xff] }
 0x1ba   :  { %v1041_v6 = vadd.f32 %v4830_v20, %v995_v51  ;;  %v1616_v20 = vmul.f32 %v4649_v16, %v4990_v22  ;;  %v7180_v51 = vld [vmem:[#allocation17_spill] sm:$0xff]  ;;  %v1627_v38 = vmul.f32 %v7185_v14, %v4990_v22  ;;  %v3117_v14 = vld [vmem:[%s7018_s3 + $0x68] sm:$0xff] }
 0x1bb   :  { %v1083_v23 = vmax.f32 %v1043_v32, 0.0  ;;  %v1082_v53 = vmax.f32 %v1042_v17, 0.0  ;;  %v7179_v32 = vld [vmem:[#allocation15_spill] sm:$0xff]  ;;  %v1620_v7 = vmul.f32 %v7180_v51, %v4990_v22 }
 0x1bc   :  { %v1081_v2 = vmax.f32 %v1041_v6, 0.0  ;;  %v1670_v42 = vsel %vm125_vm1, %v1616_v20, 0.0  ;;  %v1621_v17 = vmul.f32 %v7179_v32, %v4990_v22 }
 0x1bd   :  { %v1201_v30 = vperm.slane %v1082_v53, %v4853_v26  ;;  %1662 = vadd.xlane.f32.xlu2 %v1661_v25  ;;  %1659 = vadd.xlane.f32.xlu1 %v1658_v61  ;;  %v1203_v48 = vperm.slane %v1083_v23, %v4882_v63  ;;  %v1679_v25 = vsel %vm125_vm1, %v1619_v34, 0.0  ;;  %v1676_v61 = vsel %vm138_vm0, %v1618_v44, 0.0  ;;  %v7181_v53 = vld [vmem:[#allocation23_spill] sm:$0xff] }
 0x1be   :  { %v1199_v43 = vperm.slane %v1081_v2, %v4864_v33  ;;  %1656 = vadd.xlane.f32.xlu0 %v1655_v40  ;;  %v1673_v40 = vsel %vm125_vm1, %v1617_v13, 0.0  ;;  %v1685_v12 = vsel %vm125_vm1, %v1621_v17, 0.0  ;;  %v1682_v23 = vsel %vm125_vm1, %v1620_v7, 0.0  ;;  %v7183_v2 = vld [vmem:[#allocation13_spill] sm:$0xff] }
 0x1bf   :  { %v1625_v3 = vmul.f32 %v7181_v53, %v4990_v22 }
 0x1c0   :  { %v1200_v15 = vsel %vm1132_vm14, %v1199_v43, %v1198_v9  ;;  %v5085_v24 = vpop.xlane.xlu2 %1263  ;;  %v5087_v18 = vpop.xlane.xlu1 %1260  ;;  %v1628_v9 = vmul.f32 %v7184_v29, %v4990_v22  ;;  %vm1502_vm14 = vcmask 1015712  }
 0x1c1   :  { %v1202_v39 = vsel %vm7073_vm3, %v1201_v30, %v1200_v15  ;;  %v5091_v52 = vpop.xlane.xlu0 %1257  ;;  %v1623_v30 = vmul.f32 %v7183_v2, %v4990_v22  ;;  %v1697_v47 = vsel %vm125_vm1, %v1625_v3, 0.0  ;;  %v1626_v15 = vmul.f32 %v7186_v59, %v4990_v22 }
 0x1c2   :  { %v1204_v50 = vsel %vm7072_vm2, %v1203_v48, %v1202_v39  ;;  %v1694_v48 = vsel %vm125_vm1, %v1624_v4, 0.0  ;;  %vm1512_vm2 = vcmask 97312   ;;  %vm7115_vm3 = vcmask 162912  }
 0x1c3   :  { %v1211_v35 = vsel %vm7078_vm12, %v1204_v50, %v1210_v0  ;;  %v1691_v43 = vsel %vm138_vm0, %v1623_v30, 0.0  ;;  %v1706_v50 = vsel %vm138_vm0, %v1628_v9, 0.0 }
 0x1c4   :  { %1214 = vst.msk [vmem:[#allocation2] sm:$0xff] %vm1213_vm13, %v1211_v35  ;;  %v1700_v35 = vsel %vm125_vm1, %v1626_v15, 0.0  ;;  %vm7077_vm13 = vcmask 1048544  }
 0x1c5   :  { %1671 = vadd.xlane.f32.xlu2 %v1670_v42  ;;  %1668 = vadd.xlane.f32.xlu1 %v1667_v46  ;;  %v1703_v42 = vsel %vm125_vm1, %v1627_v38, 0.0  ;;  %v5159_v46 = vperm.slane %v4517_v60, 7 }
 0x1c6   :  { %1665 = vadd.xlane.f32.xlu0 %v1664_v58 }
 0x1c7   :  { %v2721_v58 = vmul.f32 %v4592_v1, %v5159_v46  ;;  %v2717_v34 = vmul.f32 %v4556_v21, %v5159_v46  ;;  %v2716_v37 = vmul.f32 %v4564_v27, %v5159_v46  ;;  %v5177_v1 = vstv %s3290_s2 }
 0x1c8   :  { %v5105_v11 = vpop.xlane.xlu2 %1272  ;;  %v5107_v31 = vpop.xlane.xlu1 %1269  ;;  %v2723_v21 = vmul.f32 %v4649_v16, %v5159_v46  ;;  %v2722_v19 = vmul.f32 %v4658_v54, %v5159_v46  ;;  %v1379_v7 = vadd.f32 %v5177_v1, %v5087_v18  ;;  %v3119_v18 = vld [vmem:[%s7018_s3 + $0x78] sm:$0xff]  ;;  %v1380_v4 = vadd.f32 %v5177_v1, %v5085_v24 }
 0x1c9   :  { %v5109_v8 = vpop.xlane.xlu0 %1266  ;;  %v2771_v13 = vsel %vm125_vm1, %v2721_v58, 0.0  ;;  %3147 = vmatpush.msra.mxu0 %v3119_v18  ;;  %v2727_v29 = vmul.f32 %v7180_v51, %v5159_v46  ;;  %v2726_v9 = vmul.f32 %v4686_v62, %v5159_v46 }
 0x1ca   :  { %v2777_v16 = vsel %vm125_vm1, %v2723_v21, 0.0  ;;  %v2774_v3 = vsel %vm125_vm1, %v2722_v19, 0.0  ;;  %v1419_v2 = vmax.f32 %v1379_v7, 0.0  ;;  %v1381_v24 = vadd.f32 %v5177_v1, %v5109_v8  ;;  %v3115_v21 = vld [vmem:[%s7018_s3 + $0x58] sm:$0xff] }
 0x1cb   :  { %v1420_v62 = vmax.f32 %v1380_v4, 0.0  ;;  %v5283_v4 = vld [vmem:[%s7015_s0 + $0x28] sm:$0xff] }
 0x1cd   :  { %1680 = vadd.xlane.f32.xlu2 %v1679_v25  ;;  %1677 = vadd.xlane.f32.xlu1 %v1676_v61  ;;  %v2759_v25 = vsel %vm125_vm1, %v2717_v34, 0.0  ;;  %v2756_v61 = vsel %vm125_vm1, %v2716_v37, 0.0  ;;  %v2789_v37 = vsel %vm125_vm1, %v2727_v29, 0.0  ;;  %v3113_v29 = vld [vmem:[%s7018_s3 + $0x48] sm:$0xff] }
 0x1ce   :  { %1674 = vadd.xlane.f32.xlu0 %v1673_v40  ;;  %v2718_v40 = vmul.f32 %v4544_v10, %v5159_v46  ;;  %v5200_v10 = vld [vmem:[%s7016_s1] sm:$0xff] }
 0x1cf   :  { %v5203_v53 = vperm.slane %v5200_v10, 5 }
 0x1d0   :  { %v5120_v36 = vpop.xlane.xlu2 %1281  ;;  %v5122_v41 = vpop.xlane.xlu1 %1278 }
 0x1d1   :  { %v5124_v6 = vpop.xlane.xlu0 %1275  ;;  %v1984_v18 = vmul.f32 %v4658_v54, %v5203_v53 }
 0x1d2   :  { %v1384_v51 = vadd.f32 %v5177_v1, %v5124_v6 }
 0x1d4   :  { %v1424_v7 = vmax.f32 %v1384_v51, 0.0 }
 0x1d5   :  { %1689 = vadd.xlane.f32.xlu2 %v1688_v5  ;;  %1686 = vadd.xlane.f32.xlu1 %v1685_v12  ;;  %v1378_v5 = vadd.f32 %v5177_v1, %v5091_v52  ;;  %v7187_v52 = vld [vmem:[#allocation29_spill] sm:$0xff] }
 0x1d6   :  { %1683 = vadd.xlane.f32.xlu0 %v1682_v23  ;;  %v2762_v23 = vsel %vm125_vm1, %v2718_v40, 0.0  ;;  %v5210_v28 = vadd.s32 4294967180, %v7187_v52  ;;  %v5215_v30 = vadd.s32 4294967188, %v7187_v52  ;;  %v5232_v38 = vadd.s32 4294967172, %v7187_v52 }
 0x1d7   :  { %v5235_v59 = vadd.s32 4, %v7187_v52  ;;  %v5255_v6 = vadd.s32 4294967292, %v7187_v52  ;;  %v5268_v19 = vadd.s32 4294967284, %v7187_v52 }
 0x1d8   :  { %v5135_v20 = vpop.xlane.xlu2 %1290  ;;  %v5137_v56 = vpop.xlane.xlu1 %1287 }
 0x1d9   :  { %v5139_v49 = vpop.xlane.xlu0 %1284 }
 0x1dd   :  { %1698 = vadd.xlane.f32.xlu2 %v1697_v47  ;;  %1695 = vadd.xlane.f32.xlu1 %v1694_v48  ;;  %v1418_v47 = vmax.f32 %v1378_v5, 0.0  ;;  %v3118_v48 = vld [vmem:[%s7018_s3 + $0x70] sm:$0xff]  ;;  %v1505_v5 = vperm.slane %v1420_v62, %v5232_v38 }
 0x1de   :  { %1692 = vadd.xlane.f32.xlu0 %v1691_v43  ;;  %v1978_v43 = vmul.f32 %v4564_v27, %v5203_v53  ;;  %3148 = vmatpush.msra.mxu0 %v3118_v48  ;;  %v1383_v27 = vadd.f32 %v5177_v1, %v5105_v11  ;;  %v3116_v11 = vld [vmem:[%s7018_s3 + $0x60] sm:$0xff] }
 0x1e0   :  { %v5150_v45 = vpop.xlane.xlu2 %1299  ;;  %v5152_v39 = vpop.xlane.xlu1 %1296  ;;  %3149 = vmatpush.msra.mxu0 %v3117_v14  ;;  %v2018_v34 = vsel %vm125_vm1, %v1978_v43, 0.0  ;;  %v1423_v40 = vmax.f32 %v1383_v27, 0.0  ;;  %v1389_v14 = vadd.f32 %v5177_v1, %v5135_v20  ;;  %v3112_v20 = vld [vmem:[%s7018_s3 + $0x40] sm:$0xff] }
 0x1e1   :  { %v5154_v0 = vpop.xlane.xlu0 %1293 }
 0x1e2   :  { %3150 = vmatpush.msra.mxu0 %v3116_v11 }
 0x1e4   :  { %3151 = vmatpush.msra.mxu0 %v3115_v21  ;;  %v3111_v21 = vld [vmem:[%s7018_s3 + $0x38] sm:$0xff] }
 0x1e5   :  { %1707 = vadd.xlane.f32.xlu2 %v1706_v50  ;;  %1704 = vadd.xlane.f32.xlu1 %v1703_v42  ;;  %v1501_v50 = vperm.slane %v1419_v2, %v5210_v28  ;;  %v1499_v42 = vperm.slane %v1418_v47, %v5215_v30  ;;  %v1983_v2 = vmul.f32 %v5283_v4, %v5203_v53 }
 0x1e6   :  { %1701 = vadd.xlane.f32.xlu0 %v1700_v35  ;;  %v1382_v35 = vadd.f32 %v5177_v1, %v5107_v31  ;;  %v1385_v31 = vadd.f32 %v5177_v1, %v5122_v41 }
 0x1e8   :  { %v5168_v44 = vpop.xlane.xlu2 %1308  ;;  %v5170_v57 = vpop.xlane.xlu1 %1305  ;;  %v1422_v41 = vmax.f32 %v1382_v35, 0.0  ;;  %v1425_v43 = vmax.f32 %v1385_v31, 0.0  ;;  %v5314_v35 = vadd.f32 %v5177_v1, %v5154_v0 }
 0x1e9   :  { %v5172_v60 = vpop.xlane.xlu0 %1302 }
 0x1ea   :  { %v1523_v31 = vperm.slane %v1425_v43, %v5235_v59 }
 0x1ed   :  { %2772 = vadd.xlane.f32.xlu2 %v2771_v13  ;;  %2760 = vadd.xlane.f32.xlu1 %v2759_v25  ;;  %v1421_v13 = vmax.f32 %v1381_v24, 0.0  ;;  %v1386_v25 = vadd.f32 %v5177_v1, %v5120_v36  ;;  %v1509_v36 = vperm.slane %v1420_v62, %v5235_v59  ;;  %v1518_v24 = vperm.slane %v1423_v40, %v5215_v30 }
 0x1ee   :  { %2757 = vadd.xlane.f32.xlu0 %v2756_v61  ;;  %v2786_v61 = vsel %vm125_vm1, %v2726_v9, 0.0  ;;  %v1519_v9 = vperm.slane %v1424_v7, %v5210_v28  ;;  %v1429_v7 = vmax.f32 %v1389_v14, 0.0 }
 0x1ef   :  { %v1511_v47 = vperm.slane %v1421_v13, %v5255_v6  ;;  %v1426_v48 = vmax.f32 %v1386_v25, 0.0  ;;  %v2036_v13 = vsel %vm125_vm1, %v1984_v18, 0.0  ;;  %v2033_v25 = vsel %vm125_vm1, %v1983_v2, 0.0 }
 0x1f0   :  { %v5185_v55 = vpop.xlane.xlu2 %1317  ;;  %v5187_v17 = vpop.xlane.xlu1 %1314  ;;  %v1520_v40 = vsel %vm1502_vm14, %v1519_v9, %v1518_v24  ;;  %v1529_v9 = vperm.slane %v1429_v7, %v5210_v28  ;;  %v3107_v7 = vld [vmem:[%s7018_s3 + $0x18] sm:$0xff] }
 0x1f1   :  { %v5193_v12 = vpop.xlane.xlu0 %1311  ;;  %v1524_v0 = vperm.slane %v1426_v48, %v5255_v6 }
 0x1f3   :  { %v1525_v48 = vsel %vm1512_vm2, %v1524_v0, %v1523_v31 }
 0x1f5   :  { %2778 = vadd.xlane.f32.xlu2 %v2777_v16  ;;  %2763 = vadd.xlane.f32.xlu1 %v2762_v23  ;;  %v1503_v16 = vsel %vm1502_vm14, %v1501_v50, %v1499_v42  ;;  %v3114_v23 = vld [vmem:[%s7018_s3 + $0x50] sm:$0xff]  ;;  %v1515_v50 = vperm.slane %v1422_v41, %v5268_v19  ;;  %v1391_v42 = vadd.f32 %v5177_v1, %v5152_v39 }
 0x1f6   :  { %2775 = vadd.xlane.f32.xlu0 %v2774_v3  ;;  %v1387_v3 = vadd.f32 %v5177_v1, %v5139_v49  ;;  %3152 = vmatpush.msra.mxu0 %v3114_v23  ;;  %v5291_v49 = vld [vmem:[%s7015_s0 + $0x8] sm:$0xff]  ;;  %v5307_v62 = vsel %vm7077_vm13, %v1505_v5, %v1503_v16  ;;  %v1513_v39 = vsel %vm1512_vm2, %v1511_v47, %v1509_v36  ;;  %v1430_v16 = vmax.f32 %v5314_v35, 0.0 }
 0x1f7   :  { %v1979_v54 = vmul.f32 %v5291_v49, %v5203_v53  ;;  %v1392_v5 = vadd.f32 %v5177_v1, %v5150_v45  ;;  %v1431_v36 = vmax.f32 %v1391_v42, 0.0  ;;  %v1394_v41 = vadd.f32 %v5177_v1, %v5170_v57  ;;  %v5350_v57 = vld [vmem:[%s7015_s0 + $0x40] sm:$0xff] }
 0x1f8   :  { %v5241_v8 = vpop.xlane.xlu2 %1326  ;;  %v5243_v15 = vpop.xlane.xlu1 %1323  ;;  %3153 = vmatpush.msra.mxu0 %v3113_v29  ;;  %v1393_v23 = vadd.f32 %v5177_v1, %v5172_v60  ;;  %v2728_v45 = vmul.f32 %v7179_v32, %v5159_v46  ;;  %v2724_v60 = vmul.f32 %v5350_v57, %v5159_v46  ;;  %v1517_v47 = vsel %vm7115_vm3, %v1515_v50, %v1513_v39  ;;  %v5361_v32 = vld [vmem:[%s7015_s0 + $0x18] sm:$0xff]  ;;  %v3109_v29 = vld [vmem:[%s7018_s3 + $0x28] sm:$0xff] }
 0x1f9   :  { %v5249_v58 = vpop.xlane.xlu0 %1320  ;;  %v1432_v14 = vmax.f32 %v1392_v5, 0.0  ;;  %v1534_v35 = vperm.slane %v1431_v36, %v5255_v6  ;;  %v1531_v36 = vperm.slane %v1430_v16, %v5232_v38 }
 0x1fa   :  { %3154 = vmatpush.msra.mxu0 %v3112_v20  ;;  %v1533_v20 = vperm.slane %v1430_v16, %v5235_v59  ;;  %v2792_v0 = vsel %vm125_vm1, %v2728_v45, 0.0  ;;  %v2780_v31 = vsel %vm125_vm1, %v2724_v60, 0.0  ;;  %v1400_v16 = vadd.f32 %v5177_v1, %v5243_v15  ;;  %v5417_v45 = vld [vmem:[%s7015_s0 + $0x80] sm:$0xff] }
 0x1fb   :  { %v1536_v5 = vperm.slane %v1432_v14, %v5268_v19  ;;  %v2732_v60 = vmul.f32 %v5417_v45, %v5159_v46  ;;  %v3105_v14 = vld [vmem:[%s7018_s3 + $0x8] sm:$0xff] }
 0x1fc   :  { %3155 = vmatpush.msra.mxu0 %v3111_v21  ;;  %v1398_v21 = vadd.f32 %v5177_v1, %v5185_v55  ;;  %v1535_v55 = vsel %vm1512_vm2, %v1534_v35, %v1533_v20 }
 0x1fd   :  { %2019 = vadd.xlane.f32.xlu2 %v2018_v34  ;;  %2790 = vadd.xlane.f32.xlu1 %v2789_v37  ;;  %v1388_v34 = vadd.f32 %v5177_v1, %v5137_v56  ;;  %v1427_v37 = vmax.f32 %v1387_v3, 0.0  ;;  %v1521_v56 = vperm.slane %v1425_v43, %v5232_v38  ;;  %v3110_v3 = vld [vmem:[%s7018_s3 + $0x30] sm:$0xff]  ;;  %v1395_v43 = vadd.f32 %v5177_v1, %v5168_v44 }
 0x1fe   :  { %2787 = vadd.xlane.f32.xlu0 %v2786_v61  ;;  %v2021_v61 = vsel %vm125_vm1, %v1979_v54, 0.0  ;;  %3156 = vmatpush.msra.mxu0 %v3110_v3  ;;  %v2719_v54 = vmul.f32 %v5361_v32, %v5159_v46  ;;  %v1396_v44 = vadd.f32 %v5177_v1, %v5193_v12 }
 0x1ff   :  { %v1428_v18 = vmax.f32 %v1388_v34, 0.0  ;;  %v1526_v2 = vperm.slane %v1427_v37, %v5268_v19  ;;  %v1522_v24 = vsel %vm7077_vm13, %v1521_v56, %v1520_v40  ;;  %v1434_v34 = vmax.f32 %v1394_v41, 0.0 }
 0x200   :  { %v5302_v27 = vpop.xlane.xlu2 %1335  ;;  %v5304_v51 = vpop.xlane.xlu1 %1332  ;;  %3157 = vmatpush.msra.mxu0 %v3109_v29  ;;  %v1433_v37 = vmax.f32 %v1393_v23, 0.0  ;;  %v1399_v56 = vadd.f32 %v5177_v1, %v5249_v58  ;;  %v2765_v40 = vsel %vm125_vm1, %v2719_v54, 0.0  ;;  %v1397_v41 = vadd.f32 %v5177_v1, %v5187_v17  ;;  %v5410_v17 = vld [vmem:[%s7015_s0 + $0x10] sm:$0xff]  ;;  %v5425_v54 = vld [vmem:[%s7015_s0 + $0x78] sm:$0xff] }
 0x201   :  { %v5316_v11 = vpop.xlane.xlu0 %1329  ;;  %v1528_v39 = vperm.slane %v1428_v18, %v5215_v30  ;;  %v1527_v12 = vsel %vm7115_vm3, %v1526_v2, %v1525_v48  ;;  %v1436_v23 = vmax.f32 %v1396_v44, 0.0  ;;  %v1539_v3 = vperm.slane %v1434_v34, %v5210_v28  ;;  %v3106_v18 = vld [vmem:[%s7018_s3 + $0x10] sm:$0xff] }
 0x202   :  { %v1538_v58 = vperm.slane %v1433_v37, %v5215_v30  ;;  %v1980_v2 = vmul.f32 %v5410_v17, %v5203_v53  ;;  %v1438_v48 = vmax.f32 %v1398_v21, 0.0  ;;  %v2731_v29 = vmul.f32 %v5425_v54, %v5159_v46 }
 0x203   :  { %v1437_v35 = vmax.f32 %v1397_v41, 0.0  ;;  %v1544_v20 = vperm.slane %v1436_v23, %v5255_v6  ;;  %v1401_v34 = vadd.f32 %v5177_v1, %v5241_v8  ;;  %v1588_v21 = vsel %vm451_vm6, %v1522_v24, %v5307_v62 }
 0x204   :  { %v2024_v41 = vsel %vm125_vm1, %v1980_v2, 0.0  ;;  %v1548_v62 = vperm.slane %v1438_v48, %v5215_v30 }
 0x205   :  { %2037 = vadd.xlane.f32.xlu2 %v2036_v13  ;;  %2034 = vadd.xlane.f32.xlu1 %v2033_v25  ;;  %v3108_v25 = vld [vmem:[%s7018_s3 + $0x20] sm:$0xff]  ;;  %v1546_v23 = vperm.slane %v1437_v35, %v5268_v19 }
 0x206   :  { %2022 = vadd.xlane.f32.xlu0 %v2021_v61  ;;  %3158 = vmatpush.msra.mxu0 %v3108_v25  ;;  %v1435_v61 = vmax.f32 %v1395_v43, 0.0  ;;  %v1439_v43 = vmax.f32 %v1399_v56, 0.0  ;;  %v1540_v56 = vsel %vm1502_vm14, %v1539_v3, %v1538_v58  ;;  %v1441_v3 = vmax.f32 %v1401_v34, 0.0 }
 0x207   :  { %v1404_v58 = vadd.f32 %v5177_v1, %v5302_v27  ;;  %v5474_v27 = vld [vmem:[%s7015_s0 + $0x50] sm:$0xff] }
 0x208   :  { %v5372_v50 = vpop.xlane.xlu2 %1344  ;;  %v5374_v42 = vpop.xlane.xlu1 %1341  ;;  %3159 = vmatpush.msra.mxu0 %v3107_v7  ;;  %v1541_v15 = vperm.slane %v1435_v61, %v5232_v38  ;;  %v1543_v44 = vperm.slane %v1435_v61, %v5235_v59  ;;  %v1440_v7 = vmax.f32 %v1400_v16, 0.0  ;;  %v1549_v24 = vperm.slane %v1439_v43, %v5210_v28 }
 0x209   :  { %v5378_v13 = vpop.xlane.xlu0 %1338 }
 0x20a   :  { %3160 = vmatpush.msra.mxu0 %v3106_v18  ;;  %v1551_v2 = vperm.slane %v1440_v7, %v5232_v38  ;;  %v1550_v48 = vsel %vm1502_vm14, %v1549_v24, %v1548_v62  ;;  %v1553_v34 = vperm.slane %v1440_v7, %v5235_v59  ;;  %v1402_v7 = vadd.f32 %v5177_v1, %v5316_v11 }
 0x20c   :  { %3161 = vmatpush.msra.mxu0 %v3105_v14  ;;  %v5489_v14 = vperm.slane %v5200_v10, 6 }
 0x20d   :  { %2793 = vadd.xlane.f32.xlu2 %v2792_v0  ;;  %2781 = vadd.xlane.f32.xlu1 %v2780_v31  ;;  %v1530_v0 = vsel %vm1502_vm14, %v1529_v9, %v1528_v39  ;;  %v5438_v31 = vsel %vm451_vm6, %v1527_v12, %v1517_v47  ;;  %v2804_v9 = vsel %vm125_vm1, %v2732_v60, 0.0  ;;  %v5450_v47 = vsel %vm7115_vm3, %v1536_v5, %v1535_v55  ;;  %v5465_v55 = vld [vmem:[%s7015_s0 + $0x58] sm:$0xff] }
 0x20e   :  { %2766 = vadd.xlane.f32.xlu0 %v2765_v40  ;;  %v3104_v40 = vld [vmem:[%s7018_s3] sm:$0xff]  ;;  %v1532_v8 = vsel %vm7077_vm13, %v1531_v36, %v1530_v0  ;;  %v2801_v39 = vsel %vm125_vm1, %v2731_v29, 0.0  ;;  %v1542_v12 = vsel %vm7077_vm13, %v1541_v15, %v1540_v56  ;;  %v1545_v36 = vsel %vm1512_vm2, %v1544_v20, %v1543_v44  ;;  %v5481_v60 = vld [vmem:[%s7015_s0 + $0x38] sm:$0xff] }
 0x20f   :  { %3162 = vmatpush.msra.mxu0 %v3104_v40  ;;  %v1403_v5 = vadd.f32 %v5177_v1, %v5304_v51  ;;  %v1989_v18 = vmul.f32 %v5465_v55, %v5203_v53  ;;  %v1589_v16 = vsel %vm453_vm7, %v1532_v8, %v1588_v21  ;;  %v1988_v51 = vmul.f32 %v5474_v27, %v5203_v53 }
 0x210   :  { %v1354_v37 = vpop.xlane.xlu2 %1353  ;;  %v1351_v25 = vpop.xlane.xlu1 %1350  ;;  %v1985_v15 = vmul.f32 %v5481_v60, %v5203_v53  ;;  %v1590_v44 = vsel %vm455_vm8, %v1542_v12, %v1589_v16  ;;  %v5493_v35 = vsel %vm7115_vm3, %v1546_v23, %v1545_v36  ;;  %v1554_v20 = vperm.slane %v1441_v3, %v5255_v6  ;;  %v3359_v36 = vld [vmem:[%s7015_s0] sm:$0xff] }
 0x211   :  { %v1348_v61 = vpop.xlane.xlu0 %1347  ;;  %v1409_v43 = vadd.f32 %v5177_v1, %v1351_v25  ;;  %v1444_v56 = vmax.f32 %v1404_v58, 0.0  ;;  %v1443_v40 = vmax.f32 %v1403_v5, 0.0  ;;  %v1405_v25 = vadd.f32 %v5177_v1, %v5378_v13 }
 0x212   :  { %v1408_v29 = vadd.f32 %v5177_v1, %v1348_v61  ;;  %v2051_v10 = vsel %vm125_vm1, %v1989_v18, 0.0  ;;  %v1552_v8 = vsel %vm7077_vm13, %v1551_v2, %v1550_v48  ;;  %v2039_v62 = vsel %vm125_vm1, %v1985_v15, 0.0 }
 0x213   :  { %v1449_v24 = vmax.f32 %v1409_v43, 0.0  ;;  %v2352_v12 = vmul.f32 %v5283_v4, %v5489_v14  ;;  %v1406_v13 = vadd.f32 %v5177_v1, %v5374_v42  ;;  %v2347_v3 = vmul.f32 %v3359_v36, %v5489_v14 }
 0x214   :  { %v5518_v11 = vsel %vm1512_vm2, %v1554_v20, %v1553_v34  ;;  %v1559_v58 = vperm.slane %v1444_v56, %v5210_v28  ;;  %v1558_v4 = vperm.slane %v1443_v40, %v5215_v30  ;;  %v1445_v5 = vmax.f32 %v1405_v25, 0.0 }
 0x215   :  { %2025 = vadd.xlane.f32.xlu2 %v2024_v41  ;;  %2805 = vadd.xlane.f32.xlu1 %v2804_v9  ;;  %v1410_v41 = vadd.f32 %v5177_v1, %v1354_v37  ;;  %v2048_v9 = vsel %vm125_vm1, %v1988_v51, 0.0  ;;  %v2348_v37 = vmul.f32 %v5291_v49, %v5489_v14  ;;  %v1407_v42 = vadd.f32 %v5177_v1, %v5372_v50 }
 0x216   :  { %2802 = vadd.xlane.f32.xlu0 %v2801_v39  ;;  %v1448_v39 = vmax.f32 %v1408_v29, 0.0  ;;  %v1591_v49 = vsel %vm7086_vm9, %v1552_v8, %v1590_v44  ;;  %v1442_v2 = vmax.f32 %v1402_v7, 0.0  ;;  %v1569_v51 = vperm.slane %v1449_v24, %v5210_v28 }
 0x217   :  { %v1450_v18 = vmax.f32 %v1410_v41, 0.0  ;;  %v2402_v48 = vsel %vm125_vm1, %v2352_v12, 0.0  ;;  %v1446_v43 = vmax.f32 %v1406_v13, 0.0  ;;  %v2387_v50 = vsel %vm125_vm1, %v2347_v3, 0.0 }
 0x218   :  { %v1363_v0 = vpop.xlane.xlu2 %1362  ;;  %v1360_v21 = vpop.xlane.xlu1 %1359  ;;  %v1568_v15 = vperm.slane %v1448_v39, %v5215_v30  ;;  %v1560_v44 = vsel %vm1502_vm14, %v1559_v58, %v1558_v4  ;;  %v1561_v56 = vperm.slane %v1445_v5, %v5232_v38  ;;  %v5542_v39 = vld [vmem:[%s7015_s0 + $0x48] sm:$0xf]  ;;  %v1563_v58 = vperm.slane %v1445_v5, %v5235_v59  ;;  %v3362_v5 = vld [vmem:[%s7015_s0 + $0x30] sm:$0xff] }
 0x219   :  { %v1357_v61 = vpop.xlane.xlu0 %1356  ;;  %v1413_v23 = vadd.f32 %v5177_v1, %v1363_v0  ;;  %v2390_v0 = vsel %vm125_vm1, %v2348_v37, 0.0  ;;  %v1412_v40 = vadd.f32 %v5177_v1, %v1360_v21  ;;  %v1571_v8 = vperm.slane %v1450_v18, %v5232_v38  ;;  %v5551_v37 = vld [vmem:[%s7015_s0 + $0x20] sm:$0xf] }
 0x21a   :  { %v1411_v16 = vadd.f32 %v5177_v1, %v1357_v61  ;;  %v2725_v21 = vmul.f32 %v5542_v39, %v5159_v46  ;;  %v1564_v12 = vperm.slane %v1446_v43, %v5255_v6  ;;  %v2720_v36 = vmul.f32 %v5551_v37, %v5159_v46 }
 0x21b   :  { %v1453_v29 = vmax.f32 %v1413_v23, 0.0  ;;  %v1562_v3 = vsel %vm7077_vm13, %v1561_v56, %v1560_v44  ;;  %v1452_v4 = vmax.f32 %v1412_v40, 0.0  ;;  %v1556_v43 = vperm.slane %v1442_v2, %v5268_v19 }
 0x21c   :  { %v1451_v41 = vmax.f32 %v1411_v16, 0.0  ;;  %v2783_v2 = vsel %vm138_vm0, %v2725_v21, 0.0  ;;  %v1596_v21 = vsel %vm453_vm7, %v5450_v47, %v5438_v31  ;;  %v5608_v47 = vld [vmem:[%s7015_s0 + $0x88] sm:$0xff] }
 0x21d   :  { %2052 = vadd.xlane.f32.xlu2 %v2051_v10  ;;  %2049 = vadd.xlane.f32.xlu1 %v2048_v9  ;;  %v1447_v10 = vmax.f32 %v1407_v42, 0.0  ;;  %v1578_v13 = vperm.slane %v1453_v29, %v5215_v30  ;;  %v1573_v30 = vperm.slane %v1450_v18, %v5235_v59  ;;  %v1592_v18 = vsel %vm7093_vm10, %v1562_v3, %v1591_v49 }
 0x21e   :  { %2040 = vadd.xlane.f32.xlu0 %v2039_v62  ;;  %v1570_v62 = vsel %vm1502_vm14, %v1569_v51, %v1568_v15  ;;  %v1574_v51 = vperm.slane %v1451_v41, %v5255_v6  ;;  %v1576_v56 = vperm.slane %v1452_v4, %v5268_v19  ;;  %v1557_v41 = vsel %vm7115_vm3, %v1556_v43, %v5518_v11  ;;  %v5617_v4 = vld [vmem:[%s7015_s0 + $0x68] sm:$0xff] }
 0x21f   :  { %v1572_v16 = vsel %vm7077_vm13, %v1571_v8, %v1570_v62  ;;  %v2768_v8 = vsel %vm138_vm0, %v2720_v36, 0.0  ;;  %v5601_v36 = vld [vmem:[%s7015_s0 + $0xa0] sm:$0xff] }
 0x220   :  { %v1372_v20 = vpop.xlane.xlu2 %1371  ;;  %v1369_v34 = vpop.xlane.xlu1 %1368  ;;  %v1593_v44 = vsel %vm7103_vm11, %v1572_v16, %v1592_v18  ;;  %v2736_v31 = vmul.f32 %v5601_v36, %v5159_v46 }
 0x221   :  { %v1415_v25 = vadd.f32 %v5177_v1, %v1369_v34  ;;  %v1366_v61 = vpop.xlane.xlu0 %1365  ;;  %v1416_v7 = vadd.f32 %v5177_v1, %v1372_v20  ;;  %v1566_v20 = vperm.slane %v1447_v10, %v5268_v19 }
 0x222   :  { %v1414_v9 = vadd.f32 %v5177_v1, %v1366_v61  ;;  %v1575_v61 = vsel %vm1512_vm2, %v1574_v51, %v1573_v30 }
 0x223   :  { %v1455_v24 = vmax.f32 %v1415_v25, 0.0  ;;  %v1456_v29 = vmax.f32 %v1416_v7, 0.0  ;;  %v1577_v11 = vsel %vm7115_vm3, %v1576_v56, %v1575_v61 }
 0x224   :  { %v1454_v23 = vmax.f32 %v1414_v9, 0.0 }
 0x225   :  { %v1581_v42 = vperm.slane %v1455_v24, %v5232_v38  ;;  %2403 = vadd.xlane.f32.xlu2 %v2402_v48  ;;  %2391 = vadd.xlane.f32.xlu1 %v2390_v0  ;;  %v2353_v48 = vmul.f32 %v3362_v5, %v5489_v14  ;;  %v1584_v9 = vperm.slane %v1456_v29, %v5255_v6 }
 0x226   :  { %v1579_v15 = vperm.slane %v1454_v23, %v5210_v28  ;;  %2388 = vadd.xlane.f32.xlu0 %v2387_v50  ;;  %v1565_v50 = vsel %vm1512_vm2, %v1564_v12, %v1563_v58  ;;  %v1583_v62 = vperm.slane %v1455_v24, %v5235_v59 }
 0x227   :  { %v2405_v7 = vsel %vm125_vm1, %v2353_v48, 0.0  ;;  %v1567_v12 = vsel %vm7115_vm3, %v1566_v20, %v1565_v50  ;;  %v2816_v48 = vsel %vm125_vm1, %v2736_v31, 0.0  ;;  %v1629_v50 = vmul.f32 %v5601_v36, %v4990_v22 }
 0x228   :  { %v1580_v34 = vsel %vm1502_vm14, %v1579_v15, %v1578_v13  ;;  %v5570_v0 = vpop.xlane.xlu2 %1653  ;;  %v5572_v28 = vpop.xlane.xlu1 %1650  ;;  %v1597_v13 = vsel %vm455_vm8, %v5493_v35, %v1596_v21  ;;  %v2733_v35 = vmul.f32 %v5608_v47, %v5159_v46  ;;  %v1585_v58 = vsel %vm1512_vm2, %v1584_v9, %v1583_v62 }
 0x229   :  { %7188 = vst [vmem:[#allocation22_spill] sm:$0xff] %v5570_v0  ;;  %v1582_v40 = vsel %vm7077_vm13, %v1581_v42, %v1580_v34  ;;  %v1375_v25 = vpop.xlane.xlu0 %1374  ;;  %v1598_v24 = vsel %vm7086_vm9, %v1557_v41, %v1597_v13  ;;  %v2729_v42 = vmul.f32 %v5617_v4, %v5159_v46  ;;  %v5636_v34 = vld [vmem:[%s7015_s0 + $0xa8] sm:$0xff]  ;;  %v1986_v9 = vmul.f32 %v5350_v57, %v5203_v53 }
 0x22a   :  { %7189 = vst [vmem:[#allocation27_spill] sm:$0xff] %v5572_v28  ;;  %v1594_v49 = vsel %vm7078_vm12, %v1582_v40, %v1593_v44  ;;  %v1417_v10 = vadd.f32 %v5177_v1, %v1375_v25  ;;  %v1599_v3 = vsel %vm7093_vm10, %v1567_v12, %v1598_v24  ;;  %v2807_v20 = vsel %vm125_vm1, %v2733_v35, 0.0 }
 0x22b   :  { %1605 = vst.msk [vmem:[#allocation2] sm:$0xff] %vm1604_vm15, %v1594_v49  ;;  %vm1606_vm15 = vcmask 130048   ;;  %v1600_v30 = vsel %vm7103_vm11, %v1577_v11, %v1599_v3  ;;  %v2795_v18 = vsel %vm125_vm1, %v2729_v42, 0.0  ;;  %v2737_v44 = vmul.f32 %v5636_v34, %v5159_v46 }
 0x22c   :  { %v1457_v1 = vmax.f32 %v1417_v10, 0.0  ;;  %v1709_v49 = vsel %vm125_vm1, %v1629_v50, 0.0  ;;  %v1981_v62 = vmul.f32 %v5361_v32, %v5203_v53  ;;  %v2042_v13 = vsel %vm125_vm1, %v1986_v9, 0.0  ;;  %v5720_v9 = vld [vmem:[%s7015_s0 + $0x70] sm:$0xf] }
 0x22d   :  { %2784 = vadd.xlane.f32.xlu2 %v2783_v2  ;;  %2769 = vadd.xlane.f32.xlu1 %v2768_v8  ;;  %v1630_v2 = vmul.f32 %v5636_v34, %v4990_v22  ;;  %v2819_v10 = vsel %vm125_vm1, %v2737_v44, 0.0  ;;  %v5656_v8 = vld [vmem:[%s7015_s0 + $0x60] sm:$0xff]  ;;  %v2349_v24 = vmul.f32 %v5410_v17, %v5489_v14  ;;  %v1993_v31 = vmul.f32 %v5425_v54, %v5203_v53 }
 0x22e   :  { %v1586_v23 = vperm.slane %v1457_v1, %v5268_v19  ;;  %2406 = vadd.xlane.f32.xlu0 %v2405_v7  ;;  %v1990_v41 = vmul.f32 %v5656_v8, %v5203_v53  ;;  %v2027_v11 = vsel %vm125_vm1, %v1981_v62, 0.0  ;;  %v2358_v17 = vmul.f32 %v5465_v55, %v5489_v14  ;;  %7204 = vst [vmem:[#allocation33_spill] sm:$0xff] %v5720_v9 }
 0x22f   :  { %v1712_v61 = vsel %vm125_vm1, %v1630_v2, 0.0  ;;  %v2393_v42 = vsel %vm125_vm1, %v2349_v24, 0.0  ;;  %v5696_v2 = vstv %s3291_s15  ;;  %v2730_v62 = vmul.f32 %v5720_v9, %v5159_v46  ;;  %s3278_s15 = sshll.u32 %s7023_s8, 4  ;;  %s3279_s15 = int_to_ptr.hbm [resolvable:$true] %s3278_s15 }
 0x230   :  { %v1587_v16 = vsel %vm7115_vm3, %v1586_v23, %v1585_v58  ;;  %v5623_v51 = vpop.xlane.xlu2 %1662  ;;  %v5625_v15 = vpop.xlane.xlu1 %1659  ;;  %v2054_v1 = vsel %vm125_vm1, %v1990_v41, 0.0  ;;  %v1994_v23 = vmul.f32 %v5417_v45, %v5203_v53  ;;  %v2420_v50 = vsel %vm125_vm1, %v2358_v17, 0.0 }
 0x231   :  { %7190 = vst [vmem:[#allocation24_spill] sm:$0xff] %v5623_v51  ;;  %v1601_v43 = vsel %vm7078_vm12, %v1587_v16, %v1600_v30  ;;  %v5628_v29 = vpop.xlane.xlu0 %1656  ;;  %v2063_v16 = vsel %vm125_vm1, %v1993_v31, 0.0  ;;  %vm7087_vm14 = vcmask 392512   ;;  %vm7213_vm13 = vcmask 556512  }
 0x232   :  { %7191 = vst [vmem:[#allocation25_spill] sm:$0xff] %v5625_v15  ;;  %v3101_v5 = vld [vmem:[#allocation2] sm:$0xff]  ;;  %v2066_v30 = vsel %vm125_vm1, %v1994_v23, 0.0  ;;  %v5725_v23 = vadd.s32 4294967256, %v7187_v52  ;;  %vm7214_vm12 = vmmov %vm7213_vm13 }
 0x233   :  { %7192 = vst [vmem:[#allocation28_spill] sm:$0xff] %v5628_v29  ;;  %3163 = vmatmul.f32.vlgmr.msra.gmra.mxu0 %v3101_v5  ;;  %v2354_v5 = vmul.f32 %v5481_v60, %v5489_v14 }
 0x234   :  { %1607 = vst.msk [vmem:[#allocation2 + $0x8] sm:$0xff] %vm1606_vm15, %v1601_v43  ;;  %v2357_v43 = vmul.f32 %v5474_v27, %v5489_v14  ;;  %v5706_v27 = vld [vmem:[%s7015_s0 + $0xb0] sm:$0xff]  ;;  %vm7079_vm15 = vcmask 458112  }
 0x235   :  { %2817 = vadd.xlane.f32.xlu2 %v2816_v48  ;;  %2808 = vadd.xlane.f32.xlu1 %v2807_v20  ;;  %v2738_v60 = vmul.f32 %v5706_v27, %v5159_v46  ;;  %7205 = vst [vmem:[#allocation34_spill] sm:$0xff] %v5725_v23 }
 0x236   :  { %2796 = vadd.xlane.f32.xlu0 %v2795_v18  ;;  %v2417_v44 = vsel %vm125_vm1, %v2357_v43, 0.0 }
 0x237   :  { %v2822_v17 = vsel %vm125_vm1, %v2738_v60, 0.0 }
 0x238   :  { %v5644_v56 = vpop.xlane.xlu2 %1671  ;;  %v5646_v40 = vpop.xlane.xlu1 %1668 }
 0x239   :  { %7193 = vst [vmem:[#allocation12_spill] sm:$0xff] %v5644_v56  ;;  %v5648_v25 = vpop.xlane.xlu0 %1665  ;;  %v7212_v56 = vld [vmem:[#allocation10_spill] sm:$0xff] }
 0x23a   :  { %7194 = vst [vmem:[#allocation11_spill] sm:$0xff] %v5646_v40 }
 0x23b   :  { %7195 = vst [vmem:[#allocation20_spill] sm:$0xff] %v5648_v25 }
 0x23d   :  { %1713 = vadd.xlane.f32.xlu2 %v1712_v61  ;;  %1710 = vadd.xlane.f32.xlu1 %v1709_v49  ;;  %v2408_v49 = vsel %vm125_vm1, %v2354_v5, 0.0  ;;  %v2798_v5 = vsel %vm138_vm0, %v2730_v62, 0.0 }
 0x23e   :  { %2820 = vadd.xlane.f32.xlu0 %v2819_v10  ;;  %v5713_v10 = vld [vmem:[%s7015_s0 + $0x90] sm:$0xff] }
 0x23f   :  { %7203 = vst [vmem:[#allocation16_spill] sm:$0xff] %v5713_v10  ;;  %v2734_v41 = vmul.f32 %v5713_v10, %v5159_v46 }
 0x240   :  { %v5664_v7 = vpop.xlane.xlu2 %1680  ;;  %v5666_v21 = vpop.xlane.xlu1 %1677 }
 0x241   :  { %7196 = vst [vmem:[#allocation15_spill] sm:$0xff] %v5664_v7  ;;  %v5668_v12 = vpop.xlane.xlu0 %1674  ;;  %v2810_v43 = vsel %vm125_vm1, %v2734_v41, 0.0  ;;  %v7209_v41 = vld [vmem:[#allocation32_spill] sm:$0xff] }
 0x242   :  { %7197 = vst [vmem:[#allocation17_spill] sm:$0xff] %v5666_v21 }
 0x243   :  { %7198 = vst [vmem:[#allocation23_spill] sm:$0xff] %v5668_v12 }
 0x245   :  { %2055 = vadd.xlane.f32.xlu2 %v2054_v1  ;;  %2043 = vadd.xlane.f32.xlu1 %v2042_v13 }
 0x246   :  { %2028 = vadd.xlane.f32.xlu0 %v2027_v11 }
 0x248   :  { %v5679_v35 = vpop.xlane.xlu2 %1689  ;;  %v5681_v3 = vpop.xlane.xlu1 %1686 }
 0x249   :  { %7199 = vst [vmem:[#allocation18_spill] sm:$0xff] %v5679_v35  ;;  %v5683_v58 = vpop.xlane.xlu0 %1683 }
 0x24a   :  { %7200 = vst [vmem:[#allocation13_spill] sm:$0xff] %v5681_v3 }
 0x24b   :  { %7201 = vst [vmem:[#allocation19_spill] sm:$0xff] %v5683_v58 }
 0x24d   :  { %2394 = vadd.xlane.f32.xlu2 %v2393_v42  ;;  %2067 = vadd.xlane.f32.xlu1 %v2066_v30 }
 0x24e   :  { %2064 = vadd.xlane.f32.xlu0 %v2063_v16 }
 0x250   :  { %v1699_v48 = vpop.xlane.xlu2 %1698  ;;  %v1696_v20 = vpop.xlane.xlu1 %1695 }
 0x251   :  { %v5694_v18 = vpop.xlane.xlu0 %1692  ;;  %v1787_v61 = vadd.f32 %v5696_v2, %v1699_v48  ;;  %v1786_v55 = vadd.f32 %v5696_v2, %v1696_v20  ;;  %v7206_v48 = vld [vmem:[#allocation31_spill] sm:$0xff] }
 0x252   :  { %7202 = vst [vmem:[#allocation26_spill] sm:$0xff] %v5694_v18 }
 0x253   :  { %v1827_v1 = vmax.f32 %v1787_v61, 0.0  ;;  %v1826_v13 = vmax.f32 %v1786_v55, 0.0 }
 0x255   :  { %2421 = vadd.xlane.f32.xlu2 %v2420_v50  ;;  %2418 = vadd.xlane.f32.xlu1 %v2417_v44  ;;  %v1923_v20 = vperm.slane %v1827_v1, %v7206_v48  ;;  %v7207_v50 = vld [vmem:[#allocation30_spill] sm:$0xff]  ;;  %v1631_v1 = vmul.f32 %v5706_v27, %v4990_v22 }
 0x256   :  { %2409 = vadd.xlane.f32.xlu0 %v2408_v49  ;;  %v1922_v44 = vperm.slane %v1826_v13, %v7207_v50  ;;  %v5736_v49 = vadd.s32 4294967248, %v7187_v52  ;;  %v5748_v13 = vld [vmem:[%s7015_s0 + $0xd0] sm:$0xff] }
 0x257   :  { %v1715_v35 = vsel %vm125_vm1, %v1631_v1, 0.0  ;;  %v1982_v1 = vmul.f32 %v5551_v37, %v5203_v53 }
 0x258   :  { %v1708_v11 = vpop.xlane.xlu2 %1707  ;;  %v1705_v24 = vpop.xlane.xlu1 %1704  ;;  %7208 = vst [vmem:[#allocation30_spill] sm:$0xff] %v5736_v49 }
 0x259   :  { %v1790_v31 = vadd.f32 %v5696_v2, %v1708_v11  ;;  %v1789_v42 = vadd.f32 %v5696_v2, %v1705_v24  ;;  %v1702_v30 = vpop.xlane.xlu0 %1701 }
 0x25a   :  { %v1788_v16 = vadd.f32 %v5696_v2, %v1702_v30  ;;  %v5739_v30 = vstv %s3294_s16 }
 0x25b   :  { %v1830_v61 = vmax.f32 %v1790_v31, 0.0  ;;  %v1829_v55 = vmax.f32 %v1789_v42, 0.0  ;;  %v2742_v31 = vmul.f32 %v5748_v13, %v5159_v46  ;;  %v1924_v42 = vsel %vm7116_vm4, %v1923_v20, %v1922_v44 }
 0x25c   :  { %v1828_v11 = vmax.f32 %v1788_v16, 0.0  ;;  %v5756_v16 = vld [vmem:[%s7015_s0 + $0xc8] sm:$0xff] }
 0x25d   :  { %v1927_v24 = vperm.slane %v1829_v55, %v5725_v23  ;;  %2823 = vadd.xlane.f32.xlu2 %v2822_v17  ;;  %2811 = vadd.xlane.f32.xlu1 %v2810_v43  ;;  %v1929_v60 = vperm.slane %v1830_v61, %v5736_v49  ;;  %v2741_v17 = vmul.f32 %v5756_v16, %v5159_v46  ;;  %v2834_v21 = vsel %vm125_vm1, %v2742_v31, 0.0 }
 0x25e   :  { %v1925_v62 = vperm.slane %v1828_v11, %v7209_v41  ;;  %2799 = vadd.xlane.f32.xlu0 %v2798_v5  ;;  %v1635_v31 = vmul.f32 %v5748_v13, %v4990_v22 }
 0x25f   :  { %v2831_v3 = vsel %vm125_vm1, %v2741_v17, 0.0 }
 0x260   :  { %v1926_v43 = vsel %vm386_vm5, %v1925_v62, %v1924_v42  ;;  %v2773_v5 = vpop.xlane.xlu2 %2772  ;;  %v2761_v61 = vpop.xlane.xlu1 %2760 }
 0x261   :  { %v1928_v55 = vsel %vm7087_vm14, %v1927_v24, %v1926_v43  ;;  %v2883_v11 = vadd.f32 %v5739_v30, %v2773_v5  ;;  %v2879_v20 = vadd.f32 %v5739_v30, %v2761_v61  ;;  %v2758_v44 = vpop.xlane.xlu0 %2757  ;;  %vm7228_vm14 = vcmask 556512  }
 0x262   :  { %v5765_v49 = vsel %vm7079_vm15, %v1929_v60, %v1928_v55  ;;  %v2878_v18 = vadd.f32 %v5739_v30, %v2758_v44  ;;  %v1727_v44 = vsel %vm125_vm1, %v1635_v31, 0.0  ;;  %v1991_v31 = vmul.f32 %v5617_v4, %v5203_v53 }
 0x263   :  { %7210 = vst [vmem:[#allocation32_spill] sm:$0xff] %v5765_v49  ;;  %v2923_v62 = vmax.f32 %v2883_v11, 0.0  ;;  %v2919_v42 = vmax.f32 %v2879_v20, 0.0  ;;  %v2030_v20 = vsel %vm138_vm0, %v1982_v1, 0.0  ;;  %v1995_v1 = vmul.f32 %v5608_v47, %v5203_v53 }
 0x264   :  { %v2918_v12 = vmax.f32 %v2878_v18, 0.0  ;;  %v1634_v18 = vmul.f32 %v5756_v16, %v4990_v22  ;;  %vm7220_vm15 = vcmask 622112  }
 0x265   :  { %v3012_v24 = vperm.slane %v2923_v62, %v5232_v38  ;;  %v3000_v43 = vperm.slane %v2919_v42, %v5255_v6  ;;  %1716 = vadd.xlane.f32.xlu2 %v1715_v35  ;;  %2835 = vadd.xlane.f32.xlu1 %v2834_v21 }
 0x266   :  { %v2998_v60 = vperm.slane %v2918_v12, %v5232_v38  ;;  %v2999_v5 = vperm.slane %v2918_v12, %v5235_v59  ;;  %2832 = vadd.xlane.f32.xlu0 %v2831_v3 }
 0x268   :  { %v3001_v17 = vsel %vm1512_vm2, %v3000_v43, %v2999_v5  ;;  %v3082_v61 = vsel %vm451_vm6, %v3012_v24, %v2998_v60  ;;  %v2779_v35 = vpop.xlane.xlu2 %2778  ;;  %v2764_v21 = vpop.xlane.xlu1 %2763  ;;  %v1724_v43 = vsel %vm125_vm1, %v1634_v18, 0.0  ;;  %v3013_v24 = vperm.slane %v2923_v62, %v5235_v59 }
 0x269   :  { %v2885_v55 = vadd.f32 %v5739_v30, %v2779_v35  ;;  %v2880_v12 = vadd.f32 %v5739_v30, %v2764_v21  ;;  %v2776_v3 = vpop.xlane.xlu0 %2775  ;;  %v1987_v62 = vmul.f32 %v5542_v39, %v5203_v53 }
 0x26a   :  { %v2884_v11 = vadd.f32 %v5739_v30, %v2776_v3  ;;  %v5803_v3 = vstv %s3292_s26 }
 0x26b   :  { %v2925_v42 = vmax.f32 %v2885_v55, 0.0  ;;  %v2920_v49 = vmax.f32 %v2880_v12, 0.0 }
 0x26c   :  { %v2924_v60 = vmax.f32 %v2884_v11, 0.0 }
 0x26d   :  { %v3016_v5 = vperm.slane %v2925_v42, %v5268_v19  ;;  %v3002_v35 = vperm.slane %v2920_v49, %v5268_v19  ;;  %2031 = vadd.xlane.f32.xlu2 %v2030_v20  ;;  %1728 = vadd.xlane.f32.xlu1 %v1727_v44 }
 0x26e   :  { %v3014_v21 = vperm.slane %v2924_v60, %v5255_v6  ;;  %1725 = vadd.xlane.f32.xlu0 %v1724_v43  ;;  %v2057_v43 = vsel %vm125_vm1, %v1991_v31, 0.0  ;;  %v1999_v31 = vmul.f32 %v5636_v34, %v5203_v53 }
 0x26f   :  { %v5798_v18 = vsel %vm7115_vm3, %v3002_v35, %v3001_v17  ;;  %v2069_v17 = vsel %vm125_vm1, %v1995_v1, 0.0  ;;  %v2045_v35 = vsel %vm138_vm0, %v1987_v62, 0.0  ;;  %v2350_v1 = vmul.f32 %v5361_v32, %v5489_v14 }
 0x270   :  { %v3015_v55 = vsel %vm1512_vm2, %v3014_v21, %v3013_v24  ;;  %v2020_v49 = vpop.xlane.xlu2 %2019  ;;  %v2791_v12 = vpop.xlane.xlu1 %2790  ;;  %v1998_v62 = vmul.f32 %v5601_v36, %v5203_v53 }
 0x271   :  { %v2889_v11 = vadd.f32 %v5739_v30, %v2791_v12  ;;  %v2788_v20 = vpop.xlane.xlu0 %2787  ;;  %v5807_v44 = vsel %vm7115_vm3, %v3016_v5, %v3015_v55  ;;  %v2140_v24 = vadd.f32 %v5803_v3, %v2020_v49 }
 0x272   :  { %v2888_v42 = vadd.f32 %v5739_v30, %v2788_v20 }
 0x273   :  { %v2929_v60 = vmax.f32 %v2889_v11, 0.0  ;;  %v2180_v55 = vmax.f32 %v2140_v24, 0.0 }
 0x274   :  { %v2928_v21 = vmax.f32 %v2888_v42, 0.0 }
 0x275   :  { %v3024_v58 = vperm.slane %v2929_v60, %v5255_v6  ;;  %2070 = vadd.xlane.f32.xlu2 %v2069_v17  ;;  %2058 = vadd.xlane.f32.xlu1 %v2057_v43 }
 0x276   :  { %v3022_v12 = vperm.slane %v2928_v21, %v5232_v38  ;;  %v3023_v5 = vperm.slane %v2928_v21, %v5235_v59  ;;  %2046 = vadd.xlane.f32.xlu0 %v2045_v35  ;;  %v2396_v35 = vsel %vm125_vm1, %v2350_v1, 0.0  ;;  %v2081_v21 = vsel %vm125_vm1, %v1999_v31, 0.0 }
 0x277   :  { %v2362_v1 = vmul.f32 %v5425_v54, %v5489_v14  ;;  %v2359_v31 = vmul.f32 %v5656_v8, %v5489_v14 }
 0x278   :  { %v3025_v49 = vsel %vm1512_vm2, %v3024_v58, %v3023_v5  ;;  %v5825_v11 = vsel %vm453_vm7, %v3022_v12, %v3082_v61  ;;  %v2038_v20 = vpop.xlane.xlu2 %2037  ;;  %v2035_v42 = vpop.xlane.xlu1 %2034  ;;  %v2078_v58 = vsel %vm125_vm1, %v1998_v62, 0.0  ;;  %v7211_v5 = vld [vmem:[#allocation14_spill] sm:$0xff] }
 0x279   :  { %v2146_v17 = vadd.f32 %v5803_v3, %v2038_v20  ;;  %v2145_v43 = vadd.f32 %v5803_v3, %v2035_v42  ;;  %v2023_v60 = vpop.xlane.xlu0 %2022  ;;  %v2260_v61 = vperm.slane %v2180_v55, %v7211_v5  ;;  %v2355_v55 = vmul.f32 %v5350_v57, %v5489_v14 }
 0x27a   :  { %v2141_v32 = vadd.f32 %v5803_v3, %v2023_v60 }
 0x27b   :  { %v2186_v7 = vmax.f32 %v2146_v17, 0.0  ;;  %v2185_v24 = vmax.f32 %v2145_v43, 0.0 }
 0x27c   :  { %v2181_v12 = vmax.f32 %v2141_v32, 0.0  ;;  %v5849_v32 = vadd.s32 4294967276, %v7187_v52 }
 0x27d   :  { %v2274_v25 = vperm.slane %v2186_v7, %v7212_v56  ;;  %v2273_v20 = vperm.slane %v2185_v24, %v7211_v5  ;;  %2397 = vadd.xlane.f32.xlu2 %v2396_v35  ;;  %2082 = vadd.xlane.f32.xlu1 %v2081_v21  ;;  %v2423_v21 = vsel %vm125_vm1, %v2359_v31, 0.0 }
 0x27e   :  { %v2261_v42 = vperm.slane %v2181_v12, %v7212_v56  ;;  %2079 = vadd.xlane.f32.xlu0 %v2078_v58  ;;  %v2411_v58 = vsel %vm125_vm1, %v2355_v55, 0.0  ;;  %v5869_v55 = vld [vmem:[%s7015_s0 + $0x98] sm:$0xf] }
 0x27f   :  { %v5842_v62 = vsel %vm7213_vm13, %v2274_v25, %v2273_v20  ;;  %v2432_v25 = vsel %vm125_vm1, %v2362_v1, 0.0  ;;  %v5862_v1 = vld [vmem:[%s7015_s0 + $0xb8] sm:$0xff]  ;;  %vm7216_vm13 = vcmask 622112  }
 0x280   :  { %v2262_v7 = vsel %vm7214_vm12, %v2261_v42, %v2260_v61  ;;  %v2794_v17 = vpop.xlane.xlu2 %2793  ;;  %v2782_v43 = vpop.xlane.xlu1 %2781  ;;  %vm3006_vm12 = vcmask 228512   ;;  %v2739_v31 = vmul.f32 %v5862_v1, %v5159_v46 }
 0x281   :  { %v2890_v60 = vadd.f32 %v5739_v30, %v2794_v17  ;;  %v2886_v54 = vadd.f32 %v5739_v30, %v2782_v43  ;;  %v2767_v35 = vpop.xlane.xlu0 %2766  ;;  %v2735_v17 = vmul.f32 %v5869_v55, %v5159_v46 }
 0x282   :  { %v2881_v8 = vadd.f32 %v5739_v30, %v2767_v35 }
 0x283   :  { %v2930_v24 = vmax.f32 %v2890_v60, 0.0  ;;  %v2926_v57 = vmax.f32 %v2886_v54, 0.0  ;;  %v2363_v54 = vmul.f32 %v5417_v45, %v5489_v14 }
 0x284   :  { %v2921_v61 = vmax.f32 %v2881_v8, 0.0 }
 0x285   :  { %v3026_v12 = vperm.slane %v2930_v24, %v5268_v19  ;;  %v3018_v20 = vperm.slane %v2926_v57, %v5849_v32  ;;  %2433 = vadd.xlane.f32.xlu2 %v2432_v25  ;;  %2424 = vadd.xlane.f32.xlu1 %v2423_v21  ;;  %v2435_v45 = vsel %vm125_vm1, %v2363_v54, 0.0  ;;  %v5906_v54 = vld [vmem:[%s7015_s0 + $0xf0] sm:$0xff] }
 0x286   :  { %v3005_v42 = vperm.slane %v2921_v61, %v5849_v32  ;;  %2412 = vadd.xlane.f32.xlu0 %v2411_v58  ;;  %v2825_v58 = vsel %vm125_vm1, %v2739_v31, 0.0  ;;  %v5899_v31 = vld [vmem:[%s7015_s0 + $0xf8] sm:$0xff] }
 0x287   :  { %v5874_v43 = vsel %vm7115_vm3, %v3026_v12, %v3025_v49  ;;  %v5878_v60 = vsel %vm3006_vm12, %v3018_v20, %v5807_v44  ;;  %v2813_v44 = vsel %vm138_vm0, %v2735_v17, 0.0  ;;  %v2747_v17 = vmul.f32 %v5899_v31, %v5159_v46 }
 0x288   :  { %v5884_v35 = vsel %vm3006_vm12, %v3005_v42, %v5798_v18  ;;  %v2026_v8 = vpop.xlane.xlu2 %2025  ;;  %v2806_v25 = vpop.xlane.xlu1 %2805  ;;  %v7215_v18 = vld [vmem:[#allocation9_spill] sm:$0xff] }
 0x289   :  { %v2142_v21 = vadd.f32 %v5803_v3, %v2026_v8  ;;  %v2894_v24 = vadd.f32 %v5739_v30, %v2806_v25  ;;  %v2803_v57 = vpop.xlane.xlu0 %2802  ;;  %v2849_v51 = vsel %vm125_vm1, %v2747_v17, 0.0  ;;  %v1639_v17 = vmul.f32 %v5906_v54, %v4990_v22 }
 0x28a   :  { %v2893_v49 = vadd.f32 %v5739_v30, %v2803_v57  ;;  %v5916_v57 = vld [vmem:[%s7015_s0 + $0xd8] sm:$0xff] }
 0x28b   :  { %v2182_v61 = vmax.f32 %v2142_v21, 0.0  ;;  %v2934_v12 = vmax.f32 %v2894_v24, 0.0  ;;  %v2746_v21 = vmul.f32 %v5906_v54, %v5159_v46  ;;  %7217 = vst [vmem:[#allocation35_spill] sm:$0xff] %v5916_v57 }
 0x28c   :  { %v2933_v20 = vmax.f32 %v2893_v49, 0.0  ;;  %v2743_v49 = vmul.f32 %v5916_v57, %v5159_v46 }
 0x28d   :  { %v2263_v42 = vperm.slane %v2182_v61, %v7215_v18  ;;  %v3034_v40 = vperm.slane %v2934_v12, %v5255_v6  ;;  %2826 = vadd.xlane.f32.xlu2 %v2825_v58  ;;  %2814 = vadd.xlane.f32.xlu1 %v2813_v44  ;;  %v2846_v15 = vsel %vm125_vm1, %v2746_v21, 0.0  ;;  %v1636_v21 = vmul.f32 %v5916_v57, %v4990_v22 }
 0x28e   :  { %v3032_v8 = vperm.slane %v2933_v20, %v5232_v38  ;;  %v3033_v25 = vperm.slane %v2933_v20, %v5235_v59  ;;  %2436 = vadd.xlane.f32.xlu0 %v2435_v45 }
 0x28f   :  { %v5911_v24 = vsel %vm7216_vm13, %v2263_v42, %v2262_v7  ;;  %vm7219_vm13 = vcmask 556512  }
 0x290   :  { %v5921_v58 = vsel %vm1512_vm2, %v3034_v40, %v3033_v25  ;;  %v5925_v44 = vsel %vm455_vm8, %v3032_v8, %v5825_v11  ;;  %v2053_v61 = vpop.xlane.xlu2 %2052  ;;  %v2050_v12 = vpop.xlane.xlu1 %2049  ;;  %v2837_v25 = vsel %vm125_vm1, %v2743_v49, 0.0 }
 0x291   :  { %v2151_v7 = vadd.f32 %v5803_v3, %v2053_v61  ;;  %v2150_v45 = vadd.f32 %v5803_v3, %v2050_v12  ;;  %v2041_v20 = vpop.xlane.xlu0 %2040  ;;  %v5936_v12 = vstv %s3293_s13 }
 0x292   :  { %v2147_v42 = vadd.f32 %v5803_v3, %v2041_v20  ;;  %7218 = vst [vmem:[#allocation36_spill] sm:$0xff] %v5936_v12 }
 0x293   :  { %v2191_v29 = vmax.f32 %v2151_v7, 0.0  ;;  %v2190_v40 = vmax.f32 %v2150_v45, 0.0 }
 0x294   :  { %v2187_v28 = vmax.f32 %v2147_v42, 0.0  ;;  %v1739_v42 = vsel %vm125_vm1, %v1639_v17, 0.0  ;;  %v1992_v17 = vmul.f32 %v5720_v9, %v5203_v53 }
 0x295   :  { %v2283_v11 = vperm.slane %v2191_v29, %v7212_v56  ;;  %v2282_v8 = vperm.slane %v2190_v40, %v7211_v5  ;;  %2850 = vadd.xlane.f32.xlu2 %v2849_v51  ;;  %2847 = vadd.xlane.f32.xlu1 %v2846_v15  ;;  %v1632_v29 = vmul.f32 %v5862_v1, %v4990_v22  ;;  %v1730_v40 = vsel %vm125_vm1, %v1636_v21, 0.0 }
 0x296   :  { %v2276_v61 = vperm.slane %v2187_v28, %v7215_v18  ;;  %2838 = vadd.xlane.f32.xlu0 %v2837_v25  ;;  %v1640_v21 = vmul.f32 %v5899_v31, %v4990_v22  ;;  %v2060_v23 = vsel %vm138_vm0, %v1992_v17, 0.0  ;;  %v2003_v17 = vmul.f32 %v5756_v16, %v5203_v53 }
 0x297   :  { %v5943_v49 = vsel %vm7219_vm13, %v2283_v11, %v2282_v8  ;;  %v1718_v11 = vsel %vm125_vm1, %v1632_v29, 0.0  ;;  %vm3010_vm13 = vcmask 294112  }
 0x298   :  { %v5949_v51 = vsel %vm7220_vm15, %v2276_v61, %v5842_v62  ;;  %v2404_v28 = vpop.xlane.xlu2 %2403  ;;  %v2392_v15 = vpop.xlane.xlu1 %2391  ;;  %vm7221_vm15 = vcmask 851712  }
 0x299   :  { %v2510_v7 = vadd.f32 %v5936_v12, %v2392_v15  ;;  %v2389_v45 = vpop.xlane.xlu0 %2388  ;;  %v2514_v8 = vadd.f32 %v5936_v12, %v2404_v28  ;;  %v1996_v15 = vmul.f32 %v5713_v10, %v5203_v53 }
 0x29a   :  { %v2509_v20 = vadd.f32 %v5936_v12, %v2389_v45 }
 0x29b   :  { %v2550_v25 = vmax.f32 %v2510_v7, 0.0  ;;  %v2554_v29 = vmax.f32 %v2514_v8, 0.0 }
 0x29c   :  { %v2549_v0 = vmax.f32 %v2509_v20, 0.0  ;;  %v5969_v20 = vadd.s32 4294967268, %v7187_v52 }
 0x29d   :  { %v2630_v62 = vperm.slane %v2550_v25, %v4853_v26  ;;  %1740 = vadd.xlane.f32.xlu2 %v1739_v42  ;;  %1731 = vadd.xlane.f32.xlu1 %v1730_v40 }
 0x29e   :  { %v2629_v61 = vperm.slane %v2549_v0, %v4864_v33  ;;  %1719 = vadd.xlane.f32.xlu0 %v1718_v11  ;;  %v2072_v11 = vsel %vm125_vm1, %v1996_v15, 0.0  ;;  %v2004_v15 = vmul.f32 %v5748_v13, %v5203_v53 }
 0x2a0   :  { %v5966_v28 = vsel %vm7221_vm15, %v2630_v62, %v2629_v61  ;;  %v2785_v7 = vpop.xlane.xlu2 %2784  ;;  %v2770_v45 = vpop.xlane.xlu1 %2769  ;;  %v1742_v62 = vsel %vm125_vm1, %v1640_v21, 0.0  ;;  %v2642_v61 = vperm.slane %v2554_v29, %v4864_v33 }
 0x2a1   :  { %v2887_v0 = vadd.f32 %v5739_v30, %v2785_v7  ;;  %v2882_v42 = vadd.f32 %v5739_v30, %v2770_v45  ;;  %v2407_v40 = vpop.xlane.xlu0 %2406 }
 0x2a2   :  { %v2515_v25 = vadd.f32 %v5936_v12, %v2407_v40 }
 0x2a3   :  { %v2927_v8 = vmax.f32 %v2887_v0, 0.0  ;;  %v2922_v9 = vmax.f32 %v2882_v42, 0.0 }
 0x2a4   :  { %v2555_v10 = vmax.f32 %v2515_v25, 0.0 }
 0x2a5   :  { %v3020_v57 = vperm.slane %v2927_v8, %v5969_v20  ;;  %v3009_v7 = vperm.slane %v2922_v9, %v5969_v20  ;;  %2073 = vadd.xlane.f32.xlu2 %v2072_v11  ;;  %2061 = vadd.xlane.f32.xlu1 %v2060_v23  ;;  %v2000_v9 = vmul.f32 %v5706_v27, %v5203_v53 }
 0x2a6   :  { %v2643_v45 = vperm.slane %v2555_v10, %v4853_v26  ;;  %1743 = vadd.xlane.f32.xlu0 %v1742_v62 }
 0x2a7   :  { %v3021_v21 = vsel %vm3010_vm13, %v3020_v57, %v5878_v60  ;;  %v3011_v29 = vsel %vm3010_vm13, %v3009_v7, %v5884_v35  ;;  %v2096_v35 = vsel %vm125_vm1, %v2004_v15, 0.0  ;;  %v2093_v57 = vsel %vm125_vm1, %v2003_v17, 0.0 }
 0x2a8   :  { %v5992_v23 = vsel %vm451_vm6, %v3021_v21, %v3011_v29  ;;  %v5995_v10 = vsel %vm7221_vm15, %v2643_v45, %v2642_v61  ;;  %v2818_v0 = vpop.xlane.xlu2 %2817  ;;  %v2809_v42 = vpop.xlane.xlu1 %2808  ;;  %v2084_v7 = vsel %vm125_vm1, %v2000_v9, 0.0  ;;  %v2356_v15 = vmul.f32 %v5542_v39, %v5489_v14 }
 0x2a9   :  { %v2898_v40 = vadd.f32 %v5739_v30, %v2818_v0  ;;  %v2895_v25 = vadd.f32 %v5739_v30, %v2809_v42  ;;  %v2797_v11 = vpop.xlane.xlu0 %2796  ;;  %v2360_v0 = vmul.f32 %v5617_v4, %v5489_v14  ;;  %v2351_v42 = vmul.f32 %v5551_v37, %v5489_v14 }
 0x2aa   :  { %v2891_v60 = vadd.f32 %v5739_v30, %v2797_v11  ;;  %vm2267_vm15 = vcmask 687712  }
 0x2ab   :  { %v2938_v8 = vmax.f32 %v2898_v40, 0.0  ;;  %v2935_v62 = vmax.f32 %v2895_v25, 0.0  ;;  %v2399_v37 = vsel %vm138_vm0, %v2351_v42, 0.0 }
 0x2ac   :  { %v2931_v21 = vmax.f32 %v2891_v60, 0.0 }
 0x2ad   :  { %v3042_v61 = vperm.slane %v2938_v8, %v5232_v38  ;;  %v3036_v45 = vperm.slane %v2935_v62, %v5268_v19  ;;  %2097 = vadd.xlane.f32.xlu2 %v2096_v35  ;;  %2094 = vadd.xlane.f32.xlu1 %v2093_v57  ;;  %v2426_v35 = vsel %vm125_vm1, %v2360_v0, 0.0  ;;  %v3043_v62 = vperm.slane %v2938_v8, %v5235_v59 }
 0x2ae   :  { %v3028_v29 = vperm.slane %v2931_v21, %v5849_v32  ;;  %2085 = vadd.xlane.f32.xlu0 %v2084_v7  ;;  %v2367_v0 = vmul.f32 %v5601_v36, %v5489_v14  ;;  %v2364_v8 = vmul.f32 %v5608_v47, %v5489_v14 }
 0x2af   :  { %v6012_v17 = vsel %vm7086_vm9, %v3042_v61, %v5925_v44  ;;  %v6016_v9 = vsel %vm7115_vm3, %v3036_v45, %v5921_v58  ;;  %v2414_v58 = vsel %vm138_vm0, %v2356_v15, 0.0  ;;  %vm7224_vm9 = vcmask 622112  }
 0x2b0   :  { %v6022_v40 = vsel %vm3006_vm12, %v3028_v29, %v5874_v43  ;;  %v1714_v25 = vpop.xlane.xlu2 %1713  ;;  %v1711_v11 = vpop.xlane.xlu1 %1710  ;;  %v2368_v29 = vmul.f32 %v5636_v34, %v5489_v14 }
 0x2b1   :  { %v1792_v4 = vadd.f32 %v5696_v2, %v1714_v25  ;;  %v2821_v39 = vpop.xlane.xlu0 %2820  ;;  %v1791_v60 = vadd.f32 %v5696_v2, %v1711_v11  ;;  %v6048_v11 = vadd.s32 4294967220, %v7187_v52 }
 0x2b2   :  { %v2899_v44 = vadd.f32 %v5739_v30, %v2821_v39  ;;  %v2450_v47 = vsel %vm125_vm1, %v2368_v29, 0.0 }
 0x2b3   :  { %v1832_v57 = vmax.f32 %v1792_v4, 0.0  ;;  %v1831_v43 = vmax.f32 %v1791_v60, 0.0  ;;  %7222 = vst [vmem:[#allocation37_spill] sm:$0xff] %v6048_v11 }
 0x2b4   :  { %v2939_v7 = vmax.f32 %v2899_v44, 0.0  ;;  %v2447_v44 = vsel %vm125_vm1, %v2367_v0, 0.0 }
 0x2b5   :  { %v1932_v21 = vperm.slane %v1832_v57, %v7206_v48  ;;  %2427 = vadd.xlane.f32.xlu2 %v2426_v35  ;;  %2415 = vadd.xlane.f32.xlu1 %v2414_v58  ;;  %v1931_v61 = vperm.slane %v1831_v43, %v7207_v50  ;;  %v2438_v58 = vsel %vm125_vm1, %v2364_v8, 0.0  ;;  %v6079_v8 = vld [vmem:[%s7015_s0 + $0xc0] sm:$0xf] }
 0x2b6   :  { %v3044_v45 = vperm.slane %v2939_v7, %v5255_v6  ;;  %2400 = vadd.xlane.f32.xlu0 %v2399_v37  ;;  %7225 = vst [vmem:[#allocation39_spill] sm:$0xff] %v6079_v8 }
 0x2b7   :  { %v6041_v15 = vsel %vm7116_vm4, %v1932_v21, %v1931_v61  ;;  %v6061_v21 = vld [vmem:[%s7015_s0 + $0x100] sm:$0xff] }
 0x2b8   :  { %v6044_v42 = vsel %vm1512_vm2, %v3044_v45, %v3043_v62  ;;  %v2056_v25 = vpop.xlane.xlu2 %2055  ;;  %v2044_v39 = vpop.xlane.xlu1 %2043  ;;  %v2748_v61 = vmul.f32 %v6061_v21, %v5159_v46  ;;  %v6068_v45 = vld [vmem:[%s7015_s0 + $0xe0] sm:$0xff] }
 0x2b9   :  { %v2152_v4 = vadd.f32 %v5803_v3, %v2056_v25  ;;  %v2029_v34 = vpop.xlane.xlu0 %2028  ;;  %v2148_v60 = vadd.f32 %v5803_v3, %v2044_v39  ;;  %7223 = vst [vmem:[#allocation38_spill] sm:$0xff] %v6068_v45  ;;  %v2744_v29 = vmul.f32 %v6068_v45, %v5159_v46  ;;  %v2740_v25 = vmul.f32 %v6079_v8, %v5159_v46 }
 0x2ba   :  { %v2143_v36 = vadd.f32 %v5803_v3, %v2029_v34 }
 0x2bb   :  { %v2192_v35 = vmax.f32 %v2152_v4, 0.0  ;;  %v2188_v57 = vmax.f32 %v2148_v60, 0.0 }
 0x2bc   :  { %v2183_v37 = vmax.f32 %v2143_v36, 0.0 }
 0x2bd   :  { %v2285_v62 = vperm.slane %v2192_v35, %v7215_v18  ;;  %2451 = vadd.xlane.f32.xlu2 %v2450_v47  ;;  %2448 = vadd.xlane.f32.xlu1 %v2447_v44  ;;  %v2278_v43 = vperm.slane %v2188_v57, %v6048_v11  ;;  %v2852_v35 = vsel %vm125_vm1, %v2748_v61, 0.0  ;;  %v6105_v61 = vld [vmem:[%s7015_s0 + $0x120] sm:$0xff] }
 0x2be   :  { %v2266_v7 = vperm.slane %v2183_v37, %v6048_v11  ;;  %2439 = vadd.xlane.f32.xlu0 %v2438_v58  ;;  %v2840_v58 = vsel %vm125_vm1, %v2744_v29, 0.0  ;;  %v2752_v29 = vmul.f32 %v6105_v61, %v5159_v46 }
 0x2bf   :  { %v6074_v0 = vsel %vm7224_vm9, %v2285_v62, %v5943_v49  ;;  %v6085_v4 = vsel %vm2267_vm15, %v2278_v43, %v5949_v51  ;;  %v2828_v51 = vsel %vm138_vm0, %v2740_v25, 0.0  ;;  %vm7226_vm9 = vcmask 917312  }
 0x2c0   :  { %v6089_v39 = vsel %vm2267_vm15, %v2266_v7, %v5911_v24  ;;  %v2395_v34 = vpop.xlane.xlu2 %2394  ;;  %v2068_v60 = vpop.xlane.xlu1 %2067 }
 0x2c1   :  { %v2511_v49 = vadd.f32 %v5936_v12, %v2395_v34  ;;  %v2065_v36 = vpop.xlane.xlu0 %2064  ;;  %v2156_v47 = vadd.f32 %v5803_v3, %v2068_v60  ;;  %v1633_v34 = vmul.f32 %v6079_v8, %v4990_v22 }
 0x2c2   :  { %v2155_v44 = vadd.f32 %v5803_v3, %v2065_v36 }
 0x2c3   :  { %v2551_v57 = vmax.f32 %v2511_v49, 0.0  ;;  %v2196_v37 = vmax.f32 %v2156_v47, 0.0  ;;  %v6116_v49 = vld [vmem:[%s7015_s0 + $0x118] sm:$0xff] }
 0x2c4   :  { %v2195_v62 = vmax.f32 %v2155_v44, 0.0  ;;  %v2751_v60 = vmul.f32 %v6116_v49, %v5159_v46 }
 0x2c5   :  { %v2632_v24 = vperm.slane %v2551_v57, %v4882_v63  ;;  %2853 = vadd.xlane.f32.xlu2 %v2852_v35  ;;  %2841 = vadd.xlane.f32.xlu1 %v2840_v58  ;;  %v2292_v43 = vperm.slane %v2196_v37, %v7212_v56  ;;  %v2864_v37 = vsel %vm125_vm1, %v2752_v29, 0.0  ;;  %v1637_v29 = vmul.f32 %v6068_v45, %v4990_v22 }
 0x2c6   :  { %v2291_v7 = vperm.slane %v2195_v62, %v7211_v5  ;;  %2829 = vadd.xlane.f32.xlu0 %v2828_v51  ;;  %v1721_v51 = vsel %vm138_vm0, %v1633_v34, 0.0  ;;  %v1641_v34 = vmul.f32 %v6061_v21, %v4990_v22 }
 0x2c7   :  { %v6111_v25 = vsel %vm7226_vm9, %v2632_v24, %v5966_v28  ;;  %v2861_v24 = vsel %vm125_vm1, %v2751_v60, 0.0 }
 0x2c8   :  { %7227 = vst [vmem:[#allocation40_spill] sm:$0xff] %v6111_v25  ;;  %v6121_v36 = vsel %vm7228_vm14, %v2292_v43, %v2291_v7  ;;  %v2422_v47 = vpop.xlane.xlu2 %2421  ;;  %v2419_v35 = vpop.xlane.xlu1 %2418  ;;  %vm7229_vm14 = vcmask 851712  }
 0x2c9   :  { %v2520_v44 = vadd.f32 %v5936_v12, %v2422_v47  ;;  %v2410_v58 = vpop.xlane.xlu0 %2409  ;;  %v2519_v57 = vadd.f32 %v5936_v12, %v2419_v35  ;;  %v1644_v35 = vmul.f32 %v6116_v49, %v4990_v22 }
 0x2ca   :  { %v2516_v28 = vadd.f32 %v5936_v12, %v2410_v58 }
 0x2cb   :  { %v2560_v62 = vmax.f32 %v2520_v44, 0.0  ;;  %v2559_v8 = vmax.f32 %v2519_v57, 0.0 }
 0x2cc   :  { %v2556_v25 = vmax.f32 %v2516_v28, 0.0 }
 0x2cd   :  { %v2652_v43 = vperm.slane %v2560_v62, %v4853_v26  ;;  %1722 = vadd.xlane.f32.xlu2 %v1721_v51  ;;  %2865 = vadd.xlane.f32.xlu1 %v2864_v37  ;;  %v2651_v7 = vperm.slane %v2559_v8, %v4864_v33  ;;  %v1754_v37 = vsel %vm125_vm1, %v1644_v35, 0.0  ;;  %v1745_v62 = vsel %vm125_vm1, %v1641_v34, 0.0 }
 0x2ce   :  { %v2645_v47 = vperm.slane %v2556_v25, %v4882_v63  ;;  %2862 = vadd.xlane.f32.xlu0 %v2861_v24  ;;  %v1997_v35 = vmul.f32 %v5869_v55, %v5203_v53 }
 0x2cf   :  { %v6139_v60 = vsel %vm7229_vm14, %v2652_v43, %v2651_v7  ;;  %v1733_v43 = vsel %vm125_vm1, %v1637_v29, 0.0  ;;  %v1645_v29 = vmul.f32 %v6105_v61, %v4990_v22  ;;  %vm2271_vm14 = vcmask 753312  }
 0x2d0   :  { %v6143_v44 = vsel %vm7226_vm9, %v2645_v47, %v5995_v10  ;;  %v2824_v8 = vpop.xlane.xlu2 %2823  ;;  %v2812_v58 = vpop.xlane.xlu1 %2811  ;;  %vm7235_vm9 = vcmask 622112  }
 0x2d1   :  { %v2900_v25 = vadd.f32 %v5739_v30, %v2824_v8  ;;  %v2800_v57 = vpop.xlane.xlu0 %2799  ;;  %v2896_v28 = vadd.f32 %v5739_v30, %v2812_v58  ;;  %v2001_v58 = vmul.f32 %v5862_v1, %v5203_v53 }
 0x2d2   :  { %v2892_v51 = vadd.f32 %v5739_v30, %v2800_v57 }
 0x2d3   :  { %v2940_v24 = vmax.f32 %v2900_v25, 0.0  ;;  %v2936_v7 = vmax.f32 %v2896_v28, 0.0 }
 0x2d4   :  { %v2932_v45 = vmax.f32 %v2892_v51, 0.0 }
 0x2d5   :  { %v3046_v10 = vperm.slane %v2940_v24, %v5268_v19  ;;  %1755 = vadd.xlane.f32.xlu2 %v1754_v37  ;;  %1746 = vadd.xlane.f32.xlu1 %v1745_v62  ;;  %v3038_v47 = vperm.slane %v2936_v7, %v5849_v32 }
 0x2d6   :  { %v3030_v8 = vperm.slane %v2932_v45, %v5969_v20  ;;  %1734 = vadd.xlane.f32.xlu0 %v1733_v43  ;;  %v2087_v43 = vsel %vm125_vm1, %v2001_v58, 0.0 }
 0x2d7   :  { %v6160_v34 = vsel %vm7115_vm3, %v3046_v10, %v6044_v42  ;;  %v6166_v25 = vsel %vm3006_vm12, %v3038_v47, %v6016_v9  ;;  %v2075_v9 = vsel %vm138_vm0, %v1997_v35, 0.0  ;;  %v2008_v35 = vmul.f32 %v5906_v54, %v5203_v53 }
 0x2d8   :  { %v3031_v45 = vsel %vm3010_vm13, %v3030_v8, %v6022_v40  ;;  %v1717_v57 = vpop.xlane.xlu2 %1716  ;;  %v2836_v37 = vpop.xlane.xlu1 %2835  ;;  %v1757_v40 = vsel %vm125_vm1, %v1645_v29, 0.0  ;;  %v2009_v8 = vmul.f32 %v5899_v31, %v5203_v53 }
 0x2d9   :  { %v6172_v28 = vsel %vm453_vm7, %v3031_v45, %v5992_v23  ;;  %v1793_v51 = vadd.f32 %v5696_v2, %v1717_v57  ;;  %v2833_v42 = vpop.xlane.xlu0 %2832  ;;  %v2904_v62 = vadd.f32 %v5739_v30, %v2836_v37 }
 0x2da   :  { %v2903_v24 = vadd.f32 %v5739_v30, %v2833_v42 }
 0x2db   :  { %v1833_v7 = vmax.f32 %v1793_v51, 0.0  ;;  %v2944_v10 = vmax.f32 %v2904_v62, 0.0  ;;  %v7231_v51 = vld [vmem:[#allocation35_spill] sm:$0xff] }
 0x2dc   :  { %v2943_v47 = vmax.f32 %v2903_v24, 0.0  ;;  %v2005_v37 = vmul.f32 %v7231_v51, %v5203_v53 }
 0x2dd   :  { %v1934_v23 = vperm.slane %v1833_v7, %v7209_v41  ;;  %2088 = vadd.xlane.f32.xlu2 %v2087_v43  ;;  %2076 = vadd.xlane.f32.xlu1 %v2075_v9  ;;  %v3054_v45 = vperm.slane %v2944_v10, %v5255_v6  ;;  %v6202_v43 = vadd.s32 4294967212, %v7187_v52 }
 0x2de   :  { %v3052_v57 = vperm.slane %v2943_v47, %v5232_v38  ;;  %v3053_v58 = vperm.slane %v2943_v47, %v5235_v59  ;;  %1758 = vadd.xlane.f32.xlu0 %v1757_v40  ;;  %v2111_v47 = vsel %vm125_vm1, %v2009_v8, 0.0  ;;  %v2369_v8 = vmul.f32 %v5706_v27, %v5489_v14 }
 0x2df   :  { %v6190_v29 = vsel %vm386_vm5, %v1934_v23, %v6041_v15  ;;  %7232 = vst [vmem:[#allocation35_spill] sm:$0xff] %v6202_v43  ;;  %v2108_v23 = vsel %vm125_vm1, %v2008_v35, 0.0  ;;  %v7233_v35 = vld [vmem:[#allocation16_spill] sm:$0xff] }
 0x2e0   :  { %7230 = vst [vmem:[#allocation41_spill] sm:$0xff] %v6190_v29  ;;  %v6195_v42 = vsel %vm1512_vm2, %v3054_v45, %v3053_v58  ;;  %v6199_v62 = vsel %vm7093_vm10, %v3052_v57, %v6012_v17  ;;  %v2032_v24 = vpop.xlane.xlu2 %2031  ;;  %v1729_v7 = vpop.xlane.xlu1 %1728  ;;  %v2099_v17 = vsel %vm125_vm1, %v2005_v37, 0.0  ;;  %vm7240_vm10 = vcmask 556512  }
 0x2e1   :  { %v2144_v9 = vadd.f32 %v5803_v3, %v2032_v24  ;;  %v1726_v40 = vpop.xlane.xlu0 %1725  ;;  %v1797_v15 = vadd.f32 %v5696_v2, %v1729_v7 }
 0x2e2   :  { %v1796_v10 = vadd.f32 %v5696_v2, %v1726_v40  ;;  %v7234_v40 = vld [vmem:[#allocation33_spill] sm:$0xff] }
 0x2e3   :  { %v2184_v45 = vmax.f32 %v2144_v9, 0.0  ;;  %v1837_v57 = vmax.f32 %v1797_v15, 0.0  ;;  %v2365_v9 = vmul.f32 %v7233_v35, %v5489_v14  ;;  %v2361_v15 = vmul.f32 %v7234_v40, %v5489_v14 }
 0x2e4   :  { %v1836_v58 = vmax.f32 %v1796_v10, 0.0 }
 0x2e5   :  { %v2270_v29 = vperm.slane %v2184_v45, %v6202_v43  ;;  %2112 = vadd.xlane.f32.xlu2 %v2111_v47  ;;  %2109 = vadd.xlane.f32.xlu1 %v2108_v23  ;;  %v1941_v24 = vperm.slane %v1837_v57, %v7206_v48  ;;  %v2441_v35 = vsel %vm125_vm1, %v2365_v9, 0.0 }
 0x2e6   :  { %v1940_v7 = vperm.slane %v1836_v58, %v7207_v50  ;;  %2100 = vadd.xlane.f32.xlu0 %v2099_v17  ;;  %v2453_v58 = vsel %vm125_vm1, %v2369_v8, 0.0  ;;  %v6236_v8 = vld [vmem:[%s7015_s0 + $0xe8] sm:$0xf] }
 0x2e7   :  { %v2272_v37 = vsel %vm2271_vm14, %v2270_v29, %v6089_v39  ;;  %v2429_v29 = vsel %vm138_vm0, %v2361_v15, 0.0  ;;  %v2745_v9 = vmul.f32 %v6236_v8, %v5159_v46  ;;  %v2373_v15 = vmul.f32 %v5748_v13, %v5489_v14 }
 0x2e8   :  { %v6222_v10 = vsel %vm7116_vm4, %v1941_v24, %v1940_v7  ;;  %v2071_v47 = vpop.xlane.xlu2 %2070  ;;  %v2059_v45 = vpop.xlane.xlu1 %2058  ;;  %v6258_v13 = vadd.s32 4294967184, %v7187_v52 }
 0x2e9   :  { %v2157_v23 = vadd.f32 %v5803_v3, %v2071_v47  ;;  %v2047_v17 = vpop.xlane.xlu0 %2046  ;;  %v2153_v57 = vadd.f32 %v5803_v3, %v2059_v45  ;;  %v2372_v45 = vmul.f32 %v5756_v16, %v5489_v14 }
 0x2ea   :  { %v2149_v27 = vadd.f32 %v5803_v3, %v2047_v17  ;;  %7236 = vst [vmem:[#allocation16_spill] sm:$0xff] %v6258_v13 }
 0x2eb   :  { %v2197_v39 = vmax.f32 %v2157_v23, 0.0  ;;  %v2193_v40 = vmax.f32 %v2153_v57, 0.0 }
 0x2ec   :  { %v2189_v48 = vmax.f32 %v2149_v27, 0.0 }
 0x2ed   :  { %v2294_v24 = vperm.slane %v2197_v39, %v7215_v18  ;;  %2454 = vadd.xlane.f32.xlu2 %v2453_v58  ;;  %2442 = vadd.xlane.f32.xlu1 %v2441_v35  ;;  %v2287_v7 = vperm.slane %v2193_v40, %v6048_v11  ;;  %v2462_v40 = vsel %vm125_vm1, %v2372_v45, 0.0 }
 0x2ee   :  { %v2280_v47 = vperm.slane %v2189_v48, %v6202_v43  ;;  %2430 = vadd.xlane.f32.xlu0 %v2429_v29  ;;  %v2465_v29 = vsel %vm125_vm1, %v2373_v15, 0.0  ;;  %v6274_v15 = vld [vmem:[%s7015_s0 + $0x128] sm:$0xff] }
 0x2ef   :  { %v6244_v23 = vsel %vm7235_vm9, %v2294_v24, %v6121_v36  ;;  %v6250_v48 = vsel %vm2267_vm15, %v2287_v7, %v6074_v0  ;;  %v2843_v0 = vsel %vm138_vm0, %v2745_v9, 0.0  ;;  %vm7114_vm9 = vcmask 982912   ;;  %7237 = vst [vmem:[#allocation33_spill] sm:$0xff] %v6274_v15 }
 0x2f0   :  { %v2281_v17 = vsel %vm2271_vm14, %v2280_v47, %v6085_v4  ;;  %v2398_v57 = vpop.xlane.xlu2 %2397  ;;  %v2083_v58 = vpop.xlane.xlu1 %2082  ;;  %v1638_v9 = vmul.f32 %v6236_v8, %v4990_v22  ;;  %v2753_v45 = vmul.f32 %v6274_v15, %v5159_v46 }
 0x2f1   :  { %v6255_v27 = vsel %vm451_vm6, %v2281_v17, %v2272_v37  ;;  %v2512_v36 = vadd.f32 %v5936_v12, %v2398_v57  ;;  %v2080_v35 = vpop.xlane.xlu0 %2079  ;;  %v2161_v16 = vadd.f32 %v5803_v3, %v2083_v58  ;;  %v7238_v57 = vld [vmem:[#allocation40_spill] sm:$0xff]  ;;  %v6285_v58 = vld [vmem:[%s7015_s0 + $0x108] sm:$0xff] }
 0x2f2   :  { %v2160_v39 = vadd.f32 %v5803_v3, %v2080_v35  ;;  %v2749_v35 = vmul.f32 %v6285_v58, %v5159_v46 }
 0x2f3   :  { %v2552_v4 = vmax.f32 %v2512_v36, 0.0  ;;  %v2201_v37 = vmax.f32 %v2161_v16, 0.0 }
 0x2f4   :  { %v2200_v24 = vmax.f32 %v2160_v39, 0.0 }
 0x2f5   :  { %v2635_v7 = vperm.slane %v2552_v4, %v6258_v13  ;;  %2844 = vadd.xlane.f32.xlu2 %v2843_v0  ;;  %2466 = vadd.xlane.f32.xlu1 %v2465_v29  ;;  %v2301_v47 = vperm.slane %v2201_v37, %v7212_v56  ;;  %v1736_v37 = vsel %vm138_vm0, %v1638_v9, 0.0  ;;  %v1646_v9 = vmul.f32 %v6274_v15, %v4990_v22 }
 0x2f6   :  { %v2300_v17 = vperm.slane %v2200_v24, %v7211_v5  ;;  %2463 = vadd.xlane.f32.xlu0 %v2462_v40  ;;  %v2867_v24 = vsel %vm125_vm1, %v2753_v45, 0.0  ;;  %v1642_v45 = vmul.f32 %v6285_v58, %v4990_v22 }
 0x2f7   :  { %v6280_v36 = vsel %vm7114_vm9, %v2635_v7, %v7238_v57  ;;  %v2855_v7 = vsel %vm125_vm1, %v2749_v35, 0.0 }
 0x2f8   :  { %7239 = vst [vmem:[#allocation40_spill] sm:$0xff] %v6280_v36  ;;  %v6290_v16 = vsel %vm7240_vm10, %v2301_v47, %v2300_v17  ;;  %v2434_v39 = vpop.xlane.xlu2 %2433  ;;  %v2425_v0 = vpop.xlane.xlu1 %2424  ;;  %vm7242_vm10 = vcmask 917312  }
 0x2f9   :  { %v2413_v29 = vpop.xlane.xlu0 %2412  ;;  %v2521_v4 = vadd.f32 %v5936_v12, %v2425_v0  ;;  %v2524_v57 = vadd.f32 %v5936_v12, %v2434_v39  ;;  %v7241_v0 = vld [vmem:[#allocation39_spill] sm:$0xff] }
 0x2fa   :  { %v2517_v40 = vadd.f32 %v5936_v12, %v2413_v29  ;;  %v2002_v29 = vmul.f32 %v7241_v0, %v5203_v53 }
 0x2fb   :  { %v2561_v36 = vmax.f32 %v2521_v4, 0.0  ;;  %v2564_v35 = vmax.f32 %v2524_v57, 0.0  ;;  %v1760_v57 = vsel %vm125_vm1, %v1646_v9, 0.0  ;;  %v2010_v9 = vmul.f32 %v6061_v21, %v5203_v53 }
 0x2fc   :  { %v2557_v52 = vmax.f32 %v2517_v40, 0.0 }
 0x2fd   :  { %1737 = vadd.xlane.f32.xlu2 %v1736_v37  ;;  %2868 = vadd.xlane.f32.xlu1 %v2867_v24  ;;  %v2654_v47 = vperm.slane %v2561_v36, %v4882_v63  ;;  %v2090_v63 = vsel %vm138_vm0, %v2002_v29, 0.0  ;;  %v2013_v29 = vmul.f32 %v6116_v49, %v5203_v53 }
 0x2fe   :  { %v2647_v17 = vperm.slane %v2557_v52, %v6258_v13  ;;  %2856 = vadd.xlane.f32.xlu0 %v2855_v7 }
 0x2ff   :  { %v6308_v39 = vsel %vm7242_vm10, %v2654_v47, %v6139_v60  ;;  %v1748_v60 = vsel %vm125_vm1, %v1642_v45, 0.0  ;;  %v2660_v47 = vperm.slane %v2564_v35, %v4864_v33  ;;  %v7244_v35 = vld [vmem:[#allocation38_spill] sm:$0xff]  ;;  %vm7245_vm10 = vcmask 851712  }
 0x300   :  { %v6312_v36 = vsel %vm7114_vm9, %v2647_v17, %v6143_v44  ;;  %v2827_v52 = vpop.xlane.xlu2 %2826  ;;  %v2815_v40 = vpop.xlane.xlu1 %2814 }
 0x301   :  { %7243 = vst [vmem:[#allocation39_spill] sm:$0xff] %v6312_v36  ;;  %v2901_v4 = vadd.f32 %v5739_v30, %v2827_v52  ;;  %v2437_v37 = vpop.xlane.xlu0 %2436  ;;  %v2897_v24 = vadd.f32 %v5739_v30, %v2815_v40 }
 0x302   :  { %v2525_v7 = vadd.f32 %v5936_v12, %v2437_v37 }
 0x303   :  { %v2941_v15 = vmax.f32 %v2901_v4, 0.0  ;;  %v2937_v44 = vmax.f32 %v2897_v24, 0.0 }
 0x304   :  { %v2565_v17 = vmax.f32 %v2525_v7, 0.0 }
 0x305   :  { %v3048_v36 = vperm.slane %v2941_v15, %v5849_v32  ;;  %2091 = vadd.xlane.f32.xlu2 %v2090_v63  ;;  %1761 = vadd.xlane.f32.xlu1 %v1760_v57  ;;  %v3040_v52 = vperm.slane %v2937_v44, %v5969_v20  ;;  %v2006_v15 = vmul.f32 %v7244_v35, %v5203_v53  ;;  %v2123_v44 = vsel %vm125_vm1, %v2013_v29, 0.0 }
 0x306   :  { %v2661_v40 = vperm.slane %v2565_v17, %v4853_v26  ;;  %1749 = vadd.xlane.f32.xlu0 %v1748_v60 }
 0x307   :  { %v6330_v45 = vsel %vm3006_vm12, %v3048_v36, %v6160_v34  ;;  %v3041_v63 = vsel %vm3010_vm13, %v3040_v52, %v6166_v25  ;;  %v2114_v25 = vsel %vm125_vm1, %v2010_v9, 0.0  ;;  %v2366_v9 = vmul.f32 %v5869_v55, %v5489_v14 }
 0x308   :  { %v6337_v4 = vsel %vm7245_vm10, %v2661_v40, %v2660_v47  ;;  %v2851_v37 = vpop.xlane.xlu2 %2850  ;;  %v6341_v24 = vsel %vm455_vm8, %v3041_v63, %v6172_v28  ;;  %v2848_v57 = vpop.xlane.xlu1 %2847  ;;  %v2102_v47 = vsel %vm125_vm1, %v2006_v15, 0.0  ;;  %v2370_v63 = vmul.f32 %v5862_v1, %v5489_v14 }
 0x309   :  { %v2909_v7 = vadd.f32 %v5739_v30, %v2851_v37  ;;  %v2839_v60 = vpop.xlane.xlu0 %2838  ;;  %v2908_v34 = vadd.f32 %v5739_v30, %v2848_v57  ;;  %v2014_v15 = vmul.f32 %v6105_v61, %v5203_v53  ;;  %vm7250_vm10 = vcmask 392512  }
 0x30a   :  { %v2905_v36 = vadd.f32 %v5739_v30, %v2839_v60 }
 0x30b   :  { %v2949_v17 = vmax.f32 %v2909_v7, 0.0  ;;  %v2948_v52 = vmax.f32 %v2908_v34, 0.0 }
 0x30c   :  { %v2945_v40 = vmax.f32 %v2905_v36, 0.0 }
 0x30d   :  { %v3064_v28 = vperm.slane %v2949_v17, %v5255_v6  ;;  %2124 = vadd.xlane.f32.xlu2 %v2123_v44  ;;  %2115 = vadd.xlane.f32.xlu1 %v2114_v25  ;;  %v3062_v37 = vperm.slane %v2948_v52, %v5232_v38  ;;  %v3063_v57 = vperm.slane %v2948_v52, %v5235_v59  ;;  %v2456_v17 = vsel %vm125_vm1, %v2370_v63, 0.0 }
 0x30e   :  { %v3056_v29 = vperm.slane %v2945_v40, %v5268_v19  ;;  %2103 = vadd.xlane.f32.xlu0 %v2102_v47  ;;  %v2444_v47 = vsel %vm138_vm0, %v2366_v9, 0.0  ;;  %v2126_v52 = vsel %vm125_vm1, %v2014_v15, 0.0  ;;  %v2377_v63 = vmul.f32 %v5906_v54, %v5489_v14 }
 0x30f   :  { %v6360_v7 = vsel %vm1512_vm2, %v3064_v28, %v3063_v57  ;;  %v6364_v60 = vsel %vm7103_vm11, %v3062_v37, %v6199_v62  ;;  %v7247_v37 = vld [vmem:[#allocation34_spill] sm:$0xff]  ;;  %v2374_v9 = vmul.f32 %v7231_v51, %v5489_v14  ;;  %vm7264_vm11 = vcmask 622112  }
 0x310   :  { %7246 = vst [vmem:[#allocation38_spill] sm:$0xff] %v6364_v60  ;;  %v6368_v1 = vsel %vm7115_vm3, %v3056_v29, %v6195_v42  ;;  %v1741_v34 = vpop.xlane.xlu2 %1740  ;;  %v1732_v36 = vpop.xlane.xlu1 %1731  ;;  %v2378_v29 = vmul.f32 %v5899_v31, %v5489_v14 }
 0x311   :  { %v1720_v44 = vpop.xlane.xlu0 %1719  ;;  %v1798_v25 = vadd.f32 %v5696_v2, %v1732_v36  ;;  %v1801_v62 = vadd.f32 %v5696_v2, %v1741_v34  ;;  %v7249_v36 = vld [vmem:[#allocation41_spill] sm:$0xff] }
 0x312   :  { %v1794_v55 = vadd.f32 %v5696_v2, %v1720_v44 }
 0x313   :  { %v1838_v40 = vmax.f32 %v1798_v25, 0.0  ;;  %v1841_v15 = vmax.f32 %v1801_v62, 0.0  ;;  %v2480_v62 = vsel %vm125_vm1, %v2378_v29, 0.0  ;;  %v7253_v29 = vld [vmem:[#allocation31_spill] sm:$0xff] }
 0x314   :  { %v1834_v28 = vmax.f32 %v1794_v55, 0.0  ;;  %v7251_v55 = vld [vmem:[#allocation22_spill] sm:$0xff] }
 0x315   :  { %2457 = vadd.xlane.f32.xlu2 %v2456_v17  ;;  %2445 = vadd.xlane.f32.xlu1 %v2444_v47  ;;  %v1943_v42 = vperm.slane %v1838_v40, %v7209_v41  ;;  %v1772_v17 = vadd.f32 %v5696_v2, %v7251_v55  ;;  %v7252_v40 = vld [vmem:[#allocation27_spill] sm:$0xff] }
 0x316   :  { %v1936_v57 = vperm.slane %v1834_v28, %v7247_v37  ;;  %2127 = vadd.xlane.f32.xlu0 %v2126_v52  ;;  %v1771_v28 = vadd.f32 %v5696_v2, %v7252_v40 }
 0x317   :  { %v6386_v34 = vsel %vm386_vm5, %v1943_v42, %v6222_v10  ;;  %v2477_v10 = vsel %vm125_vm1, %v2377_v63, 0.0  ;;  %v6409_v63 = vld [vmem:[%s7015_s0 + $0x110] sm:$0xf] }
 0x318   :  { %7248 = vst [vmem:[#allocation34_spill] sm:$0xff] %v6386_v34  ;;  %v6390_v44 = vsel %vm7250_vm10, %v1936_v57, %v7249_v36  ;;  %v2074_v25 = vpop.xlane.xlu2 %2073  ;;  %v2062_v47 = vpop.xlane.xlu1 %2061  ;;  %v2468_v57 = vsel %vm125_vm1, %v2374_v9, 0.0  ;;  %v1949_v36 = vperm.slane %v1841_v15, %v7207_v50  ;;  %v1812_v34 = vmax.f32 %v1772_v17, 0.0  ;;  %v6416_v15 = vld [vmem:[%s7015_s0 + $0x130] sm:$0xff] }
 0x319   :  { %v2158_v31 = vadd.f32 %v5803_v3, %v2074_v25  ;;  %v1744_v54 = vpop.xlane.xlu0 %1743  ;;  %v2154_v52 = vadd.f32 %v5803_v3, %v2062_v47  ;;  %v1643_v9 = vmul.f32 %v6409_v63, %v4990_v22  ;;  %v2754_v17 = vmul.f32 %v6416_v15, %v5159_v46 }
 0x31a   :  { %v1802_v51 = vadd.f32 %v5696_v2, %v1744_v54  ;;  %vm7262_vm10 = vcmask 556512  }
 0x31b   :  { %v2198_v42 = vmax.f32 %v2158_v31, 0.0  ;;  %v2194_v55 = vmax.f32 %v2154_v52, 0.0  ;;  %v1811_v31 = vmax.f32 %v1771_v28, 0.0  ;;  %v7254_v52 = vld [vmem:[#allocation28_spill] sm:$0xff]  ;;  %v7257_v28 = vld [vmem:[#allocation25_spill] sm:$0xff] }
 0x31c   :  { %v1842_v25 = vmax.f32 %v1802_v51, 0.0  ;;  %v1773_v51 = vadd.f32 %v5696_v2, %v7254_v52 }
 0x31d   :  { %v2296_v60 = vperm.slane %v2198_v42, %v6048_v11  ;;  %2481 = vadd.xlane.f32.xlu2 %v2480_v62  ;;  %2478 = vadd.xlane.f32.xlu1 %v2477_v10  ;;  %v2289_v47 = vperm.slane %v2194_v55, %v6202_v43  ;;  %v2750_v10 = vmul.f32 %v6409_v63, %v5159_v46 }
 0x31e   :  { %v1950_v54 = vperm.slane %v1842_v25, %v7253_v29  ;;  %2469 = vadd.xlane.f32.xlu0 %v2468_v57  ;;  %v1892_v55 = vperm.slane %v1812_v34, %v7253_v29  ;;  %v1774_v25 = vadd.f32 %v5696_v2, %v7257_v28  ;;  %v1891_v34 = vperm.slane %v1811_v31, %v7207_v50 }
 0x31f   :  { %v6424_v62 = vsel %vm2267_vm15, %v2296_v60, %v6244_v23  ;;  %v2290_v40 = vsel %vm2271_vm14, %v2289_v47, %v6250_v48  ;;  %v2870_v47 = vsel %vm125_vm1, %v2754_v17, 0.0  ;;  %v2858_v11 = vsel %vm138_vm0, %v2750_v10, 0.0  ;;  %v7260_v10 = vld [vmem:[#allocation11_spill] sm:$0xff] }
 0x320   :  { %7255 = vst [vmem:[#allocation41_spill] sm:$0xff] %v6424_v62  ;;  %v6431_v42 = vsel %vm7116_vm4, %v1950_v54, %v1949_v36  ;;  %v2098_v57 = vpop.xlane.xlu2 %2097  ;;  %v6438_v52 = vsel %vm453_vm7, %v2290_v40, %v6255_v27  ;;  %v2095_v60 = vpop.xlane.xlu1 %2094  ;;  %v1751_v36 = vsel %vm138_vm0, %v1643_v9, 0.0  ;;  %v1813_v54 = vmax.f32 %v1773_v51, 0.0  ;;  %v7259_v27 = vld [vmem:[#allocation24_spill] sm:$0xff] }
 0x321   :  { %7256 = vst [vmem:[#allocation22_spill] sm:$0xff] %v6431_v42  ;;  %v2166_v23 = vadd.f32 %v5803_v3, %v2098_v57  ;;  %v2086_v62 = vpop.xlane.xlu0 %2085  ;;  %v2165_v43 = vadd.f32 %v5803_v3, %v2095_v60  ;;  %v6449_v40 = vadd.f32 %v5696_v2, %v7259_v27  ;;  %v1814_v42 = vmax.f32 %v1774_v25, 0.0 }
 0x322   :  { %7258 = vst [vmem:[#allocation27_spill] sm:$0xff] %v6438_v52  ;;  %v2162_v48 = vadd.f32 %v5803_v3, %v2086_v62  ;;  %v2011_v31 = vmul.f32 %v6285_v58, %v5203_v53  ;;  %v2007_v51 = vmul.f32 %v6236_v8, %v5203_v53  ;;  %v1893_v62 = vsel %vm7116_vm4, %v1892_v55, %v1891_v34 }
 0x323   :  { %v2206_v28 = vmax.f32 %v2166_v23, 0.0  ;;  %v2205_v57 = vmax.f32 %v2165_v43, 0.0  ;;  %v1894_v43 = vperm.slane %v1813_v54, %v7209_v41  ;;  %v1777_v25 = vadd.f32 %v5696_v2, %v7260_v10  ;;  %v7266_v54 = vld [vmem:[#allocation12_spill] sm:$0xff] }
 0x324   :  { %v2202_v52 = vmax.f32 %v2162_v48, 0.0  ;;  %v1647_v23 = vmul.f32 %v6416_v15, %v4990_v22  ;;  %v6475_v34 = vperm.slane %v1814_v42, %v7247_v37  ;;  %v2105_v42 = vsel %vm138_vm0, %v2007_v51, 0.0 }
 0x325   :  { %v2310_v60 = vperm.slane %v2206_v28, %v7212_v56  ;;  %1752 = vadd.xlane.f32.xlu2 %v1751_v36  ;;  %2871 = vadd.xlane.f32.xlu1 %v2870_v47  ;;  %v2309_v9 = vperm.slane %v2205_v57, %v7211_v5  ;;  %v6479_v28 = vadd.f32 %v5696_v2, %v7266_v54  ;;  %v7267_v57 = vld [vmem:[#allocation29_spill] sm:$0xff]  ;;  %v1817_v54 = vmax.f32 %v1777_v25, 0.0 }
 0x326   :  { %v2303_v17 = vperm.slane %v2202_v52, %v7215_v18  ;;  %2859 = vadd.xlane.f32.xlu0 %v2858_v11  ;;  %v7261_v52 = vld [vmem:[#allocation20_spill] sm:$0xff]  ;;  %v6483_v10 = vadd.s32 4294967176, %v7267_v57  ;;  %v6490_v48 = vsel %vm386_vm5, %v1894_v43, %v1893_v62  ;;  %v7269_v57 = vld [vmem:[#allocation15_spill] sm:$0xff]  ;;  %v2375_v25 = vmul.f32 %v7244_v35, %v5489_v14 }
 0x327   :  { %v1776_v11 = vadd.f32 %v5696_v2, %v7261_v52  ;;  %v6468_v36 = vsel %vm7262_vm10, %v2310_v60, %v2309_v9  ;;  %v1781_v5 = vadd.f32 %v5696_v2, %v7269_v57  ;;  %vm7282_vm10 = vcmask 851712  }
 0x328   :  { %7263 = vst [vmem:[#allocation31_spill] sm:$0xff] %v6468_v36  ;;  %v6472_v47 = vsel %vm7264_vm11, %v2303_v17, %v6290_v16  ;;  %v2428_v55 = vpop.xlane.xlu2 %2427  ;;  %v2416_v52 = vpop.xlane.xlu1 %2415  ;;  %v2117_v17 = vsel %vm125_vm1, %v2011_v31, 0.0  ;;  %vm7113_vm11 = vcmask 1048512  }
 0x329   :  { %7265 = vst [vmem:[#allocation28_spill] sm:$0xff] %v6472_v47  ;;  %v2522_v27 = vadd.f32 %v5936_v12, %v2428_v55  ;;  %v2401_v60 = vpop.xlane.xlu0 %2400  ;;  %v2518_v9 = vadd.f32 %v5936_v12, %v2416_v52  ;;  %v1763_v55 = vsel %vm125_vm1, %v1647_v23, 0.0  ;;  %v1816_v18 = vmax.f32 %v1776_v11, 0.0 }
 0x32a   :  { %7268 = vst [vmem:[#allocation25_spill] sm:$0xff] %v6483_v10  ;;  %v2513_v16 = vadd.f32 %v5936_v12, %v2401_v60  ;;  %v1818_v52 = vmax.f32 %v6479_v28, 0.0  ;;  %v7270_v60 = vld [vmem:[#allocation19_spill] sm:$0xff]  ;;  %v2371_v23 = vmul.f32 %v7241_v0, %v5489_v14  ;;  %v1905_v11 = vperm.slane %v1817_v54, %v7253_v29  ;;  %v7276_v54 = vld [vmem:[#allocation13_spill] sm:$0xff] }
 0x32b   :  { %v2562_v36 = vmax.f32 %v2522_v27, 0.0  ;;  %v2558_v56 = vmax.f32 %v2518_v9, 0.0  ;;  %v1782_v31 = vadd.f32 %v5696_v2, %v7270_v60  ;;  %v7271_v28 = vld [vmem:[#allocation23_spill] sm:$0xff]  ;;  %v1821_v9 = vmax.f32 %v1781_v5, 0.0 }
 0x32c   :  { %v2553_v47 = vmax.f32 %v2513_v16, 0.0  ;;  %v1779_v27 = vadd.f32 %v5696_v2, %v7271_v28  ;;  %v7274_v16 = vld [vmem:[#allocation39_spill] sm:$0xff] }
 0x32d   :  { %v2656_v51 = vperm.slane %v2562_v36, %v6258_v13  ;;  %2118 = vadd.xlane.f32.xlu2 %v2117_v17  ;;  %2106 = vadd.xlane.f32.xlu1 %v2105_v42  ;;  %v2649_v62 = vperm.slane %v2558_v56, %v6483_v10  ;;  %v7273_v56 = vld [vmem:[#allocation33_spill] sm:$0xff]  ;;  %v7275_v17 = vld [vmem:[#allocation40_spill] sm:$0xff]  ;;  %v1822_v60 = vmax.f32 %v1782_v31, 0.0 }
 0x32e   :  { %v2639_v43 = vperm.slane %v2553_v47, %v6483_v10  ;;  %1764 = vadd.xlane.f32.xlu0 %v1763_v55  ;;  %v2015_v57 = vmul.f32 %v7273_v56, %v5203_v53  ;;  %v1904_v47 = vperm.slane %v1816_v18, %v7207_v50  ;;  %v1783_v55 = vadd.f32 %v5696_v2, %v7276_v54 }
 0x32f   :  { %v6510_v36 = vsel %vm7114_vm9, %v2656_v51, %v6308_v39  ;;  %v2650_v35 = vsel %vm7113_vm11, %v2649_v62, %v7274_v16  ;;  %v2471_v62 = vsel %vm125_vm1, %v2375_v25, 0.0  ;;  %v7278_v16 = vld [vmem:[#allocation17_spill] sm:$0xff]  ;;  %v1819_v54 = vmax.f32 %v1779_v27, 0.0  ;;  %v7280_v25 = vld [vmem:[#allocation26_spill] sm:$0xff] }
 0x330   :  { %7272 = vst [vmem:[#allocation24_spill] sm:$0xff] %v6510_v36  ;;  %v2641_v0 = vsel %vm7113_vm11, %v2639_v43, %v7275_v17  ;;  %v2452_v42 = vpop.xlane.xlu2 %2451  ;;  %v2449_v28 = vpop.xlane.xlu1 %2448  ;;  %v2459_v43 = vsel %vm138_vm0, %v2371_v23, 0.0  ;;  %v1780_v17 = vadd.f32 %v5696_v2, %v7278_v16  ;;  %v1823_v13 = vmax.f32 %v1783_v55, 0.0 }
 0x331   :  { %v6522_v39 = vsel %vm451_vm6, %v2650_v35, %v2641_v0  ;;  %v2530_v51 = vadd.f32 %v5936_v12, %v2452_v42  ;;  %v2440_v36 = vpop.xlane.xlu0 %2439  ;;  %v2529_v5 = vadd.f32 %v5936_v12, %v2449_v28  ;;  %v2129_v35 = vsel %vm125_vm1, %v2015_v57, 0.0  ;;  %v7279_v42 = vld [vmem:[#allocation18_spill] sm:$0xff]  ;;  %v7281_v57 = vld [vmem:[#allocation21_spill] sm:$0xff] }
 0x332   :  { %7277 = vst [vmem:[#allocation11_spill] sm:$0xff] %v6522_v39  ;;  %v2526_v18 = vadd.f32 %v5936_v12, %v2440_v36  ;;  %v1913_v0 = vperm.slane %v1821_v9, %v7207_v50  ;;  %v1784_v39 = vadd.f32 %v5696_v2, %v7279_v42  ;;  %v1914_v36 = vperm.slane %v1822_v60, %v7253_v29 }
 0x333   :  { %v2570_v31 = vmax.f32 %v2530_v51, 0.0  ;;  %v2569_v10 = vmax.f32 %v2529_v5, 0.0  ;;  %v1785_v23 = vadd.f32 %v5696_v2, %v7280_v25  ;;  %v2383_v9 = vmul.f32 %v6105_v61, %v5489_v14 }
 0x334   :  { %v2566_v28 = vmax.f32 %v2526_v18, 0.0  ;;  %v2382_v55 = vmul.f32 %v6116_v49, %v5489_v14  ;;  %v1907_v60 = vperm.slane %v1818_v52, %v7209_v41  ;;  %v1906_v5 = vsel %vm7116_vm4, %v1905_v11, %v1904_v47 }
 0x335   :  { %v2670_v12 = vperm.slane %v2570_v31, %v4853_v26  ;;  %2472 = vadd.xlane.f32.xlu2 %v2471_v62  ;;  %2460 = vadd.xlane.f32.xlu1 %v2459_v43  ;;  %v2669_v27 = vperm.slane %v2569_v10, %v4864_v33  ;;  %v1820_v18 = vmax.f32 %v1780_v17, 0.0  ;;  %v2379_v62 = vmul.f32 %v6061_v21, %v5489_v14 }
 0x336   :  { %v2663_v51 = vperm.slane %v2566_v28, %v7281_v57  ;;  %2130 = vadd.xlane.f32.xlu0 %v2129_v35  ;;  %v1909_v43 = vperm.slane %v1819_v54, %v7247_v37  ;;  %v1824_v10 = vmax.f32 %v1784_v39, 0.0  ;;  %vm7283_vm11 = vcmask 917312  }
 0x337   :  { %v6551_v16 = vsel %vm7282_vm10, %v2670_v12, %v2669_v27  ;;  %v1916_v49 = vperm.slane %v1823_v13, %v7209_v41  ;;  %v1915_v52 = vsel %vm7116_vm4, %v1914_v36, %v1913_v0  ;;  %v1825_v11 = vmax.f32 %v1785_v23, 0.0 }
 0x338   :  { %v6555_v61 = vsel %vm7283_vm11, %v2663_v51, %v6337_v4  ;;  %v2854_v31 = vpop.xlane.xlu2 %2853  ;;  %v2842_v17 = vpop.xlane.xlu1 %2841  ;;  %v2495_v12 = vsel %vm125_vm1, %v2383_v9, 0.0  ;;  %v2492_v35 = vsel %vm125_vm1, %v2382_v55, 0.0  ;;  %v7284_v4 = vld [vmem:[#allocation30_spill] sm:$0xff]  ;;  %v1908_v28 = vsel %vm386_vm5, %v1907_v60, %v1906_v5 }
 0x339   :  { %v2910_v47 = vadd.f32 %v5739_v30, %v2854_v31  ;;  %v2830_v21 = vpop.xlane.xlu0 %2829  ;;  %v2906_v54 = vadd.f32 %v5739_v30, %v2842_v17  ;;  %v1911_v42 = vperm.slane %v1820_v18, %v7284_v4  ;;  %v2483_v0 = vsel %vm125_vm1, %v2379_v62, 0.0  ;;  %v6579_v18 = vld [vmem:[%s7015_s0 + $0x138] sm:$0xf] }
 0x33a   :  { %v2902_v39 = vadd.f32 %v5739_v30, %v2830_v21  ;;  %vm7285_vm11 = vcmask 392512   ;;  %v1918_v25 = vperm.slane %v1824_v10, %v7247_v37  ;;  %v1917_v51 = vsel %vm386_vm5, %v1916_v49, %v1915_v52 }
 0x33b   :  { %v2950_v13 = vmax.f32 %v2910_v47, 0.0  ;;  %v1910_v36 = vsel %vm7285_vm11, %v1909_v43, %v1908_v28  ;;  %v2946_v23 = vmax.f32 %v2906_v54, 0.0  ;;  %v1920_v31 = vperm.slane %v1825_v11, %v7284_v4  ;;  %vm7287_vm10 = vmmov %vm7285_vm11 }
 0x33c   :  { %v2942_v27 = vmax.f32 %v2902_v39, 0.0  ;;  %v2012_v5 = vmul.f32 %v6409_v63, %v5203_v53  ;;  %v1648_v62 = vmul.f32 %v6579_v18, %v4990_v22  ;;  %v7286_v43 = vmax.f32 %v6449_v40, 0.0  ;;  %vm7288_vm11 = vmmov %vm7287_vm10 }
 0x33d   :  { %v3066_v9 = vperm.slane %v2950_v13, %v5268_v19  ;;  %2496 = vadd.xlane.f32.xlu2 %v2495_v12  ;;  %2493 = vadd.xlane.f32.xlu1 %v2492_v35  ;;  %v3058_v55 = vperm.slane %v2946_v23, %v5849_v32  ;;  %v2755_v52 = vmul.f32 %v6579_v18, %v5159_v46  ;;  %vm7289_vm9 = vcmask 458112  }
 0x33e   :  { %v3050_v60 = vperm.slane %v2942_v27, %v5969_v20  ;;  %2484 = vadd.xlane.f32.xlu0 %v2483_v0  ;;  %v1901_v10 = vperm.slane %v7286_v43, %v7284_v4  ;;  %v1899_v11 = vsel %vm7287_vm10, %v6475_v34, %v6490_v48  ;;  %v1919_v47 = vsel %vm7288_vm11, %v1918_v25, %v1917_v51 }
 0x33f   :  { %v6588_v49 = vsel %vm7115_vm3, %v3066_v9, %v6360_v7  ;;  %v6598_v22 = vsel %vm3006_vm12, %v3058_v55, %v6368_v1  ;;  %v1912_v7 = vsel %vm7289_vm9, %v1911_v42, %v1910_v36  ;;  %vm7290_vm3 = vmmov %vm7289_vm9  ;;  %vm7291_vm4 = vcmask 1044484  }
 0x340   :  { %v3051_v40 = vsel %vm3010_vm13, %v3050_v60, %v6330_v45  ;;  %v1723_v17 = vpop.xlane.xlu2 %1722  ;;  %v1921_v21 = vsel %vm7290_vm3, %v1920_v31, %v1919_v47  ;;  %v2866_v34 = vpop.xlane.xlu1 %2865  ;;  %v2120_v12 = vsel %vm138_vm0, %v2012_v5, 0.0  ;;  %v1766_v45 = vsel %vm138_vm0, %v1648_v62, 0.0  ;;  %vm7292_vm10 = vmmov %vm7290_vm3  ;;  %v7294_v60 = vld [vmem:[#allocation32_spill] sm:$0xff] }
 0x341   :  { %v6606_v46 = vsel %vm7291_vm4, %v3051_v40, %v6341_v24  ;;  %v1795_v48 = vadd.f32 %v5696_v2, %v1723_v17  ;;  %v2863_v54 = vpop.xlane.xlu0 %2862  ;;  %v2914_v39 = vadd.f32 %v5739_v30, %v2866_v34  ;;  %v1903_v35 = vsel %vm7292_vm10, %v1901_v10, %v1899_v11  ;;  %vm7293_vm4 = vmmov %vm7290_vm3 }
 0x342   :  { %v2913_v1 = vadd.f32 %v5739_v30, %v2863_v54  ;;  %v2873_v28 = vsel %vm138_vm0, %v2755_v52, 0.0  ;;  %v1967_v24 = vsel %vm451_vm6, %v1912_v7, %v1903_v35  ;;  %v2380_v23 = vmul.f32 %v6285_v58, %v5489_v14 }
 0x343   :  { %v1835_v42 = vmax.f32 %v1795_v48, 0.0  ;;  %v2954_v13 = vmax.f32 %v2914_v39, 0.0  ;;  %v1968_v36 = vsel %vm453_vm7, %v1921_v21, %v1967_v24  ;;  %v2376_v9 = vmul.f32 %v6236_v8, %v5489_v14 }
 0x344   :  { %v2953_v0 = vmax.f32 %v2913_v1, 0.0  ;;  %v1969_v5 = vsel %vm455_vm8, %v7294_v60, %v1968_v36  ;;  %v2016_v62 = vmul.f32 %v6416_v15, %v5203_v53  ;;  %vm7295_vm6 = vcmask 1044484  }
 0x345   :  { %v1938_v25 = vperm.slane %v1835_v42, %v7284_v4  ;;  %2121 = vadd.xlane.f32.xlu2 %v2120_v12  ;;  %1767 = vadd.xlane.f32.xlu1 %v1766_v45  ;;  %v3074_v27 = vperm.slane %v2954_v13, %v5255_v6  ;;  %vm7297_vm3 = vcmask 1047559   ;;  %v2486_v11 = vsel %vm125_vm1, %v2380_v23, 0.0  ;;  %v7298_v45 = vld [vmem:[#allocation22_spill] sm:$0xff] }
 0x346   :  { %v3072_v51 = vperm.slane %v2953_v0, %v5232_v38  ;;  %v3073_v31 = vperm.slane %v2953_v0, %v5235_v59  ;;  %2874 = vadd.xlane.f32.xlu0 %v2873_v28  ;;  %v7296_v59 = vld [vmem:[#allocation38_spill] sm:$0xff]  ;;  %v2474_v47 = vsel %vm138_vm0, %v2376_v9, 0.0  ;;  %v2132_v40 = vsel %vm125_vm1, %v2016_v62, 0.0 }
 0x347   :  { %v1939_v55 = vsel %vm7293_vm4, %v1938_v25, %v6390_v44  ;;  %v2381_v54 = vmul.f32 %v6409_v63, %v5489_v14  ;;  %v2017_v39 = vmul.f32 %v6579_v18, %v5203_v53  ;;  %v2384_v1 = vmul.f32 %v7273_v56, %v5489_v14  ;;  %v7299_v42 = vld [vmem:[#allocation34_spill] sm:$0xff] }
 0x348   :  { %v6632_v58 = vsel %vm7295_vm6, %v1939_v55, %v1969_v5  ;;  %v6635_v38 = vsel %vm1512_vm2, %v3074_v27, %v3073_v31  ;;  %v6639_v6 = vsel %vm7297_vm3, %v3072_v51, %v7296_v59  ;;  %v1756_v8 = vpop.xlane.xlu2 %1755  ;;  %v1747_v43 = vpop.xlane.xlu1 %1746  ;;  %vm7300_vm2 = vmmov %vm7288_vm11  ;;  %v7301_v55 = vld [vmem:[#allocation37_spill] sm:$0xff]  ;;  %v7302_v5 = vld [vmem:[#allocation35_spill] sm:$0xff]  ;;  %vm7305_vm9 = vcmask 261312  }
 0x349   :  { %v1735_v10 = vpop.xlane.xlu0 %1734  ;;  %v1803_v44 = vadd.f32 %v5696_v2, %v1747_v43  ;;  %v1806_v17 = vadd.f32 %v5696_v2, %v1756_v8  ;;  %v2489_v56 = vsel %vm138_vm0, %v2381_v54, 0.0  ;;  %v2135_v25 = vsel %vm138_vm0, %v2017_v39, 0.0  ;;  %v7303_v43 = vld [vmem:[#allocation28_spill] sm:$0xff] }
 0x34a   :  { %v1799_v52 = vadd.f32 %v5696_v2, %v1735_v10  ;;  %v2498_v27 = vsel %vm125_vm1, %v2384_v1, 0.0  ;;  %v2386_v8 = vmul.f32 %v6579_v18, %v5489_v14  ;;  %v7307_v1 = vld [vmem:[#allocation10_spill] sm:$0xff]  ;;  %vm7310_vm11 = vcmask 556512  }
 0x34b   :  { %v1843_v7 = vmax.f32 %v1803_v44, 0.0  ;;  %v1846_v12 = vmax.f32 %v1806_v17, 0.0  ;;  %v7304_v44 = vld [vmem:[#allocation41_spill] sm:$0xff]  ;;  %vm7312_vm10 = vcmask 622112   ;;  %vm7319_vm4 = vcmask 1048512  }
 0x34c   :  { %v1839_v21 = vmax.f32 %v1799_v52, 0.0  ;;  %vm7322_vm6 = vcmask 1045509   ;;  %vm7323_vm3 = vcmask 458112  }
 0x34d   :  { %2487 = vadd.xlane.f32.xlu2 %v2486_v11  ;;  %2475 = vadd.xlane.f32.xlu1 %v2474_v47  ;;  %v1952_v48 = vperm.slane %v1843_v7, %v7209_v41  ;;  %v1958_v51 = vperm.slane %v1846_v12, %v7207_v50  ;;  %v2385_v50 = vmul.f32 %v6416_v15, %v5489_v14  ;;  %v2504_v14 = vsel %vm138_vm0, %v2386_v8, 0.0  ;;  %v7314_v8 = vld [vmem:[#allocation16_spill] sm:$0xff] }
 0x34e   :  { %v1945_v34 = vperm.slane %v1839_v21, %v7247_v37  ;;  %2133 = vadd.xlane.f32.xlu0 %v2132_v40  ;;  %v7306_v40 = vld [vmem:[#allocation27_spill] sm:$0xff]  ;;  %vm7316_vm0 = vcmask 917312  }
 0x34f   :  { %v6657_v35 = vsel %vm386_vm5, %v1952_v48, %v7298_v45  ;;  %v7308_v45 = vld [vmem:[#allocation14_spill] sm:$0xff] }
 0x350   :  { %v6661_v28 = vsel %vm7300_vm2, %v1945_v34, %v7299_v42  ;;  %v2089_v24 = vpop.xlane.xlu2 %2088  ;;  %v2077_v0 = vpop.xlane.xlu1 %2076  ;;  %v2501_v34 = vsel %vm125_vm1, %v2385_v50, 0.0  ;;  %v7315_v50 = vld [vmem:[#allocation25_spill] sm:$0xff]  ;;  %vm7317_vm1 = vcmask 982912   ;;  %vm7324_vm2 = vmmov %vm7322_vm6 }
 0x351   :  { %v2163_v13 = vadd.f32 %v5803_v3, %v2089_v24  ;;  %v1759_v63 = vpop.xlane.xlu0 %1758  ;;  %v2159_v36 = vadd.f32 %v5803_v3, %v2077_v0  ;;  %v7309_v24 = vld [vmem:[#allocation9_spill] sm:$0xff] }
 0x352   :  { %v1807_v53 = vadd.f32 %v5696_v2, %v1759_v63  ;;  %v7311_v63 = vld [vmem:[#allocation31_spill] sm:$0xff] }
 0x353   :  { %v2203_v23 = vmax.f32 %v2163_v13, 0.0  ;;  %v2199_v31 = vmax.f32 %v2159_v36, 0.0 }
 0x354   :  { %v1847_v9 = vmax.f32 %v1807_v53, 0.0 }
 0x355   :  { %v2305_v60 = vperm.slane %v2203_v23, %v7301_v55  ;;  %2490 = vadd.xlane.f32.xlu2 %v2489_v56  ;;  %2136 = vadd.xlane.f32.xlu1 %v2135_v25  ;;  %v2298_v62 = vperm.slane %v2199_v31, %v7302_v5  ;;  %v7313_v56 = vld [vmem:[#allocation36_spill] sm:$0xff] }
 0x356   :  { %v1959_v59 = vperm.slane %v1847_v9, %v7253_v29  ;;  %2499 = vadd.xlane.f32.xlu0 %v2498_v27 }
 0x357   :  { %v6677_v10 = vsel %vm2267_vm15, %v2305_v60, %v7303_v43  ;;  %v2299_v52 = vsel %vm2271_vm14, %v2298_v62, %v7304_v44 }
 0x358   :  { %v6684_v11 = vsel %vm7305_vm9, %v1959_v59, %v1958_v51  ;;  %v2113_v47 = vpop.xlane.xlu2 %2112  ;;  %v6688_v29 = vsel %vm455_vm8, %v2299_v52, %v7306_v40  ;;  %v2110_v17 = vpop.xlane.xlu1 %2109  ;;  %v7318_v40 = vld [vmem:[#allocation24_spill] sm:$0xff]  ;;  %vm7325_vm9 = vcmask 162912  }
 0x359   :  { %v2171_v18 = vadd.f32 %v5803_v3, %v2113_v47  ;;  %v2101_v7 = vpop.xlane.xlu0 %2100  ;;  %v2170_v21 = vadd.f32 %v5803_v3, %v2110_v17 }
 0x35a   :  { %v2167_v48 = vadd.f32 %v5803_v3, %v2101_v7  ;;  %v7320_v7 = vld [vmem:[#allocation11_spill] sm:$0xff] }
 0x35b   :  { %v2211_v15 = vmax.f32 %v2171_v18, 0.0  ;;  %v2210_v54 = vmax.f32 %v2170_v21, 0.0 }
 0x35c   :  { %v2207_v39 = vmax.f32 %v2167_v48, 0.0 }
 0x35d   :  { %v2319_v12 = vperm.slane %v2211_v15, %v7307_v1  ;;  %2505 = vadd.xlane.f32.xlu1 %v2504_v14  ;;  %v2318_v42 = vperm.slane %v2210_v54, %v7308_v45 }
 0x35e   :  { %v2312_v13 = vperm.slane %v2207_v39, %v7309_v24  ;;  %2502 = vadd.xlane.f32.xlu0 %v2501_v34 }
 0x35f   :  { %v6699_v0 = vsel %vm7310_vm11, %v2319_v12, %v2318_v42  ;;  %vm7326_vm11 = vcmask 1044484  }
 0x360   :  { %v6703_v36 = vsel %vm7312_vm10, %v2312_v13, %v7311_v63  ;;  %v2455_v53 = vpop.xlane.xlu2 %2454  ;;  %v2443_v23 = vpop.xlane.xlu1 %2442 }
 0x361   :  { %v2531_v25 = vadd.f32 %v7313_v56, %v2455_v53  ;;  %v2431_v27 = vpop.xlane.xlu0 %2430  ;;  %v2527_v51 = vadd.f32 %v7313_v56, %v2443_v23 }
 0x362   :  { %v2523_v31 = vadd.f32 %v7313_v56, %v2431_v27 }
 0x363   :  { %v2571_v9 = vmax.f32 %v2531_v25, 0.0  ;;  %v2567_v60 = vmax.f32 %v2527_v51, 0.0 }
 0x364   :  { %v2563_v62 = vmax.f32 %v2523_v31, 0.0 }
 0x365   :  { %v2672_v59 = vperm.slane %v2571_v9, %v7281_v57  ;;  %v2665_v43 = vperm.slane %v2567_v60, %v7314_v8 }
 0x366   :  { %v2658_v44 = vperm.slane %v2563_v62, %v7315_v50 }
 0x367   :  { %v6713_v52 = vsel %vm7316_vm0, %v2672_v59, %v6551_v16  ;;  %v2666_v47 = vsel %vm7317_vm1, %v2665_v43, %v6555_v61  ;;  %vm7327_vm0 = vmmov %vm7319_vm4 }
 0x368   :  { %v2659_v18 = vsel %vm7319_vm4, %v2658_v44, %v7318_v40  ;;  %v2845_v17 = vpop.xlane.xlu2 %2844  ;;  %v2467_v14 = vpop.xlane.xlu1 %2466  ;;  %vm7329_vm1 = vmmov %vm7323_vm3  ;;  %vm7330_vm4 = vcmask 1046534  }
 0x369   :  { %v2706_v21 = vsel %vm453_vm7, %v2659_v18, %v7320_v7  ;;  %v2907_v48 = vadd.f32 %v5739_v30, %v2845_v17  ;;  %v2464_v15 = vpop.xlane.xlu0 %2463  ;;  %v2535_v34 = vadd.f32 %v7313_v56, %v2467_v14  ;;  %vm7321_vm7 = vcmask 851712  }
 0x36a   :  { %v2534_v54 = vadd.f32 %v7313_v56, %v2464_v15 }
 0x36b   :  { %v2947_v16 = vmax.f32 %v2907_v48, 0.0  ;;  %v2575_v39 = vmax.f32 %v2535_v34, 0.0 }
 0x36c   :  { %v2574_v12 = vmax.f32 %v2534_v54, 0.0 }
 0x36d   :  { %v3060_v61 = vperm.slane %v2947_v16, %v5969_v20  ;;  %v2679_v42 = vperm.slane %v2575_v39, %v4853_v26 }
 0x36e   :  { %v2678_v13 = vperm.slane %v2574_v12, %v4864_v33 }
 0x36f   :  { %v3061_v63 = vsel %vm3010_vm13, %v3060_v61, %v6598_v22 }
 0x370   :  { %v6730_v53 = vsel %vm7321_vm7, %v2679_v42, %v2678_v13  ;;  %v1738_v25 = vpop.xlane.xlu2 %1737  ;;  %v6734_v23 = vsel %vm7322_vm6, %v3061_v63, %v6606_v46  ;;  %v2869_v51 = vpop.xlane.xlu1 %2868  ;;  %vm7331_vm7 = vmmov %vm7330_vm4 }
 0x371   :  { %v1800_v27 = vadd.f32 %v5696_v2, %v1738_v25  ;;  %v2857_v31 = vpop.xlane.xlu0 %2856  ;;  %v2915_v9 = vadd.f32 %v5739_v30, %v2869_v51  ;;  %vm7332_vm6 = vmmov %vm7324_vm2 }
 0x372   :  { %v2911_v60 = vadd.f32 %v5739_v30, %v2857_v31 }
 0x373   :  { %v1840_v62 = vmax.f32 %v1800_v27, 0.0  ;;  %v2955_v59 = vmax.f32 %v2915_v9, 0.0 }
 0x374   :  { %v2951_v43 = vmax.f32 %v2911_v60, 0.0 }
 0x375   :  { %v1947_v22 = vperm.slane %v1840_v62, %v7284_v4  ;;  %v3076_v44 = vperm.slane %v2955_v59, %v5268_v19 }
 0x376   :  { %v3068_v40 = vperm.slane %v2951_v43, %v5849_v32 }
 0x377   :  { %v1948_v46 = vsel %vm7323_vm3, %v1947_v22, %v6661_v28  ;;  %v6748_v17 = vsel %vm7325_vm9, %v3076_v44, %v6635_v38  ;;  %vm7333_vm3 = vcmask 982912   ;;  %vm7335_vm9 = vmmov %vm7326_vm11 }
 0x378   :  { %v1971_v18 = vsel %vm7324_vm2, %v1948_v46, %v6632_v58  ;;  %v3069_v7 = vsel %vm3006_vm12, %v3068_v40, %v6588_v49  ;;  %v2092_v48 = vpop.xlane.xlu2 %2091  ;;  %v6753_v15 = vpop.xlane.xlu1 %1761  ;;  %vm7334_vm2 = vmmov %vm7327_vm0 }
 0x379   :  { %v2164_v14 = vadd.f32 %v5803_v3, %v2092_v48  ;;  %v1750_v19 = vpop.xlane.xlu0 %1749 }
 0x37b   :  { %v2204_v34 = vmax.f32 %v2164_v14, 0.0 }
 0x37d   :  { %v2307_v54 = vperm.slane %v2204_v34, %v7302_v5 }
 0x37f   :  { %v2308_v28 = vsel %vm2271_vm14, %v2307_v54, %v6677_v10 }
 0x380   :  { %v2339_v58 = vsel %vm7326_vm11, %v2308_v28, %v6688_v29  ;;  %v6760_v38 = vpop.xlane.xlu2 %2124  ;;  %v2116_v16 = vpop.xlane.xlu1 %2115  ;;  %vm1975_vm11 = vcmask 425088  }
 0x381   :  { %v2104_v39 = vpop.xlane.xlu0 %2103  ;;  %v2172_v49 = vadd.f32 %v5803_v3, %v2116_v16 }
 0x382   :  { %v2168_v12 = vadd.f32 %v5803_v3, %v2104_v39 }
 0x383   :  { %v2212_v61 = vmax.f32 %v2172_v49, 0.0 }
 0x384   :  { %v2208_v42 = vmax.f32 %v2168_v12, 0.0 }
 0x385   :  { %v2321_v13 = vperm.slane %v2212_v61, %v7309_v24 }
 0x386   :  { %v2314_v63 = vperm.slane %v2208_v42, %v7301_v55 }
 0x387   :  { %v6768_v10 = vsel %vm7312_vm10, %v2321_v13, %v6699_v0  ;;  %vm7338_vm10 = vmmov %vm7329_vm1 }
 0x388   :  { %v2315_v29 = vsel %vm2267_vm15, %v2314_v63, %v6703_v36  ;;  %v2458_v25 = vpop.xlane.xlu2 %2457  ;;  %v2446_v27 = vpop.xlane.xlu1 %2445  ;;  %v1804_v36 = vadd.f32 %v5696_v2, %v1750_v19 }
 0x389   :  { %v6772_v51 = vpop.xlane.xlu0 %2127  ;;  %v2528_v31 = vadd.f32 %v7313_v56, %v2446_v27 }
 0x38a   :  { %v1844_v44 = vmax.f32 %v1804_v36, 0.0 }
 0x38b   :  { %v2568_v9 = vmax.f32 %v2528_v31, 0.0  ;;  %v3139_v31 = vld [vmem:[%s7018_s3 + $0x118] sm:$0xff] }
 0x38c   :  { %v1954_v34 = vperm.slane %v1844_v44, %v7247_v37  ;;  %3199 = vmatpush.msra.mxu2 %v3139_v31 }
 0x38d   :  { %v2667_v60 = vperm.slane %v2568_v9, %v7315_v50 }
 0x38f   :  { %v2668_v62 = vsel %vm7327_vm0, %v2667_v60, %v2666_v47  ;;  %vm3099_vm0 = vcmask 261120  }
 0x390   :  { %v6777_v59 = vpop.xlane.xlu2 %2481  ;;  %v2707_v43 = vsel %vm455_vm8, %v2668_v62, %v2706_v21  ;;  %v6780_v0 = vpop.xlane.xlu1 %2478  ;;  %vm7328_vm8 = vcmask 392512   ;;  %v3137_v62 = vld [vmem:[%s7018_s3 + $0x108] sm:$0xff] }
 0x391   :  { %v6782_v22 = vpop.xlane.xlu0 %2469  ;;  %v1955_v16 = vsel %vm7328_vm8, %v1954_v34, %v6657_v35  ;;  %v2532_v35 = vadd.f32 %v7313_v56, %v2458_v25  ;;  %v3134_v25 = vld [vmem:[%s7018_s3 + $0xf0] sm:$0xff]  ;;  %v3133_v34 = vld [vmem:[%s7018_s3 + $0xe8] sm:$0xff] }
 0x393   :  { %v2572_v60 = vmax.f32 %v2532_v35, 0.0 }
 0x398   :  { %v1753_v40 = vpop.xlane.xlu2 %1752  ;;  %v2872_v48 = vpop.xlane.xlu1 %2871 }
 0x399   :  { %v1805_v46 = vadd.f32 %v5696_v2, %v1753_v40  ;;  %v2860_v14 = vpop.xlane.xlu0 %2859 }
 0x39a   :  { %v2912_v47 = vadd.f32 %v5739_v30, %v2860_v14 }
 0x39b   :  { %v1845_v54 = vmax.f32 %v1805_v46, 0.0 }
 0x39c   :  { %v2952_v28 = vmax.f32 %v2912_v47, 0.0  ;;  %v3136_v47 = vld [vmem:[%s7018_s3 + $0x100] sm:$0xff] }
 0x39d   :  { %v1956_v21 = vperm.slane %v1845_v54, %v7284_v4 }
 0x39e   :  { %v3070_v39 = vperm.slane %v2952_v28, %v5969_v20 }
 0x39f   :  { %v1957_v19 = vsel %vm7329_vm1, %v1956_v21, %v1955_v16  ;;  %v3131_v21 = vld [vmem:[%s7018_s3 + $0xd8] sm:$0xff] }
 0x3a0   :  { %v6794_v49 = vsel %vm7330_vm4, %v1957_v19, %v1971_v18  ;;  %v3071_v12 = vsel %vm3010_vm13, %v3070_v39, %v3069_v7  ;;  %v2119_v61 = vpop.xlane.xlu2 %2118  ;;  %v2107_v42 = vpop.xlane.xlu1 %2106  ;;  %v3135_v18 = vld [vmem:[%s7018_s3 + $0xf8] sm:$0xff]  ;;  %v3138_v7 = vld [vmem:[%s7018_s3 + $0x110] sm:$0xff] }
 0x3a1   :  { %v1765_v13 = vpop.xlane.xlu0 %1764  ;;  %v6799_v63 = vsel %vm7331_vm7, %v3071_v12, %v6734_v23  ;;  %v2169_v27 = vadd.f32 %v5803_v3, %v2107_v42  ;;  %3167 = vmatpush.msra.mxu1 %v3135_v18  ;;  %3200 = vmatpush.msra.mxu2 %v3138_v7  ;;  %v3130_v19 = vld [vmem:[%s7018_s3 + $0xd0] sm:$0xff]  ;;  %v1808_v12 = vadd.f32 %v5696_v2, %v6753_v15  ;;  %vm7343_vm7 = vmmov %vm7334_vm2 }
 0x3a2   :  { %v2916_v18 = vadd.f32 %v5739_v30, %v2872_v48  ;;  %v2173_v15 = vadd.f32 %v5803_v3, %v2119_v61  ;;  %v1809_v7 = vadd.f32 %v5696_v2, %v1765_v13  ;;  %v3126_v48 = vld [vmem:[%s7018_s3 + $0xb0] sm:$0xff] }
 0x3a3   :  { %v2209_v9 = vmax.f32 %v2169_v27, 0.0  ;;  %3168 = vmatpush.msra.mxu1 %v3134_v25  ;;  %3201 = vmatpush.msra.mxu2 %v3137_v62 }
 0x3a4   :  { %v2956_v25 = vmax.f32 %v2916_v18, 0.0  ;;  %v2213_v62 = vmax.f32 %v2173_v15, 0.0 }
 0x3a5   :  { %v2316_v23 = vperm.slane %v2209_v9, %v7302_v5  ;;  %3169 = vmatpush.msra.mxu1 %v3133_v34  ;;  %3202 = vmatpush.msra.mxu2 %v3136_v47 }
 0x3a7   :  { %v2317_v36 = vsel %vm2271_vm14, %v2316_v23, %v2315_v29  ;;  %v2674_v29 = vperm.slane %v2572_v60, %v7314_v8  ;;  %v1848_v23 = vmax.f32 %v1808_v12, 0.0  ;;  %v3127_v60 = vld [vmem:[%s7018_s3 + $0xb8] sm:$0xff] }
 0x3a8   :  { %v2473_v44 = vpop.xlane.xlu2 %2472  ;;  %v6821_v40 = vsel %vm7332_vm6, %v2317_v36, %v2339_v58  ;;  %v2461_v46 = vpop.xlane.xlu1 %2460  ;;  %v3132_v58 = vld [vmem:[%s7018_s3 + $0xe0] sm:$0xff]  ;;  %v1849_v36 = vmax.f32 %v1809_v7, 0.0 }
 0x3a9   :  { %v6823_v14 = vpop.xlane.xlu0 %2130  ;;  %v2533_v54 = vadd.f32 %v7313_v56, %v2461_v46  ;;  %3170 = vmatpush.msra.mxu1 %v3132_v58  ;;  %v2675_v39 = vsel %vm7333_vm3, %v2674_v29, %v6713_v52  ;;  %v3129_v52 = vld [vmem:[%s7018_s3 + $0xc8] sm:$0xff]  ;;  %v1961_v61 = vperm.slane %v1848_v23, %v7209_v41  ;;  %v2536_v46 = vadd.f32 %v7313_v56, %v6782_v22 }
 0x3aa   :  { %v3125_v29 = vld [vmem:[%s7018_s3 + $0xa8] sm:$0xff]  ;;  %v3078_v58 = vperm.slane %v2956_v25, %v5849_v32  ;;  %v2537_v22 = vadd.f32 %v7313_v56, %v2473_v44 }
 0x3ab   :  { %v2573_v28 = vmax.f32 %v2533_v54, 0.0  ;;  %3171 = vmatpush.msra.mxu1 %v3131_v21  ;;  %v1962_v12 = vsel %vm386_vm5, %v1961_v61, %v6684_v11  ;;  %v2576_v44 = vmax.f32 %v2536_v46, 0.0  ;;  %v3122_v11 = vld [vmem:[%s7018_s3 + $0x90] sm:$0xff]  ;;  %vm7336_vm5 = vmmov %vm7328_vm8  ;;  %vm7339_vm8 = vcmask 1047559  }
 0x3ac   :  { %v3079_v18 = vsel %vm3006_vm12, %v3078_v58, %v6748_v17  ;;  %vm7337_vm12 = vmmov %vm7330_vm4 }
 0x3ad   :  { %v2676_v16 = vperm.slane %v2573_v28, %v7315_v50  ;;  %3172 = vmatpush.msra.mxu1 %v3130_v19  ;;  %v2323_v28 = vperm.slane %v2213_v62, %v7301_v55  ;;  %v3124_v19 = vld [vmem:[%s7018_s3 + $0xa0] sm:$0xff]  ;;  %vm7340_vm1 = vmmov %vm7339_vm8  ;;  %v2681_v61 = vperm.slane %v2576_v44, %v7281_v57 }
 0x3ae   :  { %vm7342_vm4 = vmmov %vm7333_vm3  ;;  %vm7344_vm3 = vcmask 556512  }
 0x3af   :  { %v2677_v42 = vsel %vm7334_vm2, %v2676_v16, %v2675_v39  ;;  %3173 = vmatpush.msra.mxu1 %v3129_v52  ;;  %v1963_v16 = vperm.slane %v1849_v36, %v7247_v37  ;;  %v2176_v37 = vadd.f32 %v5803_v3, %v6772_v51  ;;  %v2324_v15 = vsel %vm2267_vm15, %v2323_v28, %v6768_v10 }
 0x3b0   :  { %v6848_v27 = vpop.xlane.xlu2 %2496  ;;  %v6851_v35 = vsel %vm7335_vm9, %v2677_v42, %v2707_v43  ;;  %v6853_v31 = vpop.xlane.xlu1 %2493  ;;  %v3128_v43 = vld [vmem:[%s7018_s3 + $0xc0] sm:$0xff]  ;;  %vm7345_vm2 = vcmask 622112   ;;  %vm2344_vm9 = vcmask 720288  }
 0x3b1   :  { %v6855_v9 = vpop.xlane.xlu0 %2484  ;;  %3174 = vmatpush.msra.mxu1 %v3128_v43  ;;  %v1964_v51 = vsel %vm7336_vm5, %v1963_v16, %v1962_v12  ;;  %v2577_v43 = vmax.f32 %v2537_v22, 0.0  ;;  %vm7346_vm5 = vmmov %vm7340_vm1 }
 0x3b3   :  { %3175 = vmatpush.msra.mxu1 %v3127_v60  ;;  %v3121_v60 = vld [vmem:[%s7018_s3 + $0x88] sm:$0xff] }
 0x3b5   :  { %3176 = vmatpush.msra.mxu1 %v3126_v48 }
 0x3b7   :  { %3177 = vmatpush.msra.mxu1 %v3125_v29  ;;  %v2540_v29 = vadd.f32 %v7313_v56, %v6777_v59 }
 0x3b8   :  { %v2122_v13 = vpop.xlane.xlu2 %2121  ;;  %v1768_v47 = vpop.xlane.xlu1 %1767 }
 0x3b9   :  { %v2174_v34 = vadd.f32 %v5803_v3, %v2122_v13  ;;  %v2875_v54 = vpop.xlane.xlu0 %2874  ;;  %v1810_v21 = vadd.f32 %v5696_v2, %v1768_v47  ;;  %3178 = vmatpush.msra.mxu1 %v3124_v19  ;;  %v3123_v2 = vld [vmem:[%s7018_s3 + $0x98] sm:$0xff]  ;;  %v2177_v13 = vadd.f32 %v5803_v3, %v6823_v14  ;;  %v2216_v47 = vmax.f32 %v2176_v37, 0.0 }
 0x3ba   :  { %v2917_v41 = vadd.f32 %v5739_v30, %v2875_v54  ;;  %v2175_v30 = vadd.f32 %v5803_v3, %v6760_v38  ;;  %v2541_v19 = vadd.f32 %v7313_v56, %v6855_v9 }
 0x3bb   :  { %v2214_v39 = vmax.f32 %v2174_v34, 0.0  ;;  %v1850_v32 = vmax.f32 %v1810_v21, 0.0  ;;  %3179 = vmatpush.msra.mxu1 %v3123_v2  ;;  %v2217_v58 = vmax.f32 %v2177_v13, 0.0  ;;  %v2539_v21 = vadd.f32 %v7313_v56, %v6780_v0 }
 0x3bc   :  { %v2957_v42 = vmax.f32 %v2917_v41, 0.0 }
 0x3bd   :  { %v2325_v52 = vperm.slane %v2214_v39, %v7302_v5  ;;  %v1965_v7 = vperm.slane %v1850_v32, %v7284_v4  ;;  %3180 = vmatpush.msra.mxu1 %v3122_v11  ;;  %v2328_v39 = vperm.slane %v2216_v47, %v7307_v1  ;;  %v2545_v32 = vadd.f32 %v7313_v56, %v6848_v27 }
 0x3be   :  { %v3080_v38 = vperm.slane %v2957_v42, %v5969_v20  ;;  %v2544_v1 = vadd.f32 %v7313_v56, %v6853_v31 }
 0x3bf   :  { %v2326_v23 = vsel %vm2271_vm14, %v2325_v52, %v2324_v15  ;;  %v1966_v10 = vsel %vm7338_vm10, %v1965_v7, %v1964_v51  ;;  %3181 = vmatpush.msra.mxu1 %v3121_v60  ;;  %v2579_v52 = vmax.f32 %v2539_v21, 0.0  ;;  %v2585_v7 = vmax.f32 %v2545_v32, 0.0  ;;  %vm7351_vm10 = vmmov %vm7343_vm7 }
 0x3c0   :  { %v6914_v17 = vsel %vm7337_vm12, %v2326_v23, %v6821_v40  ;;  %v2488_v4 = vpop.xlane.xlu2 %2487  ;;  %v3081_v20 = vsel %vm3010_vm13, %v3080_v38, %v3079_v18  ;;  %v1973_v25 = vsel %vm7339_vm8, %v1966_v10, %v6794_v49  ;;  %v2476_v62 = vpop.xlane.xlu1 %2475  ;;  %v3120_v40 = vld [vmem:[%s7018_s3 + $0x80] sm:$0xff]  ;;  %v2683_v49 = vperm.slane %v2577_v43, %v7314_v8 }
 0x3c1   :  { %v2134_v36 = vpop.xlane.xlu0 %2133  ;;  %v3095_v48 = vsel %vm7340_vm1, %v3081_v20, %v6799_v63  ;;  %1976 = vst.msk [vmem:[#allocation2 + $0x8] sm:$0xff] %vm1975_vm11, %v1973_v25  ;;  %v2538_v46 = vadd.f32 %v7313_v56, %v2476_v62  ;;  %v2215_v63 = vmax.f32 %v2175_v30, 0.0  ;;  %3182 = vmatpush.msra.mxu1 %v3120_v40  ;;  %vm7341_vm13 = vcmask 917312   ;;  %vm7349_vm11 = vmmov %vm7342_vm4 }
 0x3c2   :  { %v2178_v34 = vadd.f32 %v5803_v3, %v2134_v36  ;;  %3100 = vst.msk [vmem:[#allocation2 + $0x10] sm:$0xff] %vm3099_vm0, %v3095_v48  ;;  %v2682_v14 = vsel %vm7341_vm13, %v2681_v61, %v6730_v53  ;;  %v2580_v53 = vmax.f32 %v2540_v29, 0.0  ;;  %v2542_v42 = vadd.f32 %v7313_v56, %v2488_v4  ;;  %vm7352_vm8 = vmmov %vm7341_vm13 }
 0x3c3   :  { %v2578_v54 = vmax.f32 %v2538_v46, 0.0  ;;  %v2684_v41 = vsel %vm7342_vm4, %v2683_v49, %v2682_v14  ;;  %v2327_v22 = vperm.slane %v2215_v63, %v7308_v45  ;;  %v2330_v45 = vperm.slane %v2217_v58, %v7309_v24  ;;  %vm7353_vm1 = vmmov %vm7342_vm4 }
 0x3c4   :  { %v2218_v16 = vmax.f32 %v2178_v34, 0.0  ;;  %v2688_v24 = vperm.slane %v2580_v53, %v4853_v26  ;;  %v2582_v31 = vmax.f32 %v2542_v42, 0.0  ;;  %v2584_v51 = vmax.f32 %v2544_v1, 0.0 }
 0x3c5   :  { %v2685_v28 = vperm.slane %v2578_v54, %v7315_v50  ;;  %v2329_v15 = vsel %vm7344_vm3, %v2328_v39, %v2327_v22  ;;  %v2697_v20 = vperm.slane %v2585_v7, %v4853_v26  ;;  %vm7354_vm4 = vcmask 1046534   ;;  %v3301_v39 = vld [vmem:[%s7019_s4] ss:$0 sm:$0xff]  ;;  %s3431_s4 = smov [#allocation6]  }
 0x3c6   :  { %v2332_v27 = vperm.slane %v2218_v16, %v7301_v55  ;;  %v2331_v38 = vsel %vm7345_vm2, %v2330_v45, %v2329_v15  ;;  %v2687_v55 = vperm.slane %v2579_v52, %v4864_v33  ;;  %v2692_v25 = vperm.slane %v2582_v31, %v7314_v8  ;;  %v3252_v16 = vld [vmem:[%s7022_s7] sm:$0xff] }
 0x3c7   :  { %v2686_v59 = vsel %vm7343_vm7, %v2685_v28, %v2684_v41  ;;  %vm7356_vm3 = vcmask 1048544   ;;  %v3209_v41 = vld [vmem:[%s7020_s5 + $0x8] sm:$0xff]  ;;  %v3430_v22 = vmov 0   ;;  %vm3239_vm2 = vcmask 15360  }
 0x3c8   :  { %v2491_v12 = vpop.xlane.xlu2 %2490  ;;  %v2709_v0 = vsel %vm7332_vm6, %v2686_v59, %v6851_v35  ;;  %v2137_v2 = vpop.xlane.xlu1 %2136  ;;  %v2581_v35 = vmax.f32 %v2541_v19, 0.0  ;;  %v2333_v23 = vsel %vm2267_vm15, %v2332_v27, %v2331_v38  ;;  %vm7347_vm15 = vcmask 851712   ;;  %vm7355_vm6 = vmmov %vm7346_vm5  ;;  %3300 = vset.pattern.permute.xlu0 %v3430_v22 }
 0x3c9   :  { %v2500_v30 = vpop.xlane.xlu0 %2499  ;;  %v2543_v9 = vadd.f32 %v7313_v56, %v2491_v12  ;;  %v2179_v37 = vadd.f32 %v5803_v3, %v2137_v2  ;;  %v3103_v44 = vld [vmem:[#allocation2 + $0x10] sm:$0xff]  ;;  %v2689_v46 = vsel %vm7347_vm15, %v2688_v24, %v2687_v55  ;;  %vm7350_vm12 = vmmov %vm7347_vm15  ;;  %3254 = vperm.xlu0 %3300, %v3252_v16   ;;  %v3164_v19 = vpop.f32.mrf.mxu0  ;;  %v3302_v2 = vld [vmem:[%s7021_s6] ss:$0 sm:$0xff]  ;;  %s3276_s6 = sshll.u32 %s3431_s4, 4  ;;  %s3277_s6 = int_to_ptr.vmem [resolvable:$true] %s3276_s6 }
 0x3ca   :  { %v2546_v11 = vadd.f32 %v7313_v56, %v2500_v30  ;;  %3295 = vmatmul.msk.f32.vlgmr.msra.gmra.mxu2 %vm3099_vm0, %v3103_v44  ;;  %v2690_v10 = vperm.slane %v2581_v35, %v7281_v57  ;;  %v3165_v59 = vadd.f32 %v3301_v39, %v3164_v19 }
 0x3cb   :  { %v2219_v18 = vmax.f32 %v2179_v37, 0.0  ;;  %v2583_v3 = vmax.f32 %v2543_v9, 0.0  ;;  %v7357_v37 = vld [vmem:[#allocation29_spill] sm:$0xff] }
 0x3cc   :  { %v2586_v60 = vmax.f32 %v2546_v11, 0.0 }
 0x3cd   :  { %v2334_v43 = vperm.slane %v2219_v18, %v7302_v5  ;;  %v2696_v5 = vperm.slane %v2584_v51, %v4864_v33  ;;  %v2694_v40 = vperm.slane %v2583_v3, %v7315_v50 }
 0x3ce   :  { %v2699_v26 = vperm.slane %v2586_v60, %v7281_v57 }
 0x3cf   :  { %v2335_v4 = vsel %vm2271_vm14, %v2334_v43, %v2333_v23  ;;  %vm7348_vm14 = vmmov %vm7341_vm13  ;;  %v2698_v47 = vsel %vm7350_vm12, %v2697_v20, %v2696_v5  ;;  %vm2713_vm13 = vcmask 1015488  }
 0x3d0   :  { %v2342_v62 = vsel %vm7346_vm5, %v2335_v4, %v6914_v17  ;;  %v2506_v48 = vpop.xlane.xlu1 %2505  ;;  %v2691_v49 = vsel %vm7348_vm14, %v2690_v10, %v2689_v46 }
 0x3d1   :  { %v2503_v36 = vpop.xlane.xlu0 %2502  ;;  %2345 = vst.msk [vmem:[#allocation2 + $0x8] sm:$0xff] %vm2344_vm9, %v2342_v62  ;;  %v2548_v13 = vadd.f32 %v7313_v56, %v2506_v48  ;;  %v2693_v17 = vsel %vm7349_vm11, %v2692_v25, %v2691_v49 }
 0x3d2   :  { %v2547_v61 = vadd.f32 %v7313_v56, %v2503_v36  ;;  %v2695_v33 = vsel %vm7351_vm10, %v2694_v40, %v2693_v17  ;;  %v2700_v56 = vsel %vm7352_vm8, %v2699_v26, %v2698_v47 }
 0x3d3   :  { %v2588_v63 = vmax.f32 %v2548_v13, 0.0  ;;  %v2710_v57 = vsel %vm7354_vm4, %v2695_v33, %v2709_v0 }
 0x3d4   :  { %v2587_v34 = vmax.f32 %v2547_v61, 0.0 }
 0x3d5   :  { %v2703_v29 = vperm.slane %v2588_v63, %v7315_v50  ;;  %v3210_v50 = vld [vmem:[%s7020_s5 + $0x10] sm:$0xff] }
 0x3d6   :  { %v2701_v54 = vperm.slane %v2587_v34, %v7314_v8  ;;  %v3211_v8 = vld [vmem:[%s7020_s5 + $0x18] sm:$0xff] }
 0x3d7   :  { %3231 = vmatpush.msra.mxu3 %v3211_v8 }
 0x3d8   :  { %v2702_v14 = vsel %vm7353_vm1, %v2701_v54, %v2700_v56 }
 0x3d9   :  { %v2704_v58 = vsel %vm7343_vm7, %v2703_v29, %v2702_v14  ;;  %3232 = vmatpush.msra.mxu3 %v3210_v50 }
 0x3da   :  { %v2711_v28 = vsel %vm7355_vm6, %v2704_v58, %v2710_v57 }
 0x3db   :  { %2714 = vst.msk [vmem:[#allocation2 + $0x8] sm:$0xff] %vm2713_vm13, %v2711_v28  ;;  %3233 = vmatpush.msra.mxu3 %v3209_v41 }
 0x3dc   :  { %3098 = vst.msk [vmem:[#allocation2 + $0x8] sm:$0xff] %vm7356_vm3, %v6639_v6  ;;  %v3208_v6 = vld [vmem:[%s7020_s5] sm:$0xff] }
 0x3dd   :  { %3234 = vmatpush.msra.mxu3 %v3208_v6 }
 0x3e3   :  { %v3102_v21 = vld [vmem:[#allocation2 + $0x8] sm:$0xff] }
 0x3e4   :  { %3183 = vmatmul.f32.vlgmr.msra.gmra.mxu1 %v3102_v21 }
 0x43b   :  { %v3255_v1 = vpop.permute.xlu0 %3254 }
 0x43c   :  { %vm3256_vm9 = vcmp.eq.s32.totalorder %v7357_v37, %v3255_v1 }
 0x44d   :  { %v3204_v32 = vpop.f32.mrf.mxu2 }
 0x461   :  { %v3184_v12 = vpop.f32.mrf.mxu1 }
 0x462   :  { %v3185_v53 = vadd.f32 %v3184_v12, %v3165_v59 }
 0x464   :  { %v3205_v42 = vadd.f32 %v3204_v32, %v3185_v53 }
 0x466   :  { %v3207_v0 = vmax.f32 %v3205_v42, 0.0 }
 0x468   :  { %3296 = vmatmul.msk.f32.vlgmr.msra.gmra.mxu3 %vm3099_vm0, %v3207_v0  ;;  %vm3269_vm0 = vcmask 0  }
 0x4eb   :  { %v3236_v30 = vpop.f32.mrf.mxu3 }
 0x4ec   :  { %v3237_v45 = vadd.f32 %v3302_v2, %v3236_v30 }
 0x4ee   :  { %v3240_v9 = vsel %vm3239_vm2, %v3237_v45, -inf  ;;  %v3257_v44 = vsel %vm3256_vm9, %v3237_v45, 0.0 }
 0x4ef   :  { %3241 = vmax.xlane.f32.xlu2 %v3240_v9  ;;  %v3258_v52 = vsel %vm3239_vm2, %v3257_v44, 0.0 }
 0x4f7   :  { %3259 = vadd.xlane.f32.xlu2 %v3258_v52 }
 0x562   :  { %v3242_v27 = vpop.xlane.xlu2 %3241 }
 0x563   :  { %v3243_v11 = vsub.f32 %v3237_v45, %v3242_v27 }
 0x565   :  { %v3244_v35 = vmul.f32 1.442695, %v3243_v11 }
 0x567   :  { %3303 = vpow2.f32 %v3244_v35 }
 0x56a   :  { %v3260_v51 = vpop.xlane.xlu2 %3259 }
 0x56d   :  { %v3304_v18 = vpop.eup %3303 }
 0x56e   :  { %v3246_v15 = vsel %vm3239_vm2, %v3304_v18, 0.0 }
 0x56f   :  { %3247 = vadd.xlane.f32.xlu1 %v3246_v15 }
 0x5e2   :  { %v3248_v24 = vpop.xlane.xlu1 %3247 }
 0x5e3   :  { %3305 = vlog2.f32 %v3248_v24 }
 0x5e9   :  { %v3306_v7 = vpop.eup %3305 }
 0x5ea   :  { %v3250_v31 = vmul.f32 0.6931472, %v3306_v7 }
 0x5ec   :  { %v3251_v38 = vadd.f32 %v3250_v31, %v3242_v27 }
 0x5ee   :  { %v3261_v3 = vsub.f32 %v3251_v38, %v3260_v51 }
 0x5f0   :  { %v3262_v43 = vrot.slane %v3261_v3, 4 }
 0x5f2   :  { %v3263_v55 = vadd.f32 %v3262_v43, %v3261_v3 }
 0x5f4   :  { %v3264_v23 = vrot.slane %v3263_v55, 2 }
 0x5f6   :  { %v3265_v60 = vadd.f32 %v3264_v23, %v3263_v55 }
 0x5f8   :  { %v3266_v10 = vrot.slane %v3265_v60, 1 }
 0x5fa   :  { %v3267_v4 = vadd.f32 %v3266_v10, %v3265_v60 }
 0x5fc   :  { %v3268_v20 = vmul.f32 0.125, %v3267_v4 }
 0x5fe   :  { %3270 = vst.msk [vmem:[#allocation6] sm:$0x1] %vm3269_vm0, %v3268_v20 }
 0x5ff   :  { %3281 = dma.vmem_to_hbm [thread:$0]  %s3277_s6, 16, %s3279_s15, [#allocation4]  }
 0x600   :  { %3427 = dma.done.wait [#allocation4], 16  }
 0x601   :  { %3428 = vsyncadd [#allocation4], 4294967280 }
 0x602   :  { %3286 = vsyncpa [#allocation4], 1 }
 0x603   :  { %3287 = vsyncpa [#allocation5], 1 }

</bundles_post_ra>
